<compile_context>
chip_gen: v7x
topology: tpu7x:2x2x1
jax: 0.10.0
libtpu: 0.0.40
codegen_flags: <defaults>
</compile_context>

<pallas_src>
import functools

import jax
import jax.numpy as jnp
from jax.experimental import pallas as pl
from jax.experimental.pallas import tpu as pltpu


# ------------------------------------------------------------------ utilities

def _round_up(x, m):
    return (x + m - 1) // m * m


def _pad2d(x, rows, cols):
    r, c = x.shape
    if r == rows and c == cols:
        return x
    return jnp.pad(x, ((0, rows - r), (0, cols - c)))


class KeyGen:
    def __init__(self, key):
        self.key = key

    def __call__(self):
        self.key, sub = jax.random.split(self.key)
        return sub


# ------------------------------------------------------------------ Pallas kernels

def _matmul_affine_kernel(a_ref, b_ref, scale_ref, shift_ref, o_ref, acc_ref,
                          *, apply_relu):
    # y = maybe_relu((A @ B) * scale + shift), bias pre-folded into shift.
    @pl.when(pl.program_id(2) == 0)
    def _():
        acc_ref[...] = jnp.zeros_like(acc_ref)

    acc_ref[...] += jnp.dot(a_ref[...], b_ref[...],
                            preferred_element_type=jnp.float32)

    @pl.when(pl.program_id(2) == pl.num_programs(2) - 1)
    def _():
        y = acc_ref[...] * scale_ref[...] + shift_ref[...]
        if apply_relu:
            y = jnp.maximum(y, 0.0)
        o_ref[...] = y


def _matmul_affine_res_kernel(a_ref, b_ref, scale_ref, shift_ref, res_ref, o_ref,
                              acc_ref, *, apply_relu):
    @pl.when(pl.program_id(2) == 0)
    def _():
        acc_ref[...] = jnp.zeros_like(acc_ref)

    acc_ref[...] += jnp.dot(a_ref[...], b_ref[...],
                            preferred_element_type=jnp.float32)

    @pl.when(pl.program_id(2) == pl.num_programs(2) - 1)
    def _():
        y = acc_ref[...] * scale_ref[...] + shift_ref[...] + res_ref[...]
        if apply_relu:
            y = jnp.maximum(y, 0.0)
        o_ref[...] = y


def _pool_affine_relu_kernel(x0_ref, x1_ref, x2_ref, x3_ref, scale_ref, shift_ref,
                             o_ref):
    m = jnp.maximum(jnp.maximum(x0_ref[...], x1_ref[...]),
                    jnp.maximum(x2_ref[...], x3_ref[...]))
    o_ref[...] = jnp.maximum(m * scale_ref[...] + shift_ref[...], 0.0)


# ------------------------------------------------------------------ fused matmul wrapper

_TM_MAX = 256       # rows per tile (sublane axis)
_TN_MAX = 256       # output channels per tile (lane axis)
_TK_SINGLE = 1024   # K up to this -> single k-step, pad only to bf16 sublane (16)
_TK_TILE = 512      # K tile when K is gridded
_VMEM_LIMIT = 32 * 1024 * 1024


def _matmul_tiles(M, K, N):
    if M <= _TM_MAX:
        tm, Mp = M, M
    else:
        tm, Mp = _TM_MAX, _round_up(M, _TM_MAX)
    if N <= _TN_MAX:
        tn, Np = N, N
    else:
        tn, Np = _TN_MAX, _round_up(N, _TN_MAX)
    if K <= _TK_SINGLE:
        Kp = _round_up(K, 16)
        tk = Kp
    else:
        tk, Kp = _TK_TILE, _round_up(K, _TK_TILE)
    return tm, tn, tk, Mp, Np, Kp


def matmul_affine(a, b, scale, shift, res=None, apply_relu=True):
    """Pallas fused, tiled (a @ b) * scale + shift (+res) (+relu) with bf16 operands."""
    M, K = a.shape
    _, N = b.shape
    tm, tn, tk, Mp, Np, Kp = _matmul_tiles(M, K, N)

    ap = _pad2d(a.astype(jnp.bfloat16), Mp, Kp)
    bp = _pad2d(b.astype(jnp.bfloat16), Kp, Np)
    scp = _pad2d(scale.reshape(1, N).astype(jnp.float32), 1, Np)
    shp = _pad2d(shift.reshape(1, N).astype(jnp.float32), 1, Np)

    a_spec = pl.BlockSpec((tm, tk), lambda i, j, k: (i, k))
    b_spec = pl.BlockSpec((tk, tn), lambda i, j, k: (k, j))
    v_spec = pl.BlockSpec((1, tn), lambda i, j, k: (0, j))
    o_spec = pl.BlockSpec((tm, tn), lambda i, j, k: (i, j))

    in_specs = [a_spec, b_spec, v_spec, v_spec]
    args = [ap, bp, scp, shp]
    if res is None:
        kern = functools.partial(_matmul_affine_kernel, apply_relu=apply_relu)
    else:
        args.append(_pad2d(res.astype(jnp.float32), Mp, Np))
        in_specs.append(o_spec)
        kern = functools.partial(_matmul_affine_res_kernel, apply_relu=apply_relu)

    out = pl.pallas_call(
        kern,
        out_shape=jax.ShapeDtypeStruct((Mp, Np), jnp.float32),
        grid_spec=pltpu.PrefetchScalarGridSpec(
            num_scalar_prefetch=0,
            grid=(Mp // tm, Np // tn, Kp // tk),
            in_specs=in_specs,
            out_specs=o_spec,
            scratch_shapes=[pltpu.VMEM((tm, tn), jnp.float32)],
        ),
        compiler_params=pltpu.CompilerParams(
            dimension_semantics=("parallel", "parallel", "arbitrary"),
            vmem_limit_bytes=_VMEM_LIMIT,
        ),
    )(*args)
    if Mp != M or Np != N:
        out = out[:M, :N]
    return out


# ------------------------------------------------------------------ pooling kernel wrapper

def maxpool_bn_relu(x, scale, shift):
    """2x2 stride-2 max pool fused with per-channel affine + ReLU (NHWC, Pallas)."""
    N, H, W, C = x.shape
    Ho, Wo = H // 2, W // 2
    M = N * Ho * Wo
    if M <= 512:
        tm, Mp = M, M
    else:
        tm, Mp = 512, _round_up(M, 512)

    subs = [_pad2d(x[:, i::2, j::2, :].reshape(M, C), Mp, C)
            for i in (0, 1) for j in (0, 1)]
    scp = scale.reshape(1, C).astype(jnp.float32)
    shp = shift.reshape(1, C).astype(jnp.float32)

    x_spec = pl.BlockSpec((tm, C), lambda i: (i, 0))
    v_spec = pl.BlockSpec((1, C), lambda i: (0, 0))

    out = pl.pallas_call(
        _pool_affine_relu_kernel,
        out_shape=jax.ShapeDtypeStruct((Mp, C), jnp.float32),
        grid_spec=pltpu.PrefetchScalarGridSpec(
            num_scalar_prefetch=0,
            grid=(Mp // tm,),
            in_specs=[x_spec, x_spec, x_spec, x_spec, v_spec, v_spec],
            out_specs=x_spec,
        ),
        compiler_params=pltpu.CompilerParams(
            dimension_semantics=("parallel",),
            vmem_limit_bytes=_VMEM_LIMIT,
        ),
    )(*subs, scp, shp)
    if Mp != M:
        out = out[:M]
    return out.reshape(N, Ho, Wo, C)


# ------------------------------------------------------------------ conv glue (NHWC im2col)

def _im2col_nhwc(x, kh, kw, stride, padding, dilation):
    """x: NHWC -> patches (N*Ho*Wo, kh*kw*C)."""
    N, H, W, C = x.shape
    (p_top, p_bot), (p_lft, p_rgt) = padding
    sh, sw = stride
    dh, dw = dilation
    xp = jnp.pad(x, ((0, 0), (p_top, p_bot), (p_lft, p_rgt), (0, 0)))
    Hp, Wp = H + p_top + p_bot, W + p_lft + p_rgt
    Ho = (Hp - dh * (kh - 1) - 1) // sh + 1
    Wo = (Wp - dw * (kw - 1) - 1) // sw + 1
    cols = []
    for i in range(kh):
        for j in range(kw):
            cols.append(xp[:,
                           i * dh:i * dh + (Ho - 1) * sh + 1:sh,
                           j * dw:j * dw + (Wo - 1) * sw + 1:sw, :])
    if len(cols) == 1:
        patches = cols[0]
    else:
        patches = jnp.concatenate(cols, axis=-1)      # (N, Ho, Wo, kh*kw*C)
    return patches.reshape(N * Ho * Wo, kh * kw * C), Ho, Wo


def conv2d(x, w, b, stride=(1, 1), padding=((0, 0), (0, 0)), dilation=(1, 1),
           bn=None, relu=False, residual=None):
    """PyTorch-semantics Conv2d on NHWC (+fused BN/residual/ReLU) via Pallas matmul."""
    N = x.shape[0]
    cout, cin, kh, kw = w.shape
    patches, Ho, Wo = _im2col_nhwc(x, kh, kw, stride, padding, dilation)
    wmat = jnp.transpose(w, (2, 3, 1, 0)).reshape(kh * kw * cin, cout)
    if bn is None:
        scale = jnp.ones((cout,), jnp.float32)
        shift = b.astype(jnp.float32)
    else:
        s_bn, t_bn = bn
        scale = s_bn
        shift = b * s_bn + t_bn          # fold conv bias into the BN shift
    res = residual.reshape(N * Ho * Wo, cout) if residual is not None else None
    out = matmul_affine(patches, wmat, scale, shift, res=res, apply_relu=relu)
    return out.reshape(N, Ho, Wo, cout)


def _interleave_2x2(p00, p01, p10, p11):
    """parts[ry][rx] of shape (N,H,W,C) -> (N,2H,2W,C) with out[2y+ry,2x+rx]=parts."""
    N, H, W, C = p00.shape
    row0 = jnp.stack([p00, p01], axis=3)   # (N,H,W,2,C)
    row1 = jnp.stack([p10, p11], axis=3)
    out = jnp.stack([row0, row1], axis=2)  # (N,H,2,W,2,C)
    return out.reshape(N, 2 * H, 2 * W, C)


def conv_transpose3x3_s2(x, wt, b, bn, relu):
    """ConvTranspose2d(cin,cout,3,stride=2,padding=1,output_padding=1) via phase decomposition."""
    w_ = jnp.transpose(wt, (1, 0, 2, 3))   # (cout, cin, 3, 3)

    def cv(w_sub, pad):
        return conv2d(x, w_sub, b, padding=pad, bn=bn, relu=relu)

    sub00 = w_[:, :, 1:2, 1:2]                                              # (cout,cin,1,1)
    sub01 = jnp.stack([w_[:, :, 1, 2], w_[:, :, 1, 0]], axis=-1)[:, :, None, :]  # (.,.,1,2)
    sub10 = jnp.stack([w_[:, :, 2, 1], w_[:, :, 0, 1]], axis=-1)[:, :, :, None]  # (.,.,2,1)
    sub11 = jnp.stack([jnp.stack([w_[:, :, 2, 2], w_[:, :, 2, 0]], axis=-1),
                       jnp.stack([w_[:, :, 0, 2], w_[:, :, 0, 0]], axis=-1)],
                      axis=-2)                                              # (.,.,2,2)

    p00 = cv(sub00, ((0, 0), (0, 0)))
    p01 = cv(sub01, ((0, 0), (0, 1)))
    p10 = cv(sub10, ((0, 1), (0, 0)))
    p11 = cv(sub11, ((0, 1), (0, 1)))
    return _interleave_2x2(p00, p01, p10, p11)


def conv_transpose2x2_s2(x, wt, b):
    """ConvTranspose2d(cin,cout,2,stride=2,padding=0,output_padding=0): 4 pointwise convs."""
    w_ = jnp.transpose(wt, (1, 0, 2, 3))   # (cout, cin, 2, 2)
    parts = [[conv2d(x, w_[:, :, ry:ry + 1, rx:rx + 1], b, relu=False)
              for rx in (0, 1)] for ry in (0, 1)]
    return _interleave_2x2(parts[0][0], parts[0][1], parts[1][0], parts[1][1])


def fold_bn(p, eps=1e-3):
    scale = p['gamma'] / jnp.sqrt(p['var'] + eps)
    shift = p['beta'] - p['mean'] * scale
    return scale, shift


# ------------------------------------------------------------------ parameters

def conv_params(kg, cout, cin, kh, kw):
    return {'w': 0.1 * jax.random.normal(kg(), (cout, cin, kh, kw), jnp.float32),
            'b': 0.05 * jax.random.normal(kg(), (cout,), jnp.float32)}


def bn_params(kg, c):
    return {'gamma': 1.0 + 0.1 * jax.random.normal(kg(), (c,), jnp.float32),
            'beta': 0.05 * jax.random.normal(kg(), (c,), jnp.float32),
            'mean': 0.05 * jax.random.normal(kg(), (c,), jnp.float32),
            'var': jax.random.uniform(kg(), (c,), jnp.float32, 0.5, 1.5)}


def nb1d_params(kg, c):
    return {'c3x1_1': conv_params(kg, c, c, 3, 1),
            'c1x3_1': conv_params(kg, c, c, 1, 3),
            'bn1': bn_params(kg, c),
            'c3x1_2': conv_params(kg, c, c, 3, 1),
            'c1x3_2': conv_params(kg, c, c, 1, 3),
            'bn2': bn_params(kg, c)}


def downsampler_params(kg, cin, cout):
    return {'conv': conv_params(kg, cout - cin, cin, 3, 3), 'bn': bn_params(kg, cout)}


def upsampler_params(kg, cin, cout):
    # ConvTranspose2d weight layout: (cin, cout, 3, 3)
    return {'w': 0.1 * jax.random.normal(kg(), (cin, cout, 3, 3), jnp.float32),
            'b': 0.05 * jax.random.normal(kg(), (cout,), jnp.float32),
            'bn': bn_params(kg, cout)}


def init_net_params(key, in_channels=1, out_channels=1):
    kg = KeyGen(key)
    chans = 32 if in_channels > 16 else 16
    enc = {'initial': downsampler_params(kg, in_channels, chans), 'layers': []}
    enc['layers'].append(('down', downsampler_params(kg, chans, 64), None))
    for _ in range(5):
        enc['layers'].append(('nb1d', nb1d_params(kg, 64), 1))
    enc['layers'].append(('down', downsampler_params(kg, 64, 128), None))
    for _ in range(2):
        for d in (2, 4, 8, 16):
            enc['layers'].append(('nb1d', nb1d_params(kg, 128), d))
    # encoder.output_conv is unused when only_encode=False, so it is omitted.
    dec = {'layer1': upsampler_params(kg, 128, 64),
           'layer2': nb1d_params(kg, 64),
           'layer3': nb1d_params(kg, 64),
           'layer4': upsampler_params(kg, 64, 32),
           'layer5': nb1d_params(kg, 32),
           'layer6': nb1d_params(kg, 32),
           'out_w': 0.1 * jax.random.normal(kg(), (32, out_channels, 2, 2), jnp.float32),
           'out_b': 0.05 * jax.random.normal(kg(), (out_channels,), jnp.float32)}
    return {'encoder': enc, 'decoder': dec}


# ------------------------------------------------------------------ layer forwards (NHWC)

def downsampler_forward(x, p):
    cconv = p['conv']['w'].shape[0]
    scale, shift = fold_bn(p['bn'])
    conv_out = conv2d(x, p['conv']['w'], p['conv']['b'], stride=(2, 2),
                      padding=((1, 1), (1, 1)),
                      bn=(scale[:cconv], shift[:cconv]), relu=True)
    pool_out = maxpool_bn_relu(x, scale[cconv:], shift[cconv:])
    return jnp.concatenate([conv_out, pool_out], axis=-1)


def nb1d_forward(x, p, d):
    out = conv2d(x, p['c3x1_1']['w'], p['c3x1_1']['b'],
                 padding=((1, 1), (0, 0)), relu=True)
    out = conv2d(out, p['c1x3_1']['w'], p['c1x3_1']['b'],
                 padding=((0, 0), (1, 1)), bn=fold_bn(p['bn1']), relu=True)
    out = conv2d(out, p['c3x1_2']['w'], p['c3x1_2']['b'],
                 padding=((d, d), (0, 0)), dilation=(d, 1), relu=True)
    out = conv2d(out, p['c1x3_2']['w'], p['c1x3_2']['b'],
                 padding=((0, 0), (d, d)), dilation=(1, d),
                 bn=fold_bn(p['bn2']), relu=True, residual=x)
    # Dropout2d: identity in eval mode.
    return out


def upsampler_forward(x, p):
    return conv_transpose3x3_s2(x, p['w'], p['b'], bn=fold_bn(p['bn']), relu=True)


def net_forward(x_nchw, params):
    x = jnp.transpose(x_nchw, (0, 2, 3, 1))          # NCHW -> NHWC (boundary only)
    enc = params['encoder']
    out = downsampler_forward(x, enc['initial'])
    for kind, p, dil in enc['layers']:
        if kind == 'down':
            out = downsampler_forward(out, p)
        else:
            out = nb1d_forward(out, p, dil)
    dec = params['decoder']
    out = upsampler_forward(out, dec['layer1'])
    out = nb1d_forward(out, dec['layer2'], 1)
    out = nb1d_forward(out, dec['layer3'], 1)
    em2 = out
    out = upsampler_forward(out, dec['layer4'])
    out = nb1d_forward(out, dec['layer5'], 1)
    out = nb1d_forward(out, dec['layer6'], 1)
    em1 = out
    out = conv_transpose2x2_s2(out, dec['out_w'], dec['out_b'])

    def to_nchw(t):
        return jnp.transpose(t, (0, 3, 1, 2))
    return to_nchw(out), to_nchw(em1), to_nchw(em2)


# ------------------------------------------------------------------ main

if __name__ == "__main__":
    key = jax.random.PRNGKey(0)
    pkey, xkey = jax.random.split(key)
    params = init_net_params(pkey, in_channels=1, out_channels=1)
    x = jax.random.normal(xkey, (2, 1, 16, 16), jnp.float32)

    fwd = jax.jit(lambda inp: net_forward(inp, params))
    out, em1, em2 = fwd(x)
    jax.block_until_ready((out, em1, em2))

    assert out.shape == (2, 1, 16, 16), out.shape
    assert em1.shape == (2, 32, 8, 8), em1.shape
    assert em2.shape == (2, 64, 4, 4), em2.shape
    assert bool(jnp.all(jnp.isfinite(out)))
    print("KERNEL_OK")
</pallas_src>

<mosaic_0001>
module attributes {stable_mosaic.version = 11 : i64} {
  func.func @_pool_affine_relu_kernel(%arg0: i32, %arg1: memref<128x1xf32, #tpu.memory_space<vmem>>, %arg2: memref<128x1xf32, #tpu.memory_space<vmem>>, %arg3: memref<128x1xf32, #tpu.memory_space<vmem>>, %arg4: memref<128x1xf32, #tpu.memory_space<vmem>>, %arg5: memref<1x1xf32, #tpu.memory_space<vmem>>, %arg6: memref<1x1xf32, #tpu.memory_space<vmem>>, %arg7: memref<128x1xf32, #tpu.memory_space<vmem>>) attributes {dimension_semantics = [#tpu.dimension_semantics<parallel>], iteration_bounds = array<i64: 1>, scalar_prefetch = 0 : i64, scratch_operands = 0 : i64, tpu.core_type = #tpu.core_type<tc>, window_params = [{transform_indices = @transform_0, window_bounds = array<i64: 128, 1>}, {transform_indices = @transform_1, window_bounds = array<i64: 128, 1>}, {transform_indices = @transform_2, window_bounds = array<i64: 128, 1>}, {transform_indices = @transform_3, window_bounds = array<i64: 128, 1>}, {pipeline_mode = #tpu.pipeline_mode<synchronous>, transform_indices = @transform_4, window_bounds = array<i64: 1, 1>}, {pipeline_mode = #tpu.pipeline_mode<synchronous>, transform_indices = @transform_5, window_bounds = array<i64: 1, 1>}, {transform_indices = @transform_6, window_bounds = array<i64: 128, 1>}]} {
    %c0 = arith.constant 0 : index
    %c0_0 = arith.constant 0 : index
    %0 = vector.load %arg1[%c0, %c0_0] : memref<128x1xf32, #tpu.memory_space<vmem>>, vector<128x1xf32>
    %c0_1 = arith.constant 0 : index
    %c0_2 = arith.constant 0 : index
    %1 = vector.load %arg2[%c0_1, %c0_2] : memref<128x1xf32, #tpu.memory_space<vmem>>, vector<128x1xf32>
    %2 = arith.maximumf %0, %1 : vector<128x1xf32>
    %c0_3 = arith.constant 0 : index
    %c0_4 = arith.constant 0 : index
    %3 = vector.load %arg3[%c0_3, %c0_4] : memref<128x1xf32, #tpu.memory_space<vmem>>, vector<128x1xf32>
    %c0_5 = arith.constant 0 : index
    %c0_6 = arith.constant 0 : index
    %4 = vector.load %arg4[%c0_5, %c0_6] : memref<128x1xf32, #tpu.memory_space<vmem>>, vector<128x1xf32>
    %5 = arith.maximumf %3, %4 : vector<128x1xf32>
    %6 = arith.maximumf %2, %5 : vector<128x1xf32>
    %c0_7 = arith.constant 0 : index
    %c0_8 = arith.constant 0 : index
    %7 = vector.load %arg5[%c0_7, %c0_8] : memref<1x1xf32, #tpu.memory_space<vmem>>, vector<1x1xf32>
    %8 = vector.broadcast %7 : vector<1x1xf32> to vector<128x1xf32>
    %9 = arith.mulf %6, %8 : vector<128x1xf32>
    %c0_9 = arith.constant 0 : index
    %c0_10 = arith.constant 0 : index
    %10 = vector.load %arg6[%c0_9, %c0_10] : memref<1x1xf32, #tpu.memory_space<vmem>>, vector<1x1xf32>
    %11 = vector.broadcast %10 : vector<1x1xf32> to vector<128x1xf32>
    %12 = arith.addf %9, %11 : vector<128x1xf32>
    %cst = arith.constant 0.000000e+00 : f32
    %13 = vector.broadcast %cst : f32 to vector<128x1xf32>
    %14 = arith.maximumf %12, %13 : vector<128x1xf32>
    %c0_11 = arith.constant 0 : index
    %c0_12 = arith.constant 0 : index
    %15 = vector.load %arg7[%c0_11, %c0_12] : memref<128x1xf32, #tpu.memory_space<vmem>>, vector<128x1xf32>
    tpu.vector_store %arg7[%c0_11, %c0_12], %14 {strides = array<i32>} : memref<128x1xf32, #tpu.memory_space<vmem>>, vector<128x1xf32>,
    return
  }
  func.func @transform_0(%arg0: i32) -> (i32, i32) {
    %c0_i32 = arith.constant 0 : i32
    %c0_i32_0 = arith.constant 0 : i32
    return %arg0, %c0_i32 : i32, i32
  }
  func.func @transform_1(%arg0: i32) -> (i32, i32) {
    %c0_i32 = arith.constant 0 : i32
    %c0_i32_0 = arith.constant 0 : i32
    return %arg0, %c0_i32 : i32, i32
  }
  func.func @transform_2(%arg0: i32) -> (i32, i32) {
    %c0_i32 = arith.constant 0 : i32
    %c0_i32_0 = arith.constant 0 : i32
    return %arg0, %c0_i32 : i32, i32
  }
  func.func @transform_3(%arg0: i32) -> (i32, i32) {
    %c0_i32 = arith.constant 0 : i32
    %c0_i32_0 = arith.constant 0 : i32
    return %arg0, %c0_i32 : i32, i32
  }
  func.func @transform_4(%arg0: i32) -> (i32, i32) {
    %c0_i32 = arith.constant 0 : i32
    %c0_i32_0 = arith.constant 0 : i32
    %c0_i32_1 = arith.constant 0 : i32
    return %c0_i32, %c0_i32_0 : i32, i32
  }
  func.func @transform_5(%arg0: i32) -> (i32, i32) {
    %c0_i32 = arith.constant 0 : i32
    %c0_i32_0 = arith.constant 0 : i32
    %c0_i32_1 = arith.constant 0 : i32
    return %c0_i32, %c0_i32_0 : i32, i32
  }
  func.func @transform_6(%arg0: i32) -> (i32, i32) {
    %c0_i32 = arith.constant 0 : i32
    %c0_i32_0 = arith.constant 0 : i32
    return %arg0, %c0_i32 : i32, i32
  }
}

module attributes {stable_mosaic.version = 11 : i64} {
  func.func @_matmul_affine_kernel(%arg0: i32, %arg1: i32, %arg2: i32, %arg3: memref<128x16xbf16, #tpu.memory_space<vmem>>, %arg4: memref<16x15xbf16, #tpu.memory_space<vmem>>, %arg5: memref<1x15xf32, #tpu.memory_space<vmem>>, %arg6: memref<1x15xf32, #tpu.memory_space<vmem>>, %arg7: memref<128x15xf32, #tpu.memory_space<vmem>>, %arg8: memref<128x15xf32, #tpu.memory_space<vmem>>) attributes {dimension_semantics = [#tpu.dimension_semantics<parallel>, #tpu.dimension_semantics<parallel>, #tpu.dimension_semantics<arbitrary>], iteration_bounds = array<i64: 1, 1, 1>, scalar_prefetch = 0 : i64, scratch_operands = 1 : i64, tpu.core_type = #tpu.core_type<tc>, window_params = [{transform_indices = @transform_0, window_bounds = array<i64: 128, 16>}, {transform_indices = @transform_1, window_bounds = array<i64: 16, 15>}, {transform_indices = @transform_2, window_bounds = array<i64: 1, 15>}, {transform_indices = @transform_3, window_bounds = array<i64: 1, 15>}, {transform_indices = @transform_4, window_bounds = array<i64: 128, 15>}]} {
    %c0_i32 = arith.constant 0 : i32
    %0 = arith.cmpi eq, %arg2, %c0_i32 : i32
    %1 = arith.extui %0 : i1 to i32
    %c0_i32_0 = arith.constant 0 : i32
    %2 = arith.cmpi ne, %1, %c0_i32_0 : i32
    scf.if %2 {
      %cst_10 = arith.constant 0.000000e+00 : f32
      %12 = vector.broadcast %cst_10 : f32 to vector<128x15xf32>
      %c0_11 = arith.constant 0 : index
      %c0_12 = arith.constant 0 : index
      %13 = vector.load %arg8[%c0_11, %c0_12] : memref<128x15xf32, #tpu.memory_space<vmem>>, vector<128x15xf32>
      tpu.vector_store %arg8[%c0_11, %c0_12], %12 {strides = array<i32>} : memref<128x15xf32, #tpu.memory_space<vmem>>, vector<128x15xf32>,
    } else {
    }
    %c0 = arith.constant 0 : index
    %c0_1 = arith.constant 0 : index
    %3 = vector.load %arg8[%c0, %c0_1] : memref<128x15xf32, #tpu.memory_space<vmem>>, vector<128x15xf32>
    %c0_2 = arith.constant 0 : index
    %c0_3 = arith.constant 0 : index
    %4 = vector.load %arg3[%c0_2, %c0_3] : memref<128x16xbf16, #tpu.memory_space<vmem>>, vector<128x16xbf16>
    %c0_4 = arith.constant 0 : index
    %c0_5 = arith.constant 0 : index
    %5 = vector.load %arg4[%c0_4, %c0_5] : memref<16x15xbf16, #tpu.memory_space<vmem>>, vector<16x15xbf16>
    %cst = arith.constant dense<0.000000e+00> : vector<128x15xf32>
    %6 = tpu.matmul %4, %5, %cst {dimension_numbers = #tpu.dot_dimension_numbers<[1], [0], [0], [1], [0, 0, 1, 1], [], []>} : vector<128x16xbf16>, vector<16x15xbf16>, vector<128x15xf32> -> vector<128x15xf32>
    %7 = arith.addf %3, %6 : vector<128x15xf32>
    %c0_6 = arith.constant 0 : index
    %c0_7 = arith.constant 0 : index
    %8 = vector.load %arg8[%c0_6, %c0_7] : memref<128x15xf32, #tpu.memory_space<vmem>>, vector<128x15xf32>
    tpu.vector_store %arg8[%c0_6, %c0_7], %7 {strides = array<i32>} : memref<128x15xf32, #tpu.memory_space<vmem>>, vector<128x15xf32>,
    %c0_i32_8 = arith.constant 0 : i32
    %9 = arith.cmpi eq, %arg2, %c0_i32_8 : i32
    %10 = arith.extui %9 : i1 to i32
    %c0_i32_9 = arith.constant 0 : i32
    %11 = arith.cmpi ne, %10, %c0_i32_9 : i32
    scf.if %11 {
      %c0_10 = arith.constant 0 : index
      %c0_11 = arith.constant 0 : index
      %12 = vector.load %arg8[%c0_10, %c0_11] : memref<128x15xf32, #tpu.memory_space<vmem>>, vector<128x15xf32>
      %c0_12 = arith.constant 0 : index
      %c0_13 = arith.constant 0 : index
      %13 = vector.load %arg5[%c0_12, %c0_13] : memref<1x15xf32, #tpu.memory_space<vmem>>, vector<1x15xf32>
      %14 = vector.broadcast %13 : vector<1x15xf32> to vector<128x15xf32>
      %15 = arith.mulf %12, %14 : vector<128x15xf32>
      %c0_14 = arith.constant 0 : index
      %c0_15 = arith.constant 0 : index
      %16 = vector.load %arg6[%c0_14, %c0_15] : memref<1x15xf32, #tpu.memory_space<vmem>>, vector<1x15xf32>
      %17 = vector.broadcast %16 : vector<1x15xf32> to vector<128x15xf32>
      %18 = arith.addf %15, %17 : vector<128x15xf32>
      %cst_16 = arith.constant 0.000000e+00 : f32
      %19 = vector.broadcast %cst_16 : f32 to vector<128x15xf32>
      %20 = arith.maximumf %18, %19 : vector<128x15xf32>
      %c0_17 = arith.constant 0 : index
      %c0_18 = arith.constant 0 : index
      %21 = vector.load %arg7[%c0_17, %c0_18] : memref<128x15xf32, #tpu.memory_space<vmem>>, vector<128x15xf32>
      tpu.vector_store %arg7[%c0_17, %c0_18], %20 {strides = array<i32>} : memref<128x15xf32, #tpu.memory_space<vmem>>, vector<128x15xf32>,
    } else {
    }
    return
  }
  func.func @transform_0(%arg0: i32, %arg1: i32, %arg2: i32) -> (i32, i32) {
    %c0_i32 = arith.constant 0 : i32
    return %arg0, %arg2 : i32, i32
  }
  func.func @transform_1(%arg0: i32, %arg1: i32, %arg2: i32) -> (i32, i32) {
    %c0_i32 = arith.constant 0 : i32
    return %arg2, %arg1 : i32, i32
  }
  func.func @transform_2(%arg0: i32, %arg1: i32, %arg2: i32) -> (i32, i32) {
    %c0_i32 = arith.constant 0 : i32
    %c0_i32_0 = arith.constant 0 : i32
    return %c0_i32, %arg1 : i32, i32
  }
  func.func @transform_3(%arg0: i32, %arg1: i32, %arg2: i32) -> (i32, i32) {
    %c0_i32 = arith.constant 0 : i32
    %c0_i32_0 = arith.constant 0 : i32
    return %c0_i32, %arg1 : i32, i32
  }
  func.func @transform_4(%arg0: i32, %arg1: i32, %arg2: i32) -> (i32, i32) {
    %c0_i32 = arith.constant 0 : i32
    return %arg0, %arg1 : i32, i32
  }
}

module attributes {stable_mosaic.version = 11 : i64} {
  func.func @_pool_affine_relu_kernel(%arg0: i32, %arg1: memref<32x16xf32, #tpu.memory_space<vmem>>, %arg2: memref<32x16xf32, #tpu.memory_space<vmem>>, %arg3: memref<32x16xf32, #tpu.memory_space<vmem>>, %arg4: memref<32x16xf32, #tpu.memory_space<vmem>>, %arg5: memref<1x16xf32, #tpu.memory_space<vmem>>, %arg6: memref<1x16xf32, #tpu.memory_space<vmem>>, %arg7: memref<32x16xf32, #tpu.memory_space<vmem>>) attributes {dimension_semantics = [#tpu.dimension_semantics<parallel>], iteration_bounds = array<i64: 1>, scalar_prefetch = 0 : i64, scratch_operands = 0 : i64, tpu.core_type = #tpu.core_type<tc>, window_params = [{transform_indices = @transform_0, window_bounds = array<i64: 32, 16>}, {transform_indices = @transform_1, window_bounds = array<i64: 32, 16>}, {transform_indices = @transform_2, window_bounds = array<i64: 32, 16>}, {transform_indices = @transform_3, window_bounds = array<i64: 32, 16>}, {pipeline_mode = #tpu.pipeline_mode<synchronous>, transform_indices = @transform_4, window_bounds = array<i64: 1, 16>}, {pipeline_mode = #tpu.pipeline_mode<synchronous>, transform_indices = @transform_5, window_bounds = array<i64: 1, 16>}, {transform_indices = @transform_6, window_bounds = array<i64: 32, 16>}]} {
    %c0 = arith.constant 0 : index
    %c0_0 = arith.constant 0 : index
    %0 = vector.load %arg1[%c0, %c0_0] : memref<32x16xf32, #tpu.memory_space<vmem>>, vector<32x16xf32>
    %c0_1 = arith.constant 0 : index
    %c0_2 = arith.constant 0 : index
    %1 = vector.load %arg2[%c0_1, %c0_2] : memref<32x16xf32, #tpu.memory_space<vmem>>, vector<32x16xf32>
    %2 = arith.maximumf %0, %1 : vector<32x16xf32>
    %c0_3 = arith.constant 0 : index
    %c0_4 = arith.constant 0 : index
    %3 = vector.load %arg3[%c0_3, %c0_4] : memref<32x16xf32, #tpu.memory_space<vmem>>, vector<32x16xf32>
    %c0_5 = arith.constant 0 : index
    %c0_6 = arith.constant 0 : index
    %4 = vector.load %arg4[%c0_5, %c0_6] : memref<32x16xf32, #tpu.memory_space<vmem>>, vector<32x16xf32>
    %5 = arith.maximumf %3, %4 : vector<32x16xf32>
    %6 = arith.maximumf %2, %5 : vector<32x16xf32>
    %c0_7 = arith.constant 0 : index
    %c0_8 = arith.constant 0 : index
    %7 = vector.load %arg5[%c0_7, %c0_8] : memref<1x16xf32, #tpu.memory_space<vmem>>, vector<1x16xf32>
    %8 = vector.broadcast %7 : vector<1x16xf32> to vector<32x16xf32>
    %9 = arith.mulf %6, %8 : vector<32x16xf32>
    %c0_9 = arith.constant 0 : index
    %c0_10 = arith.constant 0 : index
    %10 = vector.load %arg6[%c0_9, %c0_10] : memref<1x16xf32, #tpu.memory_space<vmem>>, vector<1x16xf32>
    %11 = vector.broadcast %10 : vector<1x16xf32> to vector<32x16xf32>
    %12 = arith.addf %9, %11 : vector<32x16xf32>
    %cst = arith.constant 0.000000e+00 : f32
    %13 = vector.broadcast %cst : f32 to vector<32x16xf32>
    %14 = arith.maximumf %12, %13 : vector<32x16xf32>
    %c0_11 = arith.constant 0 : index
    %c0_12 = arith.constant 0 : index
    %15 = vector.load %arg7[%c0_11, %c0_12] : memref<32x16xf32, #tpu.memory_space<vmem>>, vector<32x16xf32>
    tpu.vector_store %arg7[%c0_11, %c0_12], %14 {strides = array<i32>} : memref<32x16xf32, #tpu.memory_space<vmem>>, vector<32x16xf32>,
    return
  }
  func.func @transform_0(%arg0: i32) -> (i32, i32) {
    %c0_i32 = arith.constant 0 : i32
    %c0_i32_0 = arith.constant 0 : i32
    return %arg0, %c0_i32 : i32, i32
  }
  func.func @transform_1(%arg0: i32) -> (i32, i32) {
    %c0_i32 = arith.constant 0 : i32
    %c0_i32_0 = arith.constant 0 : i32
    return %arg0, %c0_i32 : i32, i32
  }
  func.func @transform_2(%arg0: i32) -> (i32, i32) {
    %c0_i32 = arith.constant 0 : i32
    %c0_i32_0 = arith.constant 0 : i32
    return %arg0, %c0_i32 : i32, i32
  }
  func.func @transform_3(%arg0: i32) -> (i32, i32) {
    %c0_i32 = arith.constant 0 : i32
    %c0_i32_0 = arith.constant 0 : i32
    return %arg0, %c0_i32 : i32, i32
  }
  func.func @transform_4(%arg0: i32) -> (i32, i32) {
    %c0_i32 = arith.constant 0 : i32
    %c0_i32_0 = arith.constant 0 : i32
    %c0_i32_1 = arith.constant 0 : i32
    return %c0_i32, %c0_i32_0 : i32, i32
  }
  func.func @transform_5(%arg0: i32) -> (i32, i32) {
    %c0_i32 = arith.constant 0 : i32
    %c0_i32_0 = arith.constant 0 : i32
    %c0_i32_1 = arith.constant 0 : i32
    return %c0_i32, %c0_i32_0 : i32, i32
  }
  func.func @transform_6(%arg0: i32) -> (i32, i32) {
    %c0_i32 = arith.constant 0 : i32
    %c0_i32_0 = arith.constant 0 : i32
    return %arg0, %c0_i32 : i32, i32
  }
}

module attributes {stable_mosaic.version = 11 : i64} {
  func.func @_matmul_affine_kernel(%arg0: i32, %arg1: i32, %arg2: i32, %arg3: memref<32x144xbf16, #tpu.memory_space<vmem>>, %arg4: memref<144x48xbf16, #tpu.memory_space<vmem>>, %arg5: memref<1x48xf32, #tpu.memory_space<vmem>>, %arg6: memref<1x48xf32, #tpu.memory_space<vmem>>, %arg7: memref<32x48xf32, #tpu.memory_space<vmem>>, %arg8: memref<32x48xf32, #tpu.memory_space<vmem>>) attributes {dimension_semantics = [#tpu.dimension_semantics<parallel>, #tpu.dimension_semantics<parallel>, #tpu.dimension_semantics<arbitrary>], iteration_bounds = array<i64: 1, 1, 1>, scalar_prefetch = 0 : i64, scratch_operands = 1 : i64, tpu.core_type = #tpu.core_type<tc>, window_params = [{transform_indices = @transform_0, window_bounds = array<i64: 32, 144>}, {transform_indices = @transform_1, window_bounds = array<i64: 144, 48>}, {transform_indices = @transform_2, window_bounds = array<i64: 1, 48>}, {transform_indices = @transform_3, window_bounds = array<i64: 1, 48>}, {transform_indices = @transform_4, window_bounds = array<i64: 32, 48>}]} {
    %c0_i32 = arith.constant 0 : i32
    %0 = arith.cmpi eq, %arg2, %c0_i32 : i32
    %1 = arith.extui %0 : i1 to i32
    %c0_i32_0 = arith.constant 0 : i32
    %2 = arith.cmpi ne, %1, %c0_i32_0 : i32
    scf.if %2 {
      %cst_10 = arith.constant 0.000000e+00 : f32
      %12 = vector.broadcast %cst_10 : f32 to vector<32x48xf32>
      %c0_11 = arith.constant 0 : index
      %c0_12 = arith.constant 0 : index
      %13 = vector.load %arg8[%c0_11, %c0_12] : memref<32x48xf32, #tpu.memory_space<vmem>>, vector<32x48xf32>
      tpu.vector_store %arg8[%c0_11, %c0_12], %12 {strides = array<i32>} : memref<32x48xf32, #tpu.memory_space<vmem>>, vector<32x48xf32>,
    } else {
    }
    %c0 = arith.constant 0 : index
    %c0_1 = arith.constant 0 : index
    %3 = vector.load %arg8[%c0, %c0_1] : memref<32x48xf32, #tpu.memory_space<vmem>>, vector<32x48xf32>
    %c0_2 = arith.constant 0 : index
    %c0_3 = arith.constant 0 : index
    %4 = vector.load %arg3[%c0_2, %c0_3] : memref<32x144xbf16, #tpu.memory_space<vmem>>, vector<32x144xbf16>
    %c0_4 = arith.constant 0 : index
    %c0_5 = arith.constant 0 : index
    %5 = vector.load %arg4[%c0_4, %c0_5] : memref<144x48xbf16, #tpu.memory_space<vmem>>, vector<144x48xbf16>
    %cst = arith.constant dense<0.000000e+00> : vector<32x48xf32>
    %6 = tpu.matmul %4, %5, %cst {dimension_numbers = #tpu.dot_dimension_numbers<[1], [0], [0], [1], [0, 0, 1, 1], [], []>} : vector<32x144xbf16>, vector<144x48xbf16>, vector<32x48xf32> -> vector<32x48xf32>
    %7 = arith.addf %3, %6 : vector<32x48xf32>
    %c0_6 = arith.constant 0 : index
    %c0_7 = arith.constant 0 : index
    %8 = vector.load %arg8[%c0_6, %c0_7] : memref<32x48xf32, #tpu.memory_space<vmem>>, vector<32x48xf32>
    tpu.vector_store %arg8[%c0_6, %c0_7], %7 {strides = array<i32>} : memref<32x48xf32, #tpu.memory_space<vmem>>, vector<32x48xf32>,
    %c0_i32_8 = arith.constant 0 : i32
    %9 = arith.cmpi eq, %arg2, %c0_i32_8 : i32
    %10 = arith.extui %9 : i1 to i32
    %c0_i32_9 = arith.constant 0 : i32
    %11 = arith.cmpi ne, %10, %c0_i32_9 : i32
    scf.if %11 {
      %c0_10 = arith.constant 0 : index
      %c0_11 = arith.constant 0 : index
      %12 = vector.load %arg8[%c0_10, %c0_11] : memref<32x48xf32, #tpu.memory_space<vmem>>, vector<32x48xf32>
      %c0_12 = arith.constant 0 : index
      %c0_13 = arith.constant 0 : index
      %13 = vector.load %arg5[%c0_12, %c0_13] : memref<1x48xf32, #tpu.memory_space<vmem>>, vector<1x48xf32>
      %14 = vector.broadcast %13 : vector<1x48xf32> to vector<32x48xf32>
      %15 = arith.mulf %12, %14 : vector<32x48xf32>
      %c0_14 = arith.constant 0 : index
      %c0_15 = arith.constant 0 : index
      %16 = vector.load %arg6[%c0_14, %c0_15] : memref<1x48xf32, #tpu.memory_space<vmem>>, vector<1x48xf32>
      %17 = vector.broadcast %16 : vector<1x48xf32> to vector<32x48xf32>
      %18 = arith.addf %15, %17 : vector<32x48xf32>
      %cst_16 = arith.constant 0.000000e+00 : f32
      %19 = vector.broadcast %cst_16 : f32 to vector<32x48xf32>
      %20 = arith.maximumf %18, %19 : vector<32x48xf32>
      %c0_17 = arith.constant 0 : index
      %c0_18 = arith.constant 0 : index
      %21 = vector.load %arg7[%c0_17, %c0_18] : memref<32x48xf32, #tpu.memory_space<vmem>>, vector<32x48xf32>
      tpu.vector_store %arg7[%c0_17, %c0_18], %20 {strides = array<i32>} : memref<32x48xf32, #tpu.memory_space<vmem>>, vector<32x48xf32>,
    } else {
    }
    return
  }
  func.func @transform_0(%arg0: i32, %arg1: i32, %arg2: i32) -> (i32, i32) {
    %c0_i32 = arith.constant 0 : i32
    return %arg0, %arg2 : i32, i32
  }
  func.func @transform_1(%arg0: i32, %arg1: i32, %arg2: i32) -> (i32, i32) {
    %c0_i32 = arith.constant 0 : i32
    return %arg2, %arg1 : i32, i32
  }
  func.func @transform_2(%arg0: i32, %arg1: i32, %arg2: i32) -> (i32, i32) {
    %c0_i32 = arith.constant 0 : i32
    %c0_i32_0 = arith.constant 0 : i32
    return %c0_i32, %arg1 : i32, i32
  }
  func.func @transform_3(%arg0: i32, %arg1: i32, %arg2: i32) -> (i32, i32) {
    %c0_i32 = arith.constant 0 : i32
    %c0_i32_0 = arith.constant 0 : i32
    return %c0_i32, %arg1 : i32, i32
  }
  func.func @transform_4(%arg0: i32, %arg1: i32, %arg2: i32) -> (i32, i32) {
    %c0_i32 = arith.constant 0 : i32
    return %arg0, %arg1 : i32, i32
  }
}

module attributes {stable_mosaic.version = 11 : i64} {
  func.func @_matmul_affine_kernel(%arg0: i32, %arg1: i32, %arg2: i32, %arg3: memref<32x192xbf16, #tpu.memory_space<vmem>>, %arg4: memref<192x64xbf16, #tpu.memory_space<vmem>>, %arg5: memref<1x64xf32, #tpu.memory_space<vmem>>, %arg6: memref<1x64xf32, #tpu.memory_space<vmem>>, %arg7: memref<32x64xf32, #tpu.memory_space<vmem>>, %arg8: memref<32x64xf32, #tpu.memory_space<vmem>>) attributes {dimension_semantics = [#tpu.dimension_semantics<parallel>, #tpu.dimension_semantics<parallel>, #tpu.dimension_semantics<arbitrary>], iteration_bounds = array<i64: 1, 1, 1>, scalar_prefetch = 0 : i64, scratch_operands = 1 : i64, tpu.core_type = #tpu.core_type<tc>, window_params = [{transform_indices = @transform_0, window_bounds = array<i64: 32, 192>}, {transform_indices = @transform_1, window_bounds = array<i64: 192, 64>}, {transform_indices = @transform_2, window_bounds = array<i64: 1, 64>}, {transform_indices = @transform_3, window_bounds = array<i64: 1, 64>}, {transform_indices = @transform_4, window_bounds = array<i64: 32, 64>}]} {
    %c0_i32 = arith.constant 0 : i32
    %0 = arith.cmpi eq, %arg2, %c0_i32 : i32
    %1 = arith.extui %0 : i1 to i32
    %c0_i32_0 = arith.constant 0 : i32
    %2 = arith.cmpi ne, %1, %c0_i32_0 : i32
    scf.if %2 {
      %cst_10 = arith.constant 0.000000e+00 : f32
      %12 = vector.broadcast %cst_10 : f32 to vector<32x64xf32>
      %c0_11 = arith.constant 0 : index
      %c0_12 = arith.constant 0 : index
      %13 = vector.load %arg8[%c0_11, %c0_12] : memref<32x64xf32, #tpu.memory_space<vmem>>, vector<32x64xf32>
      tpu.vector_store %arg8[%c0_11, %c0_12], %12 {strides = array<i32>} : memref<32x64xf32, #tpu.memory_space<vmem>>, vector<32x64xf32>,
    } else {
    }
    %c0 = arith.constant 0 : index
    %c0_1 = arith.constant 0 : index
    %3 = vector.load %arg8[%c0, %c0_1] : memref<32x64xf32, #tpu.memory_space<vmem>>, vector<32x64xf32>
    %c0_2 = arith.constant 0 : index
    %c0_3 = arith.constant 0 : index
    %4 = vector.load %arg3[%c0_2, %c0_3] : memref<32x192xbf16, #tpu.memory_space<vmem>>, vector<32x192xbf16>
    %c0_4 = arith.constant 0 : index
    %c0_5 = arith.constant 0 : index
    %5 = vector.load %arg4[%c0_4, %c0_5] : memref<192x64xbf16, #tpu.memory_space<vmem>>, vector<192x64xbf16>
    %cst = arith.constant dense<0.000000e+00> : vector<32x64xf32>
    %6 = tpu.matmul %4, %5, %cst {dimension_numbers = #tpu.dot_dimension_numbers<[1], [0], [0], [1], [0, 0, 1, 1], [], []>} : vector<32x192xbf16>, vector<192x64xbf16>, vector<32x64xf32> -> vector<32x64xf32>
    %7 = arith.addf %3, %6 : vector<32x64xf32>
    %c0_6 = arith.constant 0 : index
    %c0_7 = arith.constant 0 : index
    %8 = vector.load %arg8[%c0_6, %c0_7] : memref<32x64xf32, #tpu.memory_space<vmem>>, vector<32x64xf32>
    tpu.vector_store %arg8[%c0_6, %c0_7], %7 {strides = array<i32>} : memref<32x64xf32, #tpu.memory_space<vmem>>, vector<32x64xf32>,
    %c0_i32_8 = arith.constant 0 : i32
    %9 = arith.cmpi eq, %arg2, %c0_i32_8 : i32
    %10 = arith.extui %9 : i1 to i32
    %c0_i32_9 = arith.constant 0 : i32
    %11 = arith.cmpi ne, %10, %c0_i32_9 : i32
    scf.if %11 {
      %c0_10 = arith.constant 0 : index
      %c0_11 = arith.constant 0 : index
      %12 = vector.load %arg8[%c0_10, %c0_11] : memref<32x64xf32, #tpu.memory_space<vmem>>, vector<32x64xf32>
      %c0_12 = arith.constant 0 : index
      %c0_13 = arith.constant 0 : index
      %13 = vector.load %arg5[%c0_12, %c0_13] : memref<1x64xf32, #tpu.memory_space<vmem>>, vector<1x64xf32>
      %14 = vector.broadcast %13 : vector<1x64xf32> to vector<32x64xf32>
      %15 = arith.mulf %12, %14 : vector<32x64xf32>
      %c0_14 = arith.constant 0 : index
      %c0_15 = arith.constant 0 : index
      %16 = vector.load %arg6[%c0_14, %c0_15] : memref<1x64xf32, #tpu.memory_space<vmem>>, vector<1x64xf32>
      %17 = vector.broadcast %16 : vector<1x64xf32> to vector<32x64xf32>
      %18 = arith.addf %15, %17 : vector<32x64xf32>
      %cst_16 = arith.constant 0.000000e+00 : f32
      %19 = vector.broadcast %cst_16 : f32 to vector<32x64xf32>
      %20 = arith.maximumf %18, %19 : vector<32x64xf32>
      %c0_17 = arith.constant 0 : index
      %c0_18 = arith.constant 0 : index
      %21 = vector.load %arg7[%c0_17, %c0_18] : memref<32x64xf32, #tpu.memory_space<vmem>>, vector<32x64xf32>
      tpu.vector_store %arg7[%c0_17, %c0_18], %20 {strides = array<i32>} : memref<32x64xf32, #tpu.memory_space<vmem>>, vector<32x64xf32>,
    } else {
    }
    return
  }
  func.func @transform_0(%arg0: i32, %arg1: i32, %arg2: i32) -> (i32, i32) {
    %c0_i32 = arith.constant 0 : i32
    return %arg0, %arg2 : i32, i32
  }
  func.func @transform_1(%arg0: i32, %arg1: i32, %arg2: i32) -> (i32, i32) {
    %c0_i32 = arith.constant 0 : i32
    return %arg2, %arg1 : i32, i32
  }
  func.func @transform_2(%arg0: i32, %arg1: i32, %arg2: i32) -> (i32, i32) {
    %c0_i32 = arith.constant 0 : i32
    %c0_i32_0 = arith.constant 0 : i32
    return %c0_i32, %arg1 : i32, i32
  }
  func.func @transform_3(%arg0: i32, %arg1: i32, %arg2: i32) -> (i32, i32) {
    %c0_i32 = arith.constant 0 : i32
    %c0_i32_0 = arith.constant 0 : i32
    return %c0_i32, %arg1 : i32, i32
  }
  func.func @transform_4(%arg0: i32, %arg1: i32, %arg2: i32) -> (i32, i32) {
    %c0_i32 = arith.constant 0 : i32
    return %arg0, %arg1 : i32, i32
  }
}

module attributes {stable_mosaic.version = 11 : i64} {
  func.func @_matmul_affine_res_kernel(%arg0: i32, %arg1: i32, %arg2: i32, %arg3: memref<32x192xbf16, #tpu.memory_space<vmem>>, %arg4: memref<192x64xbf16, #tpu.memory_space<vmem>>, %arg5: memref<1x64xf32, #tpu.memory_space<vmem>>, %arg6: memref<1x64xf32, #tpu.memory_space<vmem>>, %arg7: memref<32x64xf32, #tpu.memory_space<vmem>>, %arg8: memref<32x64xf32, #tpu.memory_space<vmem>>, %arg9: memref<32x64xf32, #tpu.memory_space<vmem>>) attributes {dimension_semantics = [#tpu.dimension_semantics<parallel>, #tpu.dimension_semantics<parallel>, #tpu.dimension_semantics<arbitrary>], iteration_bounds = array<i64: 1, 1, 1>, scalar_prefetch = 0 : i64, scratch_operands = 1 : i64, tpu.core_type = #tpu.core_type<tc>, window_params = [{transform_indices = @transform_0, window_bounds = array<i64: 32, 192>}, {transform_indices = @transform_1, window_bounds = array<i64: 192, 64>}, {transform_indices = @transform_2, window_bounds = array<i64: 1, 64>}, {transform_indices = @transform_3, window_bounds = array<i64: 1, 64>}, {transform_indices = @transform_4, window_bounds = array<i64: 32, 64>}, {transform_indices = @transform_5, window_bounds = array<i64: 32, 64>}]} {
    %c0_i32 = arith.constant 0 : i32
    %0 = arith.cmpi eq, %arg2, %c0_i32 : i32
    %1 = arith.extui %0 : i1 to i32
    %c0_i32_0 = arith.constant 0 : i32
    %2 = arith.cmpi ne, %1, %c0_i32_0 : i32
    scf.if %2 {
      %cst_10 = arith.constant 0.000000e+00 : f32
      %12 = vector.broadcast %cst_10 : f32 to vector<32x64xf32>
      %c0_11 = arith.constant 0 : index
      %c0_12 = arith.constant 0 : index
      %13 = vector.load %arg9[%c0_11, %c0_12] : memref<32x64xf32, #tpu.memory_space<vmem>>, vector<32x64xf32>
      tpu.vector_store %arg9[%c0_11, %c0_12], %12 {strides = array<i32>} : memref<32x64xf32, #tpu.memory_space<vmem>>, vector<32x64xf32>,
    } else {
    }
    %c0 = arith.constant 0 : index
    %c0_1 = arith.constant 0 : index
    %3 = vector.load %arg9[%c0, %c0_1] : memref<32x64xf32, #tpu.memory_space<vmem>>, vector<32x64xf32>
    %c0_2 = arith.constant 0 : index
    %c0_3 = arith.constant 0 : index
    %4 = vector.load %arg3[%c0_2, %c0_3] : memref<32x192xbf16, #tpu.memory_space<vmem>>, vector<32x192xbf16>
    %c0_4 = arith.constant 0 : index
    %c0_5 = arith.constant 0 : index
    %5 = vector.load %arg4[%c0_4, %c0_5] : memref<192x64xbf16, #tpu.memory_space<vmem>>, vector<192x64xbf16>
    %cst = arith.constant dense<0.000000e+00> : vector<32x64xf32>
    %6 = tpu.matmul %4, %5, %cst {dimension_numbers = #tpu.dot_dimension_numbers<[1], [0], [0], [1], [0, 0, 1, 1], [], []>} : vector<32x192xbf16>, vector<192x64xbf16>, vector<32x64xf32> -> vector<32x64xf32>
    %7 = arith.addf %3, %6 : vector<32x64xf32>
    %c0_6 = arith.constant 0 : index
    %c0_7 = arith.constant 0 : index
    %8 = vector.load %arg9[%c0_6, %c0_7] : memref<32x64xf32, #tpu.memory_space<vmem>>, vector<32x64xf32>
    tpu.vector_store %arg9[%c0_6, %c0_7], %7 {strides = array<i32>} : memref<32x64xf32, #tpu.memory_space<vmem>>, vector<32x64xf32>,
    %c0_i32_8 = arith.constant 0 : i32
    %9 = arith.cmpi eq, %arg2, %c0_i32_8 : i32
    %10 = arith.extui %9 : i1 to i32
    %c0_i32_9 = arith.constant 0 : i32
    %11 = arith.cmpi ne, %10, %c0_i32_9 : i32
    scf.if %11 {
      %c0_10 = arith.constant 0 : index
      %c0_11 = arith.constant 0 : index
      %12 = vector.load %arg9[%c0_10, %c0_11] : memref<32x64xf32, #tpu.memory_space<vmem>>, vector<32x64xf32>
      %c0_12 = arith.constant 0 : index
      %c0_13 = arith.constant 0 : index
      %13 = vector.load %arg5[%c0_12, %c0_13] : memref<1x64xf32, #tpu.memory_space<vmem>>, vector<1x64xf32>
      %14 = vector.broadcast %13 : vector<1x64xf32> to vector<32x64xf32>
      %15 = arith.mulf %12, %14 : vector<32x64xf32>
      %c0_14 = arith.constant 0 : index
      %c0_15 = arith.constant 0 : index
      %16 = vector.load %arg6[%c0_14, %c0_15] : memref<1x64xf32, #tpu.memory_space<vmem>>, vector<1x64xf32>
      %17 = vector.broadcast %16 : vector<1x64xf32> to vector<32x64xf32>
      %18 = arith.addf %15, %17 : vector<32x64xf32>
      %c0_16 = arith.constant 0 : index
      %c0_17 = arith.constant 0 : index
      %19 = vector.load %arg7[%c0_16, %c0_17] : memref<32x64xf32, #tpu.memory_space<vmem>>, vector<32x64xf32>
      %20 = arith.addf %18, %19 : vector<32x64xf32>
      %cst_18 = arith.constant 0.000000e+00 : f32
      %21 = vector.broadcast %cst_18 : f32 to vector<32x64xf32>
      %22 = arith.maximumf %20, %21 : vector<32x64xf32>
      %c0_19 = arith.constant 0 : index
      %c0_20 = arith.constant 0 : index
      %23 = vector.load %arg8[%c0_19, %c0_20] : memref<32x64xf32, #tpu.memory_space<vmem>>, vector<32x64xf32>
      tpu.vector_store %arg8[%c0_19, %c0_20], %22 {strides = array<i32>} : memref<32x64xf32, #tpu.memory_space<vmem>>, vector<32x64xf32>,
    } else {
    }
    return
  }
  func.func @transform_0(%arg0: i32, %arg1: i32, %arg2: i32) -> (i32, i32) {
    %c0_i32 = arith.constant 0 : i32
    return %arg0, %arg2 : i32, i32
  }
  func.func @transform_1(%arg0: i32, %arg1: i32, %arg2: i32) -> (i32, i32) {
    %c0_i32 = arith.constant 0 : i32
    return %arg2, %arg1 : i32, i32
  }
  func.func @transform_2(%arg0: i32, %arg1: i32, %arg2: i32) -> (i32, i32) {
    %c0_i32 = arith.constant 0 : i32
    %c0_i32_0 = arith.constant 0 : i32
    return %c0_i32, %arg1 : i32, i32
  }
  func.func @transform_3(%arg0: i32, %arg1: i32, %arg2: i32) -> (i32, i32) {
    %c0_i32 = arith.constant 0 : i32
    %c0_i32_0 = arith.constant 0 : i32
    return %c0_i32, %arg1 : i32, i32
  }
  func.func @transform_4(%arg0: i32, %arg1: i32, %arg2: i32) -> (i32, i32) {
    %c0_i32 = arith.constant 0 : i32
    return %arg0, %arg1 : i32, i32
  }
  func.func @transform_5(%arg0: i32, %arg1: i32, %arg2: i32) -> (i32, i32) {
    %c0_i32 = arith.constant 0 : i32
    return %arg0, %arg1 : i32, i32
  }
}

module attributes {stable_mosaic.version = 11 : i64} {
  func.func @_pool_affine_relu_kernel(%arg0: i32, %arg1: memref<8x64xf32, #tpu.memory_space<vmem>>, %arg2: memref<8x64xf32, #tpu.memory_space<vmem>>, %arg3: memref<8x64xf32, #tpu.memory_space<vmem>>, %arg4: memref<8x64xf32, #tpu.memory_space<vmem>>, %arg5: memref<1x64xf32, #tpu.memory_space<vmem>>, %arg6: memref<1x64xf32, #tpu.memory_space<vmem>>, %arg7: memref<8x64xf32, #tpu.memory_space<vmem>>) attributes {dimension_semantics = [#tpu.dimension_semantics<parallel>], iteration_bounds = array<i64: 1>, scalar_prefetch = 0 : i64, scratch_operands = 0 : i64, tpu.core_type = #tpu.core_type<tc>, window_params = [{transform_indices = @transform_0, window_bounds = array<i64: 8, 64>}, {transform_indices = @transform_1, window_bounds = array<i64: 8, 64>}, {transform_indices = @transform_2, window_bounds = array<i64: 8, 64>}, {transform_indices = @transform_3, window_bounds = array<i64: 8, 64>}, {pipeline_mode = #tpu.pipeline_mode<synchronous>, transform_indices = @transform_4, window_bounds = array<i64: 1, 64>}, {pipeline_mode = #tpu.pipeline_mode<synchronous>, transform_indices = @transform_5, window_bounds = array<i64: 1, 64>}, {transform_indices = @transform_6, window_bounds = array<i64: 8, 64>}]} {
    %c0 = arith.constant 0 : index
    %c0_0 = arith.constant 0 : index
    %0 = vector.load %arg1[%c0, %c0_0] : memref<8x64xf32, #tpu.memory_space<vmem>>, vector<8x64xf32>
    %c0_1 = arith.constant 0 : index
    %c0_2 = arith.constant 0 : index
    %1 = vector.load %arg2[%c0_1, %c0_2] : memref<8x64xf32, #tpu.memory_space<vmem>>, vector<8x64xf32>
    %2 = arith.maximumf %0, %1 : vector<8x64xf32>
    %c0_3 = arith.constant 0 : index
    %c0_4 = arith.constant 0 : index
    %3 = vector.load %arg3[%c0_3, %c0_4] : memref<8x64xf32, #tpu.memory_space<vmem>>, vector<8x64xf32>
    %c0_5 = arith.constant 0 : index
    %c0_6 = arith.constant 0 : index
    %4 = vector.load %arg4[%c0_5, %c0_6] : memref<8x64xf32, #tpu.memory_space<vmem>>, vector<8x64xf32>
    %5 = arith.maximumf %3, %4 : vector<8x64xf32>
    %6 = arith.maximumf %2, %5 : vector<8x64xf32>
    %c0_7 = arith.constant 0 : index
    %c0_8 = arith.constant 0 : index
    %7 = vector.load %arg5[%c0_7, %c0_8] : memref<1x64xf32, #tpu.memory_space<vmem>>, vector<1x64xf32>
    %8 = vector.broadcast %7 : vector<1x64xf32> to vector<8x64xf32>
    %9 = arith.mulf %6, %8 : vector<8x64xf32>
    %c0_9 = arith.constant 0 : index
    %c0_10 = arith.constant 0 : index
    %10 = vector.load %arg6[%c0_9, %c0_10] : memref<1x64xf32, #tpu.memory_space<vmem>>, vector<1x64xf32>
    %11 = vector.broadcast %10 : vector<1x64xf32> to vector<8x64xf32>
    %12 = arith.addf %9, %11 : vector<8x64xf32>
    %cst = arith.constant 0.000000e+00 : f32
    %13 = vector.broadcast %cst : f32 to vector<8x64xf32>
    %14 = arith.maximumf %12, %13 : vector<8x64xf32>
    %c0_11 = arith.constant 0 : index
    %c0_12 = arith.constant 0 : index
    %15 = vector.load %arg7[%c0_11, %c0_12] : memref<8x64xf32, #tpu.memory_space<vmem>>, vector<8x64xf32>
    tpu.vector_store %arg7[%c0_11, %c0_12], %14 {strides = array<i32>} : memref<8x64xf32, #tpu.memory_space<vmem>>, vector<8x64xf32>,
    return
  }
  func.func @transform_0(%arg0: i32) -> (i32, i32) {
    %c0_i32 = arith.constant 0 : i32
    %c0_i32_0 = arith.constant 0 : i32
    return %arg0, %c0_i32 : i32, i32
  }
  func.func @transform_1(%arg0: i32) -> (i32, i32) {
    %c0_i32 = arith.constant 0 : i32
    %c0_i32_0 = arith.constant 0 : i32
    return %arg0, %c0_i32 : i32, i32
  }
  func.func @transform_2(%arg0: i32) -> (i32, i32) {
    %c0_i32 = arith.constant 0 : i32
    %c0_i32_0 = arith.constant 0 : i32
    return %arg0, %c0_i32 : i32, i32
  }
  func.func @transform_3(%arg0: i32) -> (i32, i32) {
    %c0_i32 = arith.constant 0 : i32
    %c0_i32_0 = arith.constant 0 : i32
    return %arg0, %c0_i32 : i32, i32
  }
  func.func @transform_4(%arg0: i32) -> (i32, i32) {
    %c0_i32 = arith.constant 0 : i32
    %c0_i32_0 = arith.constant 0 : i32
    %c0_i32_1 = arith.constant 0 : i32
    return %c0_i32, %c0_i32_0 : i32, i32
  }
  func.func @transform_5(%arg0: i32) -> (i32, i32) {
    %c0_i32 = arith.constant 0 : i32
    %c0_i32_0 = arith.constant 0 : i32
    %c0_i32_1 = arith.constant 0 : i32
    return %c0_i32, %c0_i32_0 : i32, i32
  }
  func.func @transform_6(%arg0: i32) -> (i32, i32) {
    %c0_i32 = arith.constant 0 : i32
    %c0_i32_0 = arith.constant 0 : i32
    return %arg0, %c0_i32 : i32, i32
  }
}

module attributes {stable_mosaic.version = 11 : i64} {
  func.func @_matmul_affine_kernel(%arg0: i32, %arg1: i32, %arg2: i32, %arg3: memref<8x576xbf16, #tpu.memory_space<vmem>>, %arg4: memref<576x64xbf16, #tpu.memory_space<vmem>>, %arg5: memref<1x64xf32, #tpu.memory_space<vmem>>, %arg6: memref<1x64xf32, #tpu.memory_space<vmem>>, %arg7: memref<8x64xf32, #tpu.memory_space<vmem>>, %arg8: memref<8x64xf32, #tpu.memory_space<vmem>>) attributes {dimension_semantics = [#tpu.dimension_semantics<parallel>, #tpu.dimension_semantics<parallel>, #tpu.dimension_semantics<arbitrary>], iteration_bounds = array<i64: 1, 1, 1>, scalar_prefetch = 0 : i64, scratch_operands = 1 : i64, tpu.core_type = #tpu.core_type<tc>, window_params = [{transform_indices = @transform_0, window_bounds = array<i64: 8, 576>}, {transform_indices = @transform_1, window_bounds = array<i64: 576, 64>}, {transform_indices = @transform_2, window_bounds = array<i64: 1, 64>}, {transform_indices = @transform_3, window_bounds = array<i64: 1, 64>}, {transform_indices = @transform_4, window_bounds = array<i64: 8, 64>}]} {
    %c0_i32 = arith.constant 0 : i32
    %0 = arith.cmpi eq, %arg2, %c0_i32 : i32
    %1 = arith.extui %0 : i1 to i32
    %c0_i32_0 = arith.constant 0 : i32
    %2 = arith.cmpi ne, %1, %c0_i32_0 : i32
    scf.if %2 {
      %cst_10 = arith.constant 0.000000e+00 : f32
      %12 = vector.broadcast %cst_10 : f32 to vector<8x64xf32>
      %c0_11 = arith.constant 0 : index
      %c0_12 = arith.constant 0 : index
      %13 = vector.load %arg8[%c0_11, %c0_12] : memref<8x64xf32, #tpu.memory_space<vmem>>, vector<8x64xf32>
      tpu.vector_store %arg8[%c0_11, %c0_12], %12 {strides = array<i32>} : memref<8x64xf32, #tpu.memory_space<vmem>>, vector<8x64xf32>,
    } else {
    }
    %c0 = arith.constant 0 : index
    %c0_1 = arith.constant 0 : index
    %3 = vector.load %arg8[%c0, %c0_1] : memref<8x64xf32, #tpu.memory_space<vmem>>, vector<8x64xf32>
    %c0_2 = arith.constant 0 : index
    %c0_3 = arith.constant 0 : index
    %4 = vector.load %arg3[%c0_2, %c0_3] : memref<8x576xbf16, #tpu.memory_space<vmem>>, vector<8x576xbf16>
    %c0_4 = arith.constant 0 : index
    %c0_5 = arith.constant 0 : index
    %5 = vector.load %arg4[%c0_4, %c0_5] : memref<576x64xbf16, #tpu.memory_space<vmem>>, vector<576x64xbf16>
    %cst = arith.constant dense<0.000000e+00> : vector<8x64xf32>
    %6 = tpu.matmul %4, %5, %cst {dimension_numbers = #tpu.dot_dimension_numbers<[1], [0], [0], [1], [0, 0, 1, 1], [], []>} : vector<8x576xbf16>, vector<576x64xbf16>, vector<8x64xf32> -> vector<8x64xf32>
    %7 = arith.addf %3, %6 : vector<8x64xf32>
    %c0_6 = arith.constant 0 : index
    %c0_7 = arith.constant 0 : index
    %8 = vector.load %arg8[%c0_6, %c0_7] : memref<8x64xf32, #tpu.memory_space<vmem>>, vector<8x64xf32>
    tpu.vector_store %arg8[%c0_6, %c0_7], %7 {strides = array<i32>} : memref<8x64xf32, #tpu.memory_space<vmem>>, vector<8x64xf32>,
    %c0_i32_8 = arith.constant 0 : i32
    %9 = arith.cmpi eq, %arg2, %c0_i32_8 : i32
    %10 = arith.extui %9 : i1 to i32
    %c0_i32_9 = arith.constant 0 : i32
    %11 = arith.cmpi ne, %10, %c0_i32_9 : i32
    scf.if %11 {
      %c0_10 = arith.constant 0 : index
      %c0_11 = arith.constant 0 : index
      %12 = vector.load %arg8[%c0_10, %c0_11] : memref<8x64xf32, #tpu.memory_space<vmem>>, vector<8x64xf32>
      %c0_12 = arith.constant 0 : index
      %c0_13 = arith.constant 0 : index
      %13 = vector.load %arg5[%c0_12, %c0_13] : memref<1x64xf32, #tpu.memory_space<vmem>>, vector<1x64xf32>
      %14 = vector.broadcast %13 : vector<1x64xf32> to vector<8x64xf32>
      %15 = arith.mulf %12, %14 : vector<8x64xf32>
      %c0_14 = arith.constant 0 : index
      %c0_15 = arith.constant 0 : index
      %16 = vector.load %arg6[%c0_14, %c0_15] : memref<1x64xf32, #tpu.memory_space<vmem>>, vector<1x64xf32>
      %17 = vector.broadcast %16 : vector<1x64xf32> to vector<8x64xf32>
      %18 = arith.addf %15, %17 : vector<8x64xf32>
      %cst_16 = arith.constant 0.000000e+00 : f32
      %19 = vector.broadcast %cst_16 : f32 to vector<8x64xf32>
      %20 = arith.maximumf %18, %19 : vector<8x64xf32>
      %c0_17 = arith.constant 0 : index
      %c0_18 = arith.constant 0 : index
      %21 = vector.load %arg7[%c0_17, %c0_18] : memref<8x64xf32, #tpu.memory_space<vmem>>, vector<8x64xf32>
      tpu.vector_store %arg7[%c0_17, %c0_18], %20 {strides = array<i32>} : memref<8x64xf32, #tpu.memory_space<vmem>>, vector<8x64xf32>,
    } else {
    }
    return
  }
  func.func @transform_0(%arg0: i32, %arg1: i32, %arg2: i32) -> (i32, i32) {
    %c0_i32 = arith.constant 0 : i32
    return %arg0, %arg2 : i32, i32
  }
  func.func @transform_1(%arg0: i32, %arg1: i32, %arg2: i32) -> (i32, i32) {
    %c0_i32 = arith.constant 0 : i32
    return %arg2, %arg1 : i32, i32
  }
  func.func @transform_2(%arg0: i32, %arg1: i32, %arg2: i32) -> (i32, i32) {
    %c0_i32 = arith.constant 0 : i32
    %c0_i32_0 = arith.constant 0 : i32
    return %c0_i32, %arg1 : i32, i32
  }
  func.func @transform_3(%arg0: i32, %arg1: i32, %arg2: i32) -> (i32, i32) {
    %c0_i32 = arith.constant 0 : i32
    %c0_i32_0 = arith.constant 0 : i32
    return %c0_i32, %arg1 : i32, i32
  }
  func.func @transform_4(%arg0: i32, %arg1: i32, %arg2: i32) -> (i32, i32) {
    %c0_i32 = arith.constant 0 : i32
    return %arg0, %arg1 : i32, i32
  }
}

module attributes {stable_mosaic.version = 11 : i64} {
  func.func @_matmul_affine_kernel(%arg0: i32, %arg1: i32, %arg2: i32, %arg3: memref<8x384xbf16, #tpu.memory_space<vmem>>, %arg4: memref<384x128xbf16, #tpu.memory_space<vmem>>, %arg5: memref<1x128xf32, #tpu.memory_space<vmem>>, %arg6: memref<1x128xf32, #tpu.memory_space<vmem>>, %arg7: memref<8x128xf32, #tpu.memory_space<vmem>>, %arg8: memref<8x128xf32, #tpu.memory_space<vmem>>) attributes {dimension_semantics = [#tpu.dimension_semantics<parallel>, #tpu.dimension_semantics<parallel>, #tpu.dimension_semantics<arbitrary>], iteration_bounds = array<i64: 1, 1, 1>, scalar_prefetch = 0 : i64, scratch_operands = 1 : i64, tpu.core_type = #tpu.core_type<tc>, window_params = [{transform_indices = @transform_0, window_bounds = array<i64: 8, 384>}, {transform_indices = @transform_1, window_bounds = array<i64: 384, 128>}, {transform_indices = @transform_2, window_bounds = array<i64: 1, 128>}, {transform_indices = @transform_3, window_bounds = array<i64: 1, 128>}, {transform_indices = @transform_4, window_bounds = array<i64: 8, 128>}]} {
    %c0_i32 = arith.constant 0 : i32
    %0 = arith.cmpi eq, %arg2, %c0_i32 : i32
    %1 = arith.extui %0 : i1 to i32
    %c0_i32_0 = arith.constant 0 : i32
    %2 = arith.cmpi ne, %1, %c0_i32_0 : i32
    scf.if %2 {
      %cst_10 = arith.constant 0.000000e+00 : f32
      %12 = vector.broadcast %cst_10 : f32 to vector<8x128xf32>
      %c0_11 = arith.constant 0 : index
      %c0_12 = arith.constant 0 : index
      %13 = vector.load %arg8[%c0_11, %c0_12] : memref<8x128xf32, #tpu.memory_space<vmem>>, vector<8x128xf32>
      tpu.vector_store %arg8[%c0_11, %c0_12], %12 {strides = array<i32>} : memref<8x128xf32, #tpu.memory_space<vmem>>, vector<8x128xf32>,
    } else {
    }
    %c0 = arith.constant 0 : index
    %c0_1 = arith.constant 0 : index
    %3 = vector.load %arg8[%c0, %c0_1] : memref<8x128xf32, #tpu.memory_space<vmem>>, vector<8x128xf32>
    %c0_2 = arith.constant 0 : index
    %c0_3 = arith.constant 0 : index
    %4 = vector.load %arg3[%c0_2, %c0_3] : memref<8x384xbf16, #tpu.memory_space<vmem>>, vector<8x384xbf16>
    %c0_4 = arith.constant 0 : index
    %c0_5 = arith.constant 0 : index
    %5 = vector.load %arg4[%c0_4, %c0_5] : memref<384x128xbf16, #tpu.memory_space<vmem>>, vector<384x128xbf16>
    %cst = arith.constant dense<0.000000e+00> : vector<8x128xf32>
    %6 = tpu.matmul %4, %5, %cst {dimension_numbers = #tpu.dot_dimension_numbers<[1], [0], [0], [1], [0, 0, 1, 1], [], []>} : vector<8x384xbf16>, vector<384x128xbf16>, vector<8x128xf32> -> vector<8x128xf32>
    %7 = arith.addf %3, %6 : vector<8x128xf32>
    %c0_6 = arith.constant 0 : index
    %c0_7 = arith.constant 0 : index
    %8 = vector.load %arg8[%c0_6, %c0_7] : memref<8x128xf32, #tpu.memory_space<vmem>>, vector<8x128xf32>
    tpu.vector_store %arg8[%c0_6, %c0_7], %7 {strides = array<i32>} : memref<8x128xf32, #tpu.memory_space<vmem>>, vector<8x128xf32>,
    %c0_i32_8 = arith.constant 0 : i32
    %9 = arith.cmpi eq, %arg2, %c0_i32_8 : i32
    %10 = arith.extui %9 : i1 to i32
    %c0_i32_9 = arith.constant 0 : i32
    %11 = arith.cmpi ne, %10, %c0_i32_9 : i32
    scf.if %11 {
      %c0_10 = arith.constant 0 : index
      %c0_11 = arith.constant 0 : index
      %12 = vector.load %arg8[%c0_10, %c0_11] : memref<8x128xf32, #tpu.memory_space<vmem>>, vector<8x128xf32>
      %c0_12 = arith.constant 0 : index
      %c0_13 = arith.constant 0 : index
      %13 = vector.load %arg5[%c0_12, %c0_13] : memref<1x128xf32, #tpu.memory_space<vmem>>, vector<1x128xf32>
      %14 = vector.broadcast %13 : vector<1x128xf32> to vector<8x128xf32>
      %15 = arith.mulf %12, %14 : vector<8x128xf32>
      %c0_14 = arith.constant 0 : index
      %c0_15 = arith.constant 0 : index
      %16 = vector.load %arg6[%c0_14, %c0_15] : memref<1x128xf32, #tpu.memory_space<vmem>>, vector<1x128xf32>
      %17 = vector.broadcast %16 : vector<1x128xf32> to vector<8x128xf32>
      %18 = arith.addf %15, %17 : vector<8x128xf32>
      %cst_16 = arith.constant 0.000000e+00 : f32
      %19 = vector.broadcast %cst_16 : f32 to vector<8x128xf32>
      %20 = arith.maximumf %18, %19 : vector<8x128xf32>
      %c0_17 = arith.constant 0 : index
      %c0_18 = arith.constant 0 : index
      %21 = vector.load %arg7[%c0_17, %c0_18] : memref<8x128xf32, #tpu.memory_space<vmem>>, vector<8x128xf32>
      tpu.vector_store %arg7[%c0_17, %c0_18], %20 {strides = array<i32>} : memref<8x128xf32, #tpu.memory_space<vmem>>, vector<8x128xf32>,
    } else {
    }
    return
  }
  func.func @transform_0(%arg0: i32, %arg1: i32, %arg2: i32) -> (i32, i32) {
    %c0_i32 = arith.constant 0 : i32
    return %arg0, %arg2 : i32, i32
  }
  func.func @transform_1(%arg0: i32, %arg1: i32, %arg2: i32) -> (i32, i32) {
    %c0_i32 = arith.constant 0 : i32
    return %arg2, %arg1 : i32, i32
  }
  func.func @transform_2(%arg0: i32, %arg1: i32, %arg2: i32) -> (i32, i32) {
    %c0_i32 = arith.constant 0 : i32
    %c0_i32_0 = arith.constant 0 : i32
    return %c0_i32, %arg1 : i32, i32
  }
  func.func @transform_3(%arg0: i32, %arg1: i32, %arg2: i32) -> (i32, i32) {
    %c0_i32 = arith.constant 0 : i32
    %c0_i32_0 = arith.constant 0 : i32
    return %c0_i32, %arg1 : i32, i32
  }
  func.func @transform_4(%arg0: i32, %arg1: i32, %arg2: i32) -> (i32, i32) {
    %c0_i32 = arith.constant 0 : i32
    return %arg0, %arg1 : i32, i32
  }
}

module attributes {stable_mosaic.version = 11 : i64} {
  func.func @_matmul_affine_res_kernel(%arg0: i32, %arg1: i32, %arg2: i32, %arg3: memref<8x384xbf16, #tpu.memory_space<vmem>>, %arg4: memref<384x128xbf16, #tpu.memory_space<vmem>>, %arg5: memref<1x128xf32, #tpu.memory_space<vmem>>, %arg6: memref<1x128xf32, #tpu.memory_space<vmem>>, %arg7: memref<8x128xf32, #tpu.memory_space<vmem>>, %arg8: memref<8x128xf32, #tpu.memory_space<vmem>>, %arg9: memref<8x128xf32, #tpu.memory_space<vmem>>) attributes {dimension_semantics = [#tpu.dimension_semantics<parallel>, #tpu.dimension_semantics<parallel>, #tpu.dimension_semantics<arbitrary>], iteration_bounds = array<i64: 1, 1, 1>, scalar_prefetch = 0 : i64, scratch_operands = 1 : i64, tpu.core_type = #tpu.core_type<tc>, window_params = [{transform_indices = @transform_0, window_bounds = array<i64: 8, 384>}, {transform_indices = @transform_1, window_bounds = array<i64: 384, 128>}, {transform_indices = @transform_2, window_bounds = array<i64: 1, 128>}, {transform_indices = @transform_3, window_bounds = array<i64: 1, 128>}, {transform_indices = @transform_4, window_bounds = array<i64: 8, 128>}, {transform_indices = @transform_5, window_bounds = array<i64: 8, 128>}]} {
    %c0_i32 = arith.constant 0 : i32
    %0 = arith.cmpi eq, %arg2, %c0_i32 : i32
    %1 = arith.extui %0 : i1 to i32
    %c0_i32_0 = arith.constant 0 : i32
    %2 = arith.cmpi ne, %1, %c0_i32_0 : i32
    scf.if %2 {
      %cst_10 = arith.constant 0.000000e+00 : f32
      %12 = vector.broadcast %cst_10 : f32 to vector<8x128xf32>
      %c0_11 = arith.constant 0 : index
      %c0_12 = arith.constant 0 : index
      %13 = vector.load %arg9[%c0_11, %c0_12] : memref<8x128xf32, #tpu.memory_space<vmem>>, vector<8x128xf32>
      tpu.vector_store %arg9[%c0_11, %c0_12], %12 {strides = array<i32>} : memref<8x128xf32, #tpu.memory_space<vmem>>, vector<8x128xf32>,
    } else {
    }
    %c0 = arith.constant 0 : index
    %c0_1 = arith.constant 0 : index
    %3 = vector.load %arg9[%c0, %c0_1] : memref<8x128xf32, #tpu.memory_space<vmem>>, vector<8x128xf32>
    %c0_2 = arith.constant 0 : index
    %c0_3 = arith.constant 0 : index
    %4 = vector.load %arg3[%c0_2, %c0_3] : memref<8x384xbf16, #tpu.memory_space<vmem>>, vector<8x384xbf16>
    %c0_4 = arith.constant 0 : index
    %c0_5 = arith.constant 0 : index
    %5 = vector.load %arg4[%c0_4, %c0_5] : memref<384x128xbf16, #tpu.memory_space<vmem>>, vector<384x128xbf16>
    %cst = arith.constant dense<0.000000e+00> : vector<8x128xf32>
    %6 = tpu.matmul %4, %5, %cst {dimension_numbers = #tpu.dot_dimension_numbers<[1], [0], [0], [1], [0, 0, 1, 1], [], []>} : vector<8x384xbf16>, vector<384x128xbf16>, vector<8x128xf32> -> vector<8x128xf32>
    %7 = arith.addf %3, %6 : vector<8x128xf32>
    %c0_6 = arith.constant 0 : index
    %c0_7 = arith.constant 0 : index
    %8 = vector.load %arg9[%c0_6, %c0_7] : memref<8x128xf32, #tpu.memory_space<vmem>>, vector<8x128xf32>
    tpu.vector_store %arg9[%c0_6, %c0_7], %7 {strides = array<i32>} : memref<8x128xf32, #tpu.memory_space<vmem>>, vector<8x128xf32>,
    %c0_i32_8 = arith.constant 0 : i32
    %9 = arith.cmpi eq, %arg2, %c0_i32_8 : i32
    %10 = arith.extui %9 : i1 to i32
    %c0_i32_9 = arith.constant 0 : i32
    %11 = arith.cmpi ne, %10, %c0_i32_9 : i32
    scf.if %11 {
      %c0_10 = arith.constant 0 : index
      %c0_11 = arith.constant 0 : index
      %12 = vector.load %arg9[%c0_10, %c0_11] : memref<8x128xf32, #tpu.memory_space<vmem>>, vector<8x128xf32>
      %c0_12 = arith.constant 0 : index
      %c0_13 = arith.constant 0 : index
      %13 = vector.load %arg5[%c0_12, %c0_13] : memref<1x128xf32, #tpu.memory_space<vmem>>, vector<1x128xf32>
      %14 = vector.broadcast %13 : vector<1x128xf32> to vector<8x128xf32>
      %15 = arith.mulf %12, %14 : vector<8x128xf32>
      %c0_14 = arith.constant 0 : index
      %c0_15 = arith.constant 0 : index
      %16 = vector.load %arg6[%c0_14, %c0_15] : memref<1x128xf32, #tpu.memory_space<vmem>>, vector<1x128xf32>
      %17 = vector.broadcast %16 : vector<1x128xf32> to vector<8x128xf32>
      %18 = arith.addf %15, %17 : vector<8x128xf32>
      %c0_16 = arith.constant 0 : index
      %c0_17 = arith.constant 0 : index
      %19 = vector.load %arg7[%c0_16, %c0_17] : memref<8x128xf32, #tpu.memory_space<vmem>>, vector<8x128xf32>
      %20 = arith.addf %18, %19 : vector<8x128xf32>
      %cst_18 = arith.constant 0.000000e+00 : f32
      %21 = vector.broadcast %cst_18 : f32 to vector<8x128xf32>
      %22 = arith.maximumf %20, %21 : vector<8x128xf32>
      %c0_19 = arith.constant 0 : index
      %c0_20 = arith.constant 0 : index
      %23 = vector.load %arg8[%c0_19, %c0_20] : memref<8x128xf32, #tpu.memory_space<vmem>>, vector<8x128xf32>
      tpu.vector_store %arg8[%c0_19, %c0_20], %22 {strides = array<i32>} : memref<8x128xf32, #tpu.memory_space<vmem>>, vector<8x128xf32>,
    } else {
    }
    return
  }
  func.func @transform_0(%arg0: i32, %arg1: i32, %arg2: i32) -> (i32, i32) {
    %c0_i32 = arith.constant 0 : i32
    return %arg0, %arg2 : i32, i32
  }
  func.func @transform_1(%arg0: i32, %arg1: i32, %arg2: i32) -> (i32, i32) {
    %c0_i32 = arith.constant 0 : i32
    return %arg2, %arg1 : i32, i32
  }
  func.func @transform_2(%arg0: i32, %arg1: i32, %arg2: i32) -> (i32, i32) {
    %c0_i32 = arith.constant 0 : i32
    %c0_i32_0 = arith.constant 0 : i32
    return %c0_i32, %arg1 : i32, i32
  }
  func.func @transform_3(%arg0: i32, %arg1: i32, %arg2: i32) -> (i32, i32) {
    %c0_i32 = arith.constant 0 : i32
    %c0_i32_0 = arith.constant 0 : i32
    return %c0_i32, %arg1 : i32, i32
  }
  func.func @transform_4(%arg0: i32, %arg1: i32, %arg2: i32) -> (i32, i32) {
    %c0_i32 = arith.constant 0 : i32
    return %arg0, %arg1 : i32, i32
  }
  func.func @transform_5(%arg0: i32, %arg1: i32, %arg2: i32) -> (i32, i32) {
    %c0_i32 = arith.constant 0 : i32
    return %arg0, %arg1 : i32, i32
  }
}

module attributes {stable_mosaic.version = 11 : i64} {
  func.func @_matmul_affine_kernel(%arg0: i32, %arg1: i32, %arg2: i32, %arg3: memref<8x256xbf16, #tpu.memory_space<vmem>>, %arg4: memref<256x64xbf16, #tpu.memory_space<vmem>>, %arg5: memref<1x64xf32, #tpu.memory_space<vmem>>, %arg6: memref<1x64xf32, #tpu.memory_space<vmem>>, %arg7: memref<8x64xf32, #tpu.memory_space<vmem>>, %arg8: memref<8x64xf32, #tpu.memory_space<vmem>>) attributes {dimension_semantics = [#tpu.dimension_semantics<parallel>, #tpu.dimension_semantics<parallel>, #tpu.dimension_semantics<arbitrary>], iteration_bounds = array<i64: 1, 1, 1>, scalar_prefetch = 0 : i64, scratch_operands = 1 : i64, tpu.core_type = #tpu.core_type<tc>, window_params = [{transform_indices = @transform_0, window_bounds = array<i64: 8, 256>}, {transform_indices = @transform_1, window_bounds = array<i64: 256, 64>}, {transform_indices = @transform_2, window_bounds = array<i64: 1, 64>}, {transform_indices = @transform_3, window_bounds = array<i64: 1, 64>}, {transform_indices = @transform_4, window_bounds = array<i64: 8, 64>}]} {
    %c0_i32 = arith.constant 0 : i32
    %0 = arith.cmpi eq, %arg2, %c0_i32 : i32
    %1 = arith.extui %0 : i1 to i32
    %c0_i32_0 = arith.constant 0 : i32
    %2 = arith.cmpi ne, %1, %c0_i32_0 : i32
    scf.if %2 {
      %cst_10 = arith.constant 0.000000e+00 : f32
      %12 = vector.broadcast %cst_10 : f32 to vector<8x64xf32>
      %c0_11 = arith.constant 0 : index
      %c0_12 = arith.constant 0 : index
      %13 = vector.load %arg8[%c0_11, %c0_12] : memref<8x64xf32, #tpu.memory_space<vmem>>, vector<8x64xf32>
      tpu.vector_store %arg8[%c0_11, %c0_12], %12 {strides = array<i32>} : memref<8x64xf32, #tpu.memory_space<vmem>>, vector<8x64xf32>,
    } else {
    }
    %c0 = arith.constant 0 : index
    %c0_1 = arith.constant 0 : index
    %3 = vector.load %arg8[%c0, %c0_1] : memref<8x64xf32, #tpu.memory_space<vmem>>, vector<8x64xf32>
    %c0_2 = arith.constant 0 : index
    %c0_3 = arith.constant 0 : index
    %4 = vector.load %arg3[%c0_2, %c0_3] : memref<8x256xbf16, #tpu.memory_space<vmem>>, vector<8x256xbf16>
    %c0_4 = arith.constant 0 : index
    %c0_5 = arith.constant 0 : index
    %5 = vector.load %arg4[%c0_4, %c0_5] : memref<256x64xbf16, #tpu.memory_space<vmem>>, vector<256x64xbf16>
    %cst = arith.constant dense<0.000000e+00> : vector<8x64xf32>
    %6 = tpu.matmul %4, %5, %cst {dimension_numbers = #tpu.dot_dimension_numbers<[1], [0], [0], [1], [0, 0, 1, 1], [], []>} : vector<8x256xbf16>, vector<256x64xbf16>, vector<8x64xf32> -> vector<8x64xf32>
    %7 = arith.addf %3, %6 : vector<8x64xf32>
    %c0_6 = arith.constant 0 : index
    %c0_7 = arith.constant 0 : index
    %8 = vector.load %arg8[%c0_6, %c0_7] : memref<8x64xf32, #tpu.memory_space<vmem>>, vector<8x64xf32>
    tpu.vector_store %arg8[%c0_6, %c0_7], %7 {strides = array<i32>} : memref<8x64xf32, #tpu.memory_space<vmem>>, vector<8x64xf32>,
    %c0_i32_8 = arith.constant 0 : i32
    %9 = arith.cmpi eq, %arg2, %c0_i32_8 : i32
    %10 = arith.extui %9 : i1 to i32
    %c0_i32_9 = arith.constant 0 : i32
    %11 = arith.cmpi ne, %10, %c0_i32_9 : i32
    scf.if %11 {
      %c0_10 = arith.constant 0 : index
      %c0_11 = arith.constant 0 : index
      %12 = vector.load %arg8[%c0_10, %c0_11] : memref<8x64xf32, #tpu.memory_space<vmem>>, vector<8x64xf32>
      %c0_12 = arith.constant 0 : index
      %c0_13 = arith.constant 0 : index
      %13 = vector.load %arg5[%c0_12, %c0_13] : memref<1x64xf32, #tpu.memory_space<vmem>>, vector<1x64xf32>
      %14 = vector.broadcast %13 : vector<1x64xf32> to vector<8x64xf32>
      %15 = arith.mulf %12, %14 : vector<8x64xf32>
      %c0_14 = arith.constant 0 : index
      %c0_15 = arith.constant 0 : index
      %16 = vector.load %arg6[%c0_14, %c0_15] : memref<1x64xf32, #tpu.memory_space<vmem>>, vector<1x64xf32>
      %17 = vector.broadcast %16 : vector<1x64xf32> to vector<8x64xf32>
      %18 = arith.addf %15, %17 : vector<8x64xf32>
      %cst_16 = arith.constant 0.000000e+00 : f32
      %19 = vector.broadcast %cst_16 : f32 to vector<8x64xf32>
      %20 = arith.maximumf %18, %19 : vector<8x64xf32>
      %c0_17 = arith.constant 0 : index
      %c0_18 = arith.constant 0 : index
      %21 = vector.load %arg7[%c0_17, %c0_18] : memref<8x64xf32, #tpu.memory_space<vmem>>, vector<8x64xf32>
      tpu.vector_store %arg7[%c0_17, %c0_18], %20 {strides = array<i32>} : memref<8x64xf32, #tpu.memory_space<vmem>>, vector<8x64xf32>,
    } else {
    }
    return
  }
  func.func @transform_0(%arg0: i32, %arg1: i32, %arg2: i32) -> (i32, i32) {
    %c0_i32 = arith.constant 0 : i32
    return %arg0, %arg2 : i32, i32
  }
  func.func @transform_1(%arg0: i32, %arg1: i32, %arg2: i32) -> (i32, i32) {
    %c0_i32 = arith.constant 0 : i32
    return %arg2, %arg1 : i32, i32
  }
  func.func @transform_2(%arg0: i32, %arg1: i32, %arg2: i32) -> (i32, i32) {
    %c0_i32 = arith.constant 0 : i32
    %c0_i32_0 = arith.constant 0 : i32
    return %c0_i32, %arg1 : i32, i32
  }
  func.func @transform_3(%arg0: i32, %arg1: i32, %arg2: i32) -> (i32, i32) {
    %c0_i32 = arith.constant 0 : i32
    %c0_i32_0 = arith.constant 0 : i32
    return %c0_i32, %arg1 : i32, i32
  }
  func.func @transform_4(%arg0: i32, %arg1: i32, %arg2: i32) -> (i32, i32) {
    %c0_i32 = arith.constant 0 : i32
    return %arg0, %arg1 : i32, i32
  }
}

module attributes {stable_mosaic.version = 11 : i64} {
  func.func @_matmul_affine_kernel(%arg0: i32, %arg1: i32, %arg2: i32, %arg3: memref<8x128xbf16, #tpu.memory_space<vmem>>, %arg4: memref<128x64xbf16, #tpu.memory_space<vmem>>, %arg5: memref<1x64xf32, #tpu.memory_space<vmem>>, %arg6: memref<1x64xf32, #tpu.memory_space<vmem>>, %arg7: memref<8x64xf32, #tpu.memory_space<vmem>>, %arg8: memref<8x64xf32, #tpu.memory_space<vmem>>) attributes {dimension_semantics = [#tpu.dimension_semantics<parallel>, #tpu.dimension_semantics<parallel>, #tpu.dimension_semantics<arbitrary>], iteration_bounds = array<i64: 1, 1, 1>, scalar_prefetch = 0 : i64, scratch_operands = 1 : i64, tpu.core_type = #tpu.core_type<tc>, window_params = [{transform_indices = @transform_0, window_bounds = array<i64: 8, 128>}, {transform_indices = @transform_1, window_bounds = array<i64: 128, 64>}, {transform_indices = @transform_2, window_bounds = array<i64: 1, 64>}, {transform_indices = @transform_3, window_bounds = array<i64: 1, 64>}, {transform_indices = @transform_4, window_bounds = array<i64: 8, 64>}]} {
    %c0_i32 = arith.constant 0 : i32
    %0 = arith.cmpi eq, %arg2, %c0_i32 : i32
    %1 = arith.extui %0 : i1 to i32
    %c0_i32_0 = arith.constant 0 : i32
    %2 = arith.cmpi ne, %1, %c0_i32_0 : i32
    scf.if %2 {
      %cst_10 = arith.constant 0.000000e+00 : f32
      %12 = vector.broadcast %cst_10 : f32 to vector<8x64xf32>
      %c0_11 = arith.constant 0 : index
      %c0_12 = arith.constant 0 : index
      %13 = vector.load %arg8[%c0_11, %c0_12] : memref<8x64xf32, #tpu.memory_space<vmem>>, vector<8x64xf32>
      tpu.vector_store %arg8[%c0_11, %c0_12], %12 {strides = array<i32>} : memref<8x64xf32, #tpu.memory_space<vmem>>, vector<8x64xf32>,
    } else {
    }
    %c0 = arith.constant 0 : index
    %c0_1 = arith.constant 0 : index
    %3 = vector.load %arg8[%c0, %c0_1] : memref<8x64xf32, #tpu.memory_space<vmem>>, vector<8x64xf32>
    %c0_2 = arith.constant 0 : index
    %c0_3 = arith.constant 0 : index
    %4 = vector.load %arg3[%c0_2, %c0_3] : memref<8x128xbf16, #tpu.memory_space<vmem>>, vector<8x128xbf16>
    %c0_4 = arith.constant 0 : index
    %c0_5 = arith.constant 0 : index
    %5 = vector.load %arg4[%c0_4, %c0_5] : memref<128x64xbf16, #tpu.memory_space<vmem>>, vector<128x64xbf16>
    %cst = arith.constant dense<0.000000e+00> : vector<8x64xf32>
    %6 = tpu.matmul %4, %5, %cst {dimension_numbers = #tpu.dot_dimension_numbers<[1], [0], [0], [1], [0, 0, 1, 1], [], []>} : vector<8x128xbf16>, vector<128x64xbf16>, vector<8x64xf32> -> vector<8x64xf32>
    %7 = arith.addf %3, %6 : vector<8x64xf32>
    %c0_6 = arith.constant 0 : index
    %c0_7 = arith.constant 0 : index
    %8 = vector.load %arg8[%c0_6, %c0_7] : memref<8x64xf32, #tpu.memory_space<vmem>>, vector<8x64xf32>
    tpu.vector_store %arg8[%c0_6, %c0_7], %7 {strides = array<i32>} : memref<8x64xf32, #tpu.memory_space<vmem>>, vector<8x64xf32>,
    %c0_i32_8 = arith.constant 0 : i32
    %9 = arith.cmpi eq, %arg2, %c0_i32_8 : i32
    %10 = arith.extui %9 : i1 to i32
    %c0_i32_9 = arith.constant 0 : i32
    %11 = arith.cmpi ne, %10, %c0_i32_9 : i32
    scf.if %11 {
      %c0_10 = arith.constant 0 : index
      %c0_11 = arith.constant 0 : index
      %12 = vector.load %arg8[%c0_10, %c0_11] : memref<8x64xf32, #tpu.memory_space<vmem>>, vector<8x64xf32>
      %c0_12 = arith.constant 0 : index
      %c0_13 = arith.constant 0 : index
      %13 = vector.load %arg5[%c0_12, %c0_13] : memref<1x64xf32, #tpu.memory_space<vmem>>, vector<1x64xf32>
      %14 = vector.broadcast %13 : vector<1x64xf32> to vector<8x64xf32>
      %15 = arith.mulf %12, %14 : vector<8x64xf32>
      %c0_14 = arith.constant 0 : index
      %c0_15 = arith.constant 0 : index
      %16 = vector.load %arg6[%c0_14, %c0_15] : memref<1x64xf32, #tpu.memory_space<vmem>>, vector<1x64xf32>
      %17 = vector.broadcast %16 : vector<1x64xf32> to vector<8x64xf32>
      %18 = arith.addf %15, %17 : vector<8x64xf32>
      %cst_16 = arith.constant 0.000000e+00 : f32
      %19 = vector.broadcast %cst_16 : f32 to vector<8x64xf32>
      %20 = arith.maximumf %18, %19 : vector<8x64xf32>
      %c0_17 = arith.constant 0 : index
      %c0_18 = arith.constant 0 : index
      %21 = vector.load %arg7[%c0_17, %c0_18] : memref<8x64xf32, #tpu.memory_space<vmem>>, vector<8x64xf32>
      tpu.vector_store %arg7[%c0_17, %c0_18], %20 {strides = array<i32>} : memref<8x64xf32, #tpu.memory_space<vmem>>, vector<8x64xf32>,
    } else {
    }
    return
  }
  func.func @transform_0(%arg0: i32, %arg1: i32, %arg2: i32) -> (i32, i32) {
    %c0_i32 = arith.constant 0 : i32
    return %arg0, %arg2 : i32, i32
  }
  func.func @transform_1(%arg0: i32, %arg1: i32, %arg2: i32) -> (i32, i32) {
    %c0_i32 = arith.constant 0 : i32
    return %arg2, %arg1 : i32, i32
  }
  func.func @transform_2(%arg0: i32, %arg1: i32, %arg2: i32) -> (i32, i32) {
    %c0_i32 = arith.constant 0 : i32
    %c0_i32_0 = arith.constant 0 : i32
    return %c0_i32, %arg1 : i32, i32
  }
  func.func @transform_3(%arg0: i32, %arg1: i32, %arg2: i32) -> (i32, i32) {
    %c0_i32 = arith.constant 0 : i32
    %c0_i32_0 = arith.constant 0 : i32
    return %c0_i32, %arg1 : i32, i32
  }
  func.func @transform_4(%arg0: i32, %arg1: i32, %arg2: i32) -> (i32, i32) {
    %c0_i32 = arith.constant 0 : i32
    return %arg0, %arg1 : i32, i32
  }
}

module attributes {stable_mosaic.version = 11 : i64} {
  func.func @_matmul_affine_kernel(%arg0: i32, %arg1: i32, %arg2: i32, %arg3: memref<8x512xbf16, #tpu.memory_space<vmem>>, %arg4: memref<512x64xbf16, #tpu.memory_space<vmem>>, %arg5: memref<1x64xf32, #tpu.memory_space<vmem>>, %arg6: memref<1x64xf32, #tpu.memory_space<vmem>>, %arg7: memref<8x64xf32, #tpu.memory_space<vmem>>, %arg8: memref<8x64xf32, #tpu.memory_space<vmem>>) attributes {dimension_semantics = [#tpu.dimension_semantics<parallel>, #tpu.dimension_semantics<parallel>, #tpu.dimension_semantics<arbitrary>], iteration_bounds = array<i64: 1, 1, 1>, scalar_prefetch = 0 : i64, scratch_operands = 1 : i64, tpu.core_type = #tpu.core_type<tc>, window_params = [{transform_indices = @transform_0, window_bounds = array<i64: 8, 512>}, {transform_indices = @transform_1, window_bounds = array<i64: 512, 64>}, {transform_indices = @transform_2, window_bounds = array<i64: 1, 64>}, {transform_indices = @transform_3, window_bounds = array<i64: 1, 64>}, {transform_indices = @transform_4, window_bounds = array<i64: 8, 64>}]} {
    %c0_i32 = arith.constant 0 : i32
    %0 = arith.cmpi eq, %arg2, %c0_i32 : i32
    %1 = arith.extui %0 : i1 to i32
    %c0_i32_0 = arith.constant 0 : i32
    %2 = arith.cmpi ne, %1, %c0_i32_0 : i32
    scf.if %2 {
      %cst_10 = arith.constant 0.000000e+00 : f32
      %12 = vector.broadcast %cst_10 : f32 to vector<8x64xf32>
      %c0_11 = arith.constant 0 : index
      %c0_12 = arith.constant 0 : index
      %13 = vector.load %arg8[%c0_11, %c0_12] : memref<8x64xf32, #tpu.memory_space<vmem>>, vector<8x64xf32>
      tpu.vector_store %arg8[%c0_11, %c0_12], %12 {strides = array<i32>} : memref<8x64xf32, #tpu.memory_space<vmem>>, vector<8x64xf32>,
    } else {
    }
    %c0 = arith.constant 0 : index
    %c0_1 = arith.constant 0 : index
    %3 = vector.load %arg8[%c0, %c0_1] : memref<8x64xf32, #tpu.memory_space<vmem>>, vector<8x64xf32>
    %c0_2 = arith.constant 0 : index
    %c0_3 = arith.constant 0 : index
    %4 = vector.load %arg3[%c0_2, %c0_3] : memref<8x512xbf16, #tpu.memory_space<vmem>>, vector<8x512xbf16>
    %c0_4 = arith.constant 0 : index
    %c0_5 = arith.constant 0 : index
    %5 = vector.load %arg4[%c0_4, %c0_5] : memref<512x64xbf16, #tpu.memory_space<vmem>>, vector<512x64xbf16>
    %cst = arith.constant dense<0.000000e+00> : vector<8x64xf32>
    %6 = tpu.matmul %4, %5, %cst {dimension_numbers = #tpu.dot_dimension_numbers<[1], [0], [0], [1], [0, 0, 1, 1], [], []>} : vector<8x512xbf16>, vector<512x64xbf16>, vector<8x64xf32> -> vector<8x64xf32>
    %7 = arith.addf %3, %6 : vector<8x64xf32>
    %c0_6 = arith.constant 0 : index
    %c0_7 = arith.constant 0 : index
    %8 = vector.load %arg8[%c0_6, %c0_7] : memref<8x64xf32, #tpu.memory_space<vmem>>, vector<8x64xf32>
    tpu.vector_store %arg8[%c0_6, %c0_7], %7 {strides = array<i32>} : memref<8x64xf32, #tpu.memory_space<vmem>>, vector<8x64xf32>,
    %c0_i32_8 = arith.constant 0 : i32
    %9 = arith.cmpi eq, %arg2, %c0_i32_8 : i32
    %10 = arith.extui %9 : i1 to i32
    %c0_i32_9 = arith.constant 0 : i32
    %11 = arith.cmpi ne, %10, %c0_i32_9 : i32
    scf.if %11 {
      %c0_10 = arith.constant 0 : index
      %c0_11 = arith.constant 0 : index
      %12 = vector.load %arg8[%c0_10, %c0_11] : memref<8x64xf32, #tpu.memory_space<vmem>>, vector<8x64xf32>
      %c0_12 = arith.constant 0 : index
      %c0_13 = arith.constant 0 : index
      %13 = vector.load %arg5[%c0_12, %c0_13] : memref<1x64xf32, #tpu.memory_space<vmem>>, vector<1x64xf32>
      %14 = vector.broadcast %13 : vector<1x64xf32> to vector<8x64xf32>
      %15 = arith.mulf %12, %14 : vector<8x64xf32>
      %c0_14 = arith.constant 0 : index
      %c0_15 = arith.constant 0 : index
      %16 = vector.load %arg6[%c0_14, %c0_15] : memref<1x64xf32, #tpu.memory_space<vmem>>, vector<1x64xf32>
      %17 = vector.broadcast %16 : vector<1x64xf32> to vector<8x64xf32>
      %18 = arith.addf %15, %17 : vector<8x64xf32>
      %cst_16 = arith.constant 0.000000e+00 : f32
      %19 = vector.broadcast %cst_16 : f32 to vector<8x64xf32>
      %20 = arith.maximumf %18, %19 : vector<8x64xf32>
      %c0_17 = arith.constant 0 : index
      %c0_18 = arith.constant 0 : index
      %21 = vector.load %arg7[%c0_17, %c0_18] : memref<8x64xf32, #tpu.memory_space<vmem>>, vector<8x64xf32>
      tpu.vector_store %arg7[%c0_17, %c0_18], %20 {strides = array<i32>} : memref<8x64xf32, #tpu.memory_space<vmem>>, vector<8x64xf32>,
    } else {
    }
    return
  }
  func.func @transform_0(%arg0: i32, %arg1: i32, %arg2: i32) -> (i32, i32) {
    %c0_i32 = arith.constant 0 : i32
    return %arg0, %arg2 : i32, i32
  }
  func.func @transform_1(%arg0: i32, %arg1: i32, %arg2: i32) -> (i32, i32) {
    %c0_i32 = arith.constant 0 : i32
    return %arg2, %arg1 : i32, i32
  }
  func.func @transform_2(%arg0: i32, %arg1: i32, %arg2: i32) -> (i32, i32) {
    %c0_i32 = arith.constant 0 : i32
    %c0_i32_0 = arith.constant 0 : i32
    return %c0_i32, %arg1 : i32, i32
  }
  func.func @transform_3(%arg0: i32, %arg1: i32, %arg2: i32) -> (i32, i32) {
    %c0_i32 = arith.constant 0 : i32
    %c0_i32_0 = arith.constant 0 : i32
    return %c0_i32, %arg1 : i32, i32
  }
  func.func @transform_4(%arg0: i32, %arg1: i32, %arg2: i32) -> (i32, i32) {
    %c0_i32 = arith.constant 0 : i32
    return %arg0, %arg1 : i32, i32
  }
}

module attributes {stable_mosaic.version = 11 : i64} {
  func.func @_matmul_affine_kernel(%arg0: i32, %arg1: i32, %arg2: i32, %arg3: memref<32x256xbf16, #tpu.memory_space<vmem>>, %arg4: memref<256x32xbf16, #tpu.memory_space<vmem>>, %arg5: memref<1x32xf32, #tpu.memory_space<vmem>>, %arg6: memref<1x32xf32, #tpu.memory_space<vmem>>, %arg7: memref<32x32xf32, #tpu.memory_space<vmem>>, %arg8: memref<32x32xf32, #tpu.memory_space<vmem>>) attributes {dimension_semantics = [#tpu.dimension_semantics<parallel>, #tpu.dimension_semantics<parallel>, #tpu.dimension_semantics<arbitrary>], iteration_bounds = array<i64: 1, 1, 1>, scalar_prefetch = 0 : i64, scratch_operands = 1 : i64, tpu.core_type = #tpu.core_type<tc>, window_params = [{transform_indices = @transform_0, window_bounds = array<i64: 32, 256>}, {transform_indices = @transform_1, window_bounds = array<i64: 256, 32>}, {transform_indices = @transform_2, window_bounds = array<i64: 1, 32>}, {transform_indices = @transform_3, window_bounds = array<i64: 1, 32>}, {transform_indices = @transform_4, window_bounds = array<i64: 32, 32>}]} {
    %c0_i32 = arith.constant 0 : i32
    %0 = arith.cmpi eq, %arg2, %c0_i32 : i32
    %1 = arith.extui %0 : i1 to i32
    %c0_i32_0 = arith.constant 0 : i32
    %2 = arith.cmpi ne, %1, %c0_i32_0 : i32
    scf.if %2 {
      %cst_10 = arith.constant 0.000000e+00 : f32
      %12 = vector.broadcast %cst_10 : f32 to vector<32x32xf32>
      %c0_11 = arith.constant 0 : index
      %c0_12 = arith.constant 0 : index
      %13 = vector.load %arg8[%c0_11, %c0_12] : memref<32x32xf32, #tpu.memory_space<vmem>>, vector<32x32xf32>
      tpu.vector_store %arg8[%c0_11, %c0_12], %12 {strides = array<i32>} : memref<32x32xf32, #tpu.memory_space<vmem>>, vector<32x32xf32>,
    } else {
    }
    %c0 = arith.constant 0 : index
    %c0_1 = arith.constant 0 : index
    %3 = vector.load %arg8[%c0, %c0_1] : memref<32x32xf32, #tpu.memory_space<vmem>>, vector<32x32xf32>
    %c0_2 = arith.constant 0 : index
    %c0_3 = arith.constant 0 : index
    %4 = vector.load %arg3[%c0_2, %c0_3] : memref<32x256xbf16, #tpu.memory_space<vmem>>, vector<32x256xbf16>
    %c0_4 = arith.constant 0 : index
    %c0_5 = arith.constant 0 : index
    %5 = vector.load %arg4[%c0_4, %c0_5] : memref<256x32xbf16, #tpu.memory_space<vmem>>, vector<256x32xbf16>
    %cst = arith.constant dense<0.000000e+00> : vector<32x32xf32>
    %6 = tpu.matmul %4, %5, %cst {dimension_numbers = #tpu.dot_dimension_numbers<[1], [0], [0], [1], [0, 0, 1, 1], [], []>} : vector<32x256xbf16>, vector<256x32xbf16>, vector<32x32xf32> -> vector<32x32xf32>
    %7 = arith.addf %3, %6 : vector<32x32xf32>
    %c0_6 = arith.constant 0 : index
    %c0_7 = arith.constant 0 : index
    %8 = vector.load %arg8[%c0_6, %c0_7] : memref<32x32xf32, #tpu.memory_space<vmem>>, vector<32x32xf32>
    tpu.vector_store %arg8[%c0_6, %c0_7], %7 {strides = array<i32>} : memref<32x32xf32, #tpu.memory_space<vmem>>, vector<32x32xf32>,
    %c0_i32_8 = arith.constant 0 : i32
    %9 = arith.cmpi eq, %arg2, %c0_i32_8 : i32
    %10 = arith.extui %9 : i1 to i32
    %c0_i32_9 = arith.constant 0 : i32
    %11 = arith.cmpi ne, %10, %c0_i32_9 : i32
    scf.if %11 {
      %c0_10 = arith.constant 0 : index
      %c0_11 = arith.constant 0 : index
      %12 = vector.load %arg8[%c0_10, %c0_11] : memref<32x32xf32, #tpu.memory_space<vmem>>, vector<32x32xf32>
      %c0_12 = arith.constant 0 : index
      %c0_13 = arith.constant 0 : index
      %13 = vector.load %arg5[%c0_12, %c0_13] : memref<1x32xf32, #tpu.memory_space<vmem>>, vector<1x32xf32>
      %14 = vector.broadcast %13 : vector<1x32xf32> to vector<32x32xf32>
      %15 = arith.mulf %12, %14 : vector<32x32xf32>
      %c0_14 = arith.constant 0 : index
      %c0_15 = arith.constant 0 : index
      %16 = vector.load %arg6[%c0_14, %c0_15] : memref<1x32xf32, #tpu.memory_space<vmem>>, vector<1x32xf32>
      %17 = vector.broadcast %16 : vector<1x32xf32> to vector<32x32xf32>
      %18 = arith.addf %15, %17 : vector<32x32xf32>
      %cst_16 = arith.constant 0.000000e+00 : f32
      %19 = vector.broadcast %cst_16 : f32 to vector<32x32xf32>
      %20 = arith.maximumf %18, %19 : vector<32x32xf32>
      %c0_17 = arith.constant 0 : index
      %c0_18 = arith.constant 0 : index
      %21 = vector.load %arg7[%c0_17, %c0_18] : memref<32x32xf32, #tpu.memory_space<vmem>>, vector<32x32xf32>
      tpu.vector_store %arg7[%c0_17, %c0_18], %20 {strides = array<i32>} : memref<32x32xf32, #tpu.memory_space<vmem>>, vector<32x32xf32>,
    } else {
    }
    return
  }
  func.func @transform_0(%arg0: i32, %arg1: i32, %arg2: i32) -> (i32, i32) {
    %c0_i32 = arith.constant 0 : i32
    return %arg0, %arg2 : i32, i32
  }
  func.func @transform_1(%arg0: i32, %arg1: i32, %arg2: i32) -> (i32, i32) {
    %c0_i32 = arith.constant 0 : i32
    return %arg2, %arg1 : i32, i32
  }
  func.func @transform_2(%arg0: i32, %arg1: i32, %arg2: i32) -> (i32, i32) {
    %c0_i32 = arith.constant 0 : i32
    %c0_i32_0 = arith.constant 0 : i32
    return %c0_i32, %arg1 : i32, i32
  }
  func.func @transform_3(%arg0: i32, %arg1: i32, %arg2: i32) -> (i32, i32) {
    %c0_i32 = arith.constant 0 : i32
    %c0_i32_0 = arith.constant 0 : i32
    return %c0_i32, %arg1 : i32, i32
  }
  func.func @transform_4(%arg0: i32, %arg1: i32, %arg2: i32) -> (i32, i32) {
    %c0_i32 = arith.constant 0 : i32
    return %arg0, %arg1 : i32, i32
  }
}

module attributes {stable_mosaic.version = 11 : i64} {
  func.func @_matmul_affine_kernel(%arg0: i32, %arg1: i32, %arg2: i32, %arg3: memref<32x128xbf16, #tpu.memory_space<vmem>>, %arg4: memref<128x32xbf16, #tpu.memory_space<vmem>>, %arg5: memref<1x32xf32, #tpu.memory_space<vmem>>, %arg6: memref<1x32xf32, #tpu.memory_space<vmem>>, %arg7: memref<32x32xf32, #tpu.memory_space<vmem>>, %arg8: memref<32x32xf32, #tpu.memory_space<vmem>>) attributes {dimension_semantics = [#tpu.dimension_semantics<parallel>, #tpu.dimension_semantics<parallel>, #tpu.dimension_semantics<arbitrary>], iteration_bounds = array<i64: 1, 1, 1>, scalar_prefetch = 0 : i64, scratch_operands = 1 : i64, tpu.core_type = #tpu.core_type<tc>, window_params = [{transform_indices = @transform_0, window_bounds = array<i64: 32, 128>}, {transform_indices = @transform_1, window_bounds = array<i64: 128, 32>}, {transform_indices = @transform_2, window_bounds = array<i64: 1, 32>}, {transform_indices = @transform_3, window_bounds = array<i64: 1, 32>}, {transform_indices = @transform_4, window_bounds = array<i64: 32, 32>}]} {
    %c0_i32 = arith.constant 0 : i32
    %0 = arith.cmpi eq, %arg2, %c0_i32 : i32
    %1 = arith.extui %0 : i1 to i32
    %c0_i32_0 = arith.constant 0 : i32
    %2 = arith.cmpi ne, %1, %c0_i32_0 : i32
    scf.if %2 {
      %cst_10 = arith.constant 0.000000e+00 : f32
      %12 = vector.broadcast %cst_10 : f32 to vector<32x32xf32>
      %c0_11 = arith.constant 0 : index
      %c0_12 = arith.constant 0 : index
      %13 = vector.load %arg8[%c0_11, %c0_12] : memref<32x32xf32, #tpu.memory_space<vmem>>, vector<32x32xf32>
      tpu.vector_store %arg8[%c0_11, %c0_12], %12 {strides = array<i32>} : memref<32x32xf32, #tpu.memory_space<vmem>>, vector<32x32xf32>,
    } else {
    }
    %c0 = arith.constant 0 : index
    %c0_1 = arith.constant 0 : index
    %3 = vector.load %arg8[%c0, %c0_1] : memref<32x32xf32, #tpu.memory_space<vmem>>, vector<32x32xf32>
    %c0_2 = arith.constant 0 : index
    %c0_3 = arith.constant 0 : index
    %4 = vector.load %arg3[%c0_2, %c0_3] : memref<32x128xbf16, #tpu.memory_space<vmem>>, vector<32x128xbf16>
    %c0_4 = arith.constant 0 : index
    %c0_5 = arith.constant 0 : index
    %5 = vector.load %arg4[%c0_4, %c0_5] : memref<128x32xbf16, #tpu.memory_space<vmem>>, vector<128x32xbf16>
    %cst = arith.constant dense<0.000000e+00> : vector<32x32xf32>
    %6 = tpu.matmul %4, %5, %cst {dimension_numbers = #tpu.dot_dimension_numbers<[1], [0], [0], [1], [0, 0, 1, 1], [], []>} : vector<32x128xbf16>, vector<128x32xbf16>, vector<32x32xf32> -> vector<32x32xf32>
    %7 = arith.addf %3, %6 : vector<32x32xf32>
    %c0_6 = arith.constant 0 : index
    %c0_7 = arith.constant 0 : index
    %8 = vector.load %arg8[%c0_6, %c0_7] : memref<32x32xf32, #tpu.memory_space<vmem>>, vector<32x32xf32>
    tpu.vector_store %arg8[%c0_6, %c0_7], %7 {strides = array<i32>} : memref<32x32xf32, #tpu.memory_space<vmem>>, vector<32x32xf32>,
    %c0_i32_8 = arith.constant 0 : i32
    %9 = arith.cmpi eq, %arg2, %c0_i32_8 : i32
    %10 = arith.extui %9 : i1 to i32
    %c0_i32_9 = arith.constant 0 : i32
    %11 = arith.cmpi ne, %10, %c0_i32_9 : i32
    scf.if %11 {
      %c0_10 = arith.constant 0 : index
      %c0_11 = arith.constant 0 : index
      %12 = vector.load %arg8[%c0_10, %c0_11] : memref<32x32xf32, #tpu.memory_space<vmem>>, vector<32x32xf32>
      %c0_12 = arith.constant 0 : index
      %c0_13 = arith.constant 0 : index
      %13 = vector.load %arg5[%c0_12, %c0_13] : memref<1x32xf32, #tpu.memory_space<vmem>>, vector<1x32xf32>
      %14 = vector.broadcast %13 : vector<1x32xf32> to vector<32x32xf32>
      %15 = arith.mulf %12, %14 : vector<32x32xf32>
      %c0_14 = arith.constant 0 : index
      %c0_15 = arith.constant 0 : index
      %16 = vector.load %arg6[%c0_14, %c0_15] : memref<1x32xf32, #tpu.memory_space<vmem>>, vector<1x32xf32>
      %17 = vector.broadcast %16 : vector<1x32xf32> to vector<32x32xf32>
      %18 = arith.addf %15, %17 : vector<32x32xf32>
      %cst_16 = arith.constant 0.000000e+00 : f32
      %19 = vector.broadcast %cst_16 : f32 to vector<32x32xf32>
      %20 = arith.maximumf %18, %19 : vector<32x32xf32>
      %c0_17 = arith.constant 0 : index
      %c0_18 = arith.constant 0 : index
      %21 = vector.load %arg7[%c0_17, %c0_18] : memref<32x32xf32, #tpu.memory_space<vmem>>, vector<32x32xf32>
      tpu.vector_store %arg7[%c0_17, %c0_18], %20 {strides = array<i32>} : memref<32x32xf32, #tpu.memory_space<vmem>>, vector<32x32xf32>,
    } else {
    }
    return
  }
  func.func @transform_0(%arg0: i32, %arg1: i32, %arg2: i32) -> (i32, i32) {
    %c0_i32 = arith.constant 0 : i32
    return %arg0, %arg2 : i32, i32
  }
  func.func @transform_1(%arg0: i32, %arg1: i32, %arg2: i32) -> (i32, i32) {
    %c0_i32 = arith.constant 0 : i32
    return %arg2, %arg1 : i32, i32
  }
  func.func @transform_2(%arg0: i32, %arg1: i32, %arg2: i32) -> (i32, i32) {
    %c0_i32 = arith.constant 0 : i32
    %c0_i32_0 = arith.constant 0 : i32
    return %c0_i32, %arg1 : i32, i32
  }
  func.func @transform_3(%arg0: i32, %arg1: i32, %arg2: i32) -> (i32, i32) {
    %c0_i32 = arith.constant 0 : i32
    %c0_i32_0 = arith.constant 0 : i32
    return %c0_i32, %arg1 : i32, i32
  }
  func.func @transform_4(%arg0: i32, %arg1: i32, %arg2: i32) -> (i32, i32) {
    %c0_i32 = arith.constant 0 : i32
    return %arg0, %arg1 : i32, i32
  }
}

module attributes {stable_mosaic.version = 11 : i64} {
  func.func @_matmul_affine_kernel(%arg0: i32, %arg1: i32, %arg2: i32, %arg3: memref<32x64xbf16, #tpu.memory_space<vmem>>, %arg4: memref<64x32xbf16, #tpu.memory_space<vmem>>, %arg5: memref<1x32xf32, #tpu.memory_space<vmem>>, %arg6: memref<1x32xf32, #tpu.memory_space<vmem>>, %arg7: memref<32x32xf32, #tpu.memory_space<vmem>>, %arg8: memref<32x32xf32, #tpu.memory_space<vmem>>) attributes {dimension_semantics = [#tpu.dimension_semantics<parallel>, #tpu.dimension_semantics<parallel>, #tpu.dimension_semantics<arbitrary>], iteration_bounds = array<i64: 1, 1, 1>, scalar_prefetch = 0 : i64, scratch_operands = 1 : i64, tpu.core_type = #tpu.core_type<tc>, window_params = [{transform_indices = @transform_0, window_bounds = array<i64: 32, 64>}, {transform_indices = @transform_1, window_bounds = array<i64: 64, 32>}, {transform_indices = @transform_2, window_bounds = array<i64: 1, 32>}, {transform_indices = @transform_3, window_bounds = array<i64: 1, 32>}, {transform_indices = @transform_4, window_bounds = array<i64: 32, 32>}]} {
    %c0_i32 = arith.constant 0 : i32
    %0 = arith.cmpi eq, %arg2, %c0_i32 : i32
    %1 = arith.extui %0 : i1 to i32
    %c0_i32_0 = arith.constant 0 : i32
    %2 = arith.cmpi ne, %1, %c0_i32_0 : i32
    scf.if %2 {
      %cst_10 = arith.constant 0.000000e+00 : f32
      %12 = vector.broadcast %cst_10 : f32 to vector<32x32xf32>
      %c0_11 = arith.constant 0 : index
      %c0_12 = arith.constant 0 : index
      %13 = vector.load %arg8[%c0_11, %c0_12] : memref<32x32xf32, #tpu.memory_space<vmem>>, vector<32x32xf32>
      tpu.vector_store %arg8[%c0_11, %c0_12], %12 {strides = array<i32>} : memref<32x32xf32, #tpu.memory_space<vmem>>, vector<32x32xf32>,
    } else {
    }
    %c0 = arith.constant 0 : index
    %c0_1 = arith.constant 0 : index
    %3 = vector.load %arg8[%c0, %c0_1] : memref<32x32xf32, #tpu.memory_space<vmem>>, vector<32x32xf32>
    %c0_2 = arith.constant 0 : index
    %c0_3 = arith.constant 0 : index
    %4 = vector.load %arg3[%c0_2, %c0_3] : memref<32x64xbf16, #tpu.memory_space<vmem>>, vector<32x64xbf16>
    %c0_4 = arith.constant 0 : index
    %c0_5 = arith.constant 0 : index
    %5 = vector.load %arg4[%c0_4, %c0_5] : memref<64x32xbf16, #tpu.memory_space<vmem>>, vector<64x32xbf16>
    %cst = arith.constant dense<0.000000e+00> : vector<32x32xf32>
    %6 = tpu.matmul %4, %5, %cst {dimension_numbers = #tpu.dot_dimension_numbers<[1], [0], [0], [1], [0, 0, 1, 1], [], []>} : vector<32x64xbf16>, vector<64x32xbf16>, vector<32x32xf32> -> vector<32x32xf32>
    %7 = arith.addf %3, %6 : vector<32x32xf32>
    %c0_6 = arith.constant 0 : index
    %c0_7 = arith.constant 0 : index
    %8 = vector.load %arg8[%c0_6, %c0_7] : memref<32x32xf32, #tpu.memory_space<vmem>>, vector<32x32xf32>
    tpu.vector_store %arg8[%c0_6, %c0_7], %7 {strides = array<i32>} : memref<32x32xf32, #tpu.memory_space<vmem>>, vector<32x32xf32>,
    %c0_i32_8 = arith.constant 0 : i32
    %9 = arith.cmpi eq, %arg2, %c0_i32_8 : i32
    %10 = arith.extui %9 : i1 to i32
    %c0_i32_9 = arith.constant 0 : i32
    %11 = arith.cmpi ne, %10, %c0_i32_9 : i32
    scf.if %11 {
      %c0_10 = arith.constant 0 : index
      %c0_11 = arith.constant 0 : index
      %12 = vector.load %arg8[%c0_10, %c0_11] : memref<32x32xf32, #tpu.memory_space<vmem>>, vector<32x32xf32>
      %c0_12 = arith.constant 0 : index
      %c0_13 = arith.constant 0 : index
      %13 = vector.load %arg5[%c0_12, %c0_13] : memref<1x32xf32, #tpu.memory_space<vmem>>, vector<1x32xf32>
      %14 = vector.broadcast %13 : vector<1x32xf32> to vector<32x32xf32>
      %15 = arith.mulf %12, %14 : vector<32x32xf32>
      %c0_14 = arith.constant 0 : index
      %c0_15 = arith.constant 0 : index
      %16 = vector.load %arg6[%c0_14, %c0_15] : memref<1x32xf32, #tpu.memory_space<vmem>>, vector<1x32xf32>
      %17 = vector.broadcast %16 : vector<1x32xf32> to vector<32x32xf32>
      %18 = arith.addf %15, %17 : vector<32x32xf32>
      %cst_16 = arith.constant 0.000000e+00 : f32
      %19 = vector.broadcast %cst_16 : f32 to vector<32x32xf32>
      %20 = arith.maximumf %18, %19 : vector<32x32xf32>
      %c0_17 = arith.constant 0 : index
      %c0_18 = arith.constant 0 : index
      %21 = vector.load %arg7[%c0_17, %c0_18] : memref<32x32xf32, #tpu.memory_space<vmem>>, vector<32x32xf32>
      tpu.vector_store %arg7[%c0_17, %c0_18], %20 {strides = array<i32>} : memref<32x32xf32, #tpu.memory_space<vmem>>, vector<32x32xf32>,
    } else {
    }
    return
  }
  func.func @transform_0(%arg0: i32, %arg1: i32, %arg2: i32) -> (i32, i32) {
    %c0_i32 = arith.constant 0 : i32
    return %arg0, %arg2 : i32, i32
  }
  func.func @transform_1(%arg0: i32, %arg1: i32, %arg2: i32) -> (i32, i32) {
    %c0_i32 = arith.constant 0 : i32
    return %arg2, %arg1 : i32, i32
  }
  func.func @transform_2(%arg0: i32, %arg1: i32, %arg2: i32) -> (i32, i32) {
    %c0_i32 = arith.constant 0 : i32
    %c0_i32_0 = arith.constant 0 : i32
    return %c0_i32, %arg1 : i32, i32
  }
  func.func @transform_3(%arg0: i32, %arg1: i32, %arg2: i32) -> (i32, i32) {
    %c0_i32 = arith.constant 0 : i32
    %c0_i32_0 = arith.constant 0 : i32
    return %c0_i32, %arg1 : i32, i32
  }
  func.func @transform_4(%arg0: i32, %arg1: i32, %arg2: i32) -> (i32, i32) {
    %c0_i32 = arith.constant 0 : i32
    return %arg0, %arg1 : i32, i32
  }
}

module attributes {stable_mosaic.version = 11 : i64} {
  func.func @_matmul_affine_res_kernel(%arg0: i32, %arg1: i32, %arg2: i32, %arg3: memref<128x96xbf16, #tpu.memory_space<vmem>>, %arg4: memref<96x32xbf16, #tpu.memory_space<vmem>>, %arg5: memref<1x32xf32, #tpu.memory_space<vmem>>, %arg6: memref<1x32xf32, #tpu.memory_space<vmem>>, %arg7: memref<128x32xf32, #tpu.memory_space<vmem>>, %arg8: memref<128x32xf32, #tpu.memory_space<vmem>>, %arg9: memref<128x32xf32, #tpu.memory_space<vmem>>) attributes {dimension_semantics = [#tpu.dimension_semantics<parallel>, #tpu.dimension_semantics<parallel>, #tpu.dimension_semantics<arbitrary>], iteration_bounds = array<i64: 1, 1, 1>, scalar_prefetch = 0 : i64, scratch_operands = 1 : i64, tpu.core_type = #tpu.core_type<tc>, window_params = [{transform_indices = @transform_0, window_bounds = array<i64: 128, 96>}, {transform_indices = @transform_1, window_bounds = array<i64: 96, 32>}, {transform_indices = @transform_2, window_bounds = array<i64: 1, 32>}, {transform_indices = @transform_3, window_bounds = array<i64: 1, 32>}, {transform_indices = @transform_4, window_bounds = array<i64: 128, 32>}, {transform_indices = @transform_5, window_bounds = array<i64: 128, 32>}]} {
    %c0_i32 = arith.constant 0 : i32
    %0 = arith.cmpi eq, %arg2, %c0_i32 : i32
    %1 = arith.extui %0 : i1 to i32
    %c0_i32_0 = arith.constant 0 : i32
    %2 = arith.cmpi ne, %1, %c0_i32_0 : i32
    scf.if %2 {
      %cst_10 = arith.constant 0.000000e+00 : f32
      %12 = vector.broadcast %cst_10 : f32 to vector<128x32xf32>
      %c0_11 = arith.constant 0 : index
      %c0_12 = arith.constant 0 : index
      %13 = vector.load %arg9[%c0_11, %c0_12] : memref<128x32xf32, #tpu.memory_space<vmem>>, vector<128x32xf32>
      tpu.vector_store %arg9[%c0_11, %c0_12], %12 {strides = array<i32>} : memref<128x32xf32, #tpu.memory_space<vmem>>, vector<128x32xf32>,
    } else {
    }
    %c0 = arith.constant 0 : index
    %c0_1 = arith.constant 0 : index
    %3 = vector.load %arg9[%c0, %c0_1] : memref<128x32xf32, #tpu.memory_space<vmem>>, vector<128x32xf32>
    %c0_2 = arith.constant 0 : index
    %c0_3 = arith.constant 0 : index
    %4 = vector.load %arg3[%c0_2, %c0_3] : memref<128x96xbf16, #tpu.memory_space<vmem>>, vector<128x96xbf16>
    %c0_4 = arith.constant 0 : index
    %c0_5 = arith.constant 0 : index
    %5 = vector.load %arg4[%c0_4, %c0_5] : memref<96x32xbf16, #tpu.memory_space<vmem>>, vector<96x32xbf16>
    %cst = arith.constant dense<0.000000e+00> : vector<128x32xf32>
    %6 = tpu.matmul %4, %5, %cst {dimension_numbers = #tpu.dot_dimension_numbers<[1], [0], [0], [1], [0, 0, 1, 1], [], []>} : vector<128x96xbf16>, vector<96x32xbf16>, vector<128x32xf32> -> vector<128x32xf32>
    %7 = arith.addf %3, %6 : vector<128x32xf32>
    %c0_6 = arith.constant 0 : index
    %c0_7 = arith.constant 0 : index
    %8 = vector.load %arg9[%c0_6, %c0_7] : memref<128x32xf32, #tpu.memory_space<vmem>>, vector<128x32xf32>
    tpu.vector_store %arg9[%c0_6, %c0_7], %7 {strides = array<i32>} : memref<128x32xf32, #tpu.memory_space<vmem>>, vector<128x32xf32>,
    %c0_i32_8 = arith.constant 0 : i32
    %9 = arith.cmpi eq, %arg2, %c0_i32_8 : i32
    %10 = arith.extui %9 : i1 to i32
    %c0_i32_9 = arith.constant 0 : i32
    %11 = arith.cmpi ne, %10, %c0_i32_9 : i32
    scf.if %11 {
      %c0_10 = arith.constant 0 : index
      %c0_11 = arith.constant 0 : index
      %12 = vector.load %arg9[%c0_10, %c0_11] : memref<128x32xf32, #tpu.memory_space<vmem>>, vector<128x32xf32>
      %c0_12 = arith.constant 0 : index
      %c0_13 = arith.constant 0 : index
      %13 = vector.load %arg5[%c0_12, %c0_13] : memref<1x32xf32, #tpu.memory_space<vmem>>, vector<1x32xf32>
      %14 = vector.broadcast %13 : vector<1x32xf32> to vector<128x32xf32>
      %15 = arith.mulf %12, %14 : vector<128x32xf32>
      %c0_14 = arith.constant 0 : index
      %c0_15 = arith.constant 0 : index
      %16 = vector.load %arg6[%c0_14, %c0_15] : memref<1x32xf32, #tpu.memory_space<vmem>>, vector<1x32xf32>
      %17 = vector.broadcast %16 : vector<1x32xf32> to vector<128x32xf32>
      %18 = arith.addf %15, %17 : vector<128x32xf32>
      %c0_16 = arith.constant 0 : index
      %c0_17 = arith.constant 0 : index
      %19 = vector.load %arg7[%c0_16, %c0_17] : memref<128x32xf32, #tpu.memory_space<vmem>>, vector<128x32xf32>
      %20 = arith.addf %18, %19 : vector<128x32xf32>
      %cst_18 = arith.constant 0.000000e+00 : f32
      %21 = vector.broadcast %cst_18 : f32 to vector<128x32xf32>
      %22 = arith.maximumf %20, %21 : vector<128x32xf32>
      %c0_19 = arith.constant 0 : index
      %c0_20 = arith.constant 0 : index
      %23 = vector.load %arg8[%c0_19, %c0_20] : memref<128x32xf32, #tpu.memory_space<vmem>>, vector<128x32xf32>
      tpu.vector_store %arg8[%c0_19, %c0_20], %22 {strides = array<i32>} : memref<128x32xf32, #tpu.memory_space<vmem>>, vector<128x32xf32>,
    } else {
    }
    return
  }
  func.func @transform_0(%arg0: i32, %arg1: i32, %arg2: i32) -> (i32, i32) {
    %c0_i32 = arith.constant 0 : i32
    return %arg0, %arg2 : i32, i32
  }
  func.func @transform_1(%arg0: i32, %arg1: i32, %arg2: i32) -> (i32, i32) {
    %c0_i32 = arith.constant 0 : i32
    return %arg2, %arg1 : i32, i32
  }
  func.func @transform_2(%arg0: i32, %arg1: i32, %arg2: i32) -> (i32, i32) {
    %c0_i32 = arith.constant 0 : i32
    %c0_i32_0 = arith.constant 0 : i32
    return %c0_i32, %arg1 : i32, i32
  }
  func.func @transform_3(%arg0: i32, %arg1: i32, %arg2: i32) -> (i32, i32) {
    %c0_i32 = arith.constant 0 : i32
    %c0_i32_0 = arith.constant 0 : i32
    return %c0_i32, %arg1 : i32, i32
  }
  func.func @transform_4(%arg0: i32, %arg1: i32, %arg2: i32) -> (i32, i32) {
    %c0_i32 = arith.constant 0 : i32
    return %arg0, %arg1 : i32, i32
  }
  func.func @transform_5(%arg0: i32, %arg1: i32, %arg2: i32) -> (i32, i32) {
    %c0_i32 = arith.constant 0 : i32
    return %arg0, %arg1 : i32, i32
  }
}

module attributes {stable_mosaic.version = 11 : i64} {
  func.func @_matmul_affine_kernel(%arg0: i32, %arg1: i32, %arg2: i32, %arg3: memref<128x32xbf16, #tpu.memory_space<vmem>>, %arg4: memref<32x1xbf16, #tpu.memory_space<vmem>>, %arg5: memref<1x1xf32, #tpu.memory_space<vmem>>, %arg6: memref<1x1xf32, #tpu.memory_space<vmem>>, %arg7: memref<128x1xf32, #tpu.memory_space<vmem>>, %arg8: memref<128x1xf32, #tpu.memory_space<vmem>>) attributes {dimension_semantics = [#tpu.dimension_semantics<parallel>, #tpu.dimension_semantics<parallel>, #tpu.dimension_semantics<arbitrary>], iteration_bounds = array<i64: 1, 1, 1>, scalar_prefetch = 0 : i64, scratch_operands = 1 : i64, tpu.core_type = #tpu.core_type<tc>, window_params = [{transform_indices = @transform_0, window_bounds = array<i64: 128, 32>}, {transform_indices = @transform_1, window_bounds = array<i64: 32, 1>}, {transform_indices = @transform_2, window_bounds = array<i64: 1, 1>}, {transform_indices = @transform_3, window_bounds = array<i64: 1, 1>}, {transform_indices = @transform_4, window_bounds = array<i64: 128, 1>}]} {
    %c0_i32 = arith.constant 0 : i32
    %0 = arith.cmpi eq, %arg2, %c0_i32 : i32
    %1 = arith.extui %0 : i1 to i32
    %c0_i32_0 = arith.constant 0 : i32
    %2 = arith.cmpi ne, %1, %c0_i32_0 : i32
    scf.if %2 {
      %cst_10 = arith.constant 0.000000e+00 : f32
      %12 = vector.broadcast %cst_10 : f32 to vector<128x1xf32>
      %c0_11 = arith.constant 0 : index
      %c0_12 = arith.constant 0 : index
      %13 = vector.load %arg8[%c0_11, %c0_12] : memref<128x1xf32, #tpu.memory_space<vmem>>, vector<128x1xf32>
      tpu.vector_store %arg8[%c0_11, %c0_12], %12 {strides = array<i32>} : memref<128x1xf32, #tpu.memory_space<vmem>>, vector<128x1xf32>,
    } else {
    }
    %c0 = arith.constant 0 : index
    %c0_1 = arith.constant 0 : index
    %3 = vector.load %arg8[%c0, %c0_1] : memref<128x1xf32, #tpu.memory_space<vmem>>, vector<128x1xf32>
    %c0_2 = arith.constant 0 : index
    %c0_3 = arith.constant 0 : index
    %4 = vector.load %arg3[%c0_2, %c0_3] : memref<128x32xbf16, #tpu.memory_space<vmem>>, vector<128x32xbf16>
    %c0_4 = arith.constant 0 : index
    %c0_5 = arith.constant 0 : index
    %5 = vector.load %arg4[%c0_4, %c0_5] : memref<32x1xbf16, #tpu.memory_space<vmem>>, vector<32x1xbf16>
    %cst = arith.constant dense<0.000000e+00> : vector<128x1xf32>
    %6 = tpu.matmul %4, %5, %cst {dimension_numbers = #tpu.dot_dimension_numbers<[1], [0], [0], [1], [0, 0, 1, 1], [], []>} : vector<128x32xbf16>, vector<32x1xbf16>, vector<128x1xf32> -> vector<128x1xf32>
    %7 = arith.addf %3, %6 : vector<128x1xf32>
    %c0_6 = arith.constant 0 : index
    %c0_7 = arith.constant 0 : index
    %8 = vector.load %arg8[%c0_6, %c0_7] : memref<128x1xf32, #tpu.memory_space<vmem>>, vector<128x1xf32>
    tpu.vector_store %arg8[%c0_6, %c0_7], %7 {strides = array<i32>} : memref<128x1xf32, #tpu.memory_space<vmem>>, vector<128x1xf32>,
    %c0_i32_8 = arith.constant 0 : i32
    %9 = arith.cmpi eq, %arg2, %c0_i32_8 : i32
    %10 = arith.extui %9 : i1 to i32
    %c0_i32_9 = arith.constant 0 : i32
    %11 = arith.cmpi ne, %10, %c0_i32_9 : i32
    scf.if %11 {
      %c0_10 = arith.constant 0 : index
      %c0_11 = arith.constant 0 : index
      %12 = vector.load %arg8[%c0_10, %c0_11] : memref<128x1xf32, #tpu.memory_space<vmem>>, vector<128x1xf32>
      %c0_12 = arith.constant 0 : index
      %c0_13 = arith.constant 0 : index
      %13 = vector.load %arg5[%c0_12, %c0_13] : memref<1x1xf32, #tpu.memory_space<vmem>>, vector<1x1xf32>
      %14 = vector.broadcast %13 : vector<1x1xf32> to vector<128x1xf32>
      %15 = arith.mulf %12, %14 : vector<128x1xf32>
      %c0_14 = arith.constant 0 : index
      %c0_15 = arith.constant 0 : index
      %16 = vector.load %arg6[%c0_14, %c0_15] : memref<1x1xf32, #tpu.memory_space<vmem>>, vector<1x1xf32>
      %17 = vector.broadcast %16 : vector<1x1xf32> to vector<128x1xf32>
      %18 = arith.addf %15, %17 : vector<128x1xf32>
      %c0_16 = arith.constant 0 : index
      %c0_17 = arith.constant 0 : index
      %19 = vector.load %arg7[%c0_16, %c0_17] : memref<128x1xf32, #tpu.memory_space<vmem>>, vector<128x1xf32>
      tpu.vector_store %arg7[%c0_16, %c0_17], %18 {strides = array<i32>} : memref<128x1xf32, #tpu.memory_space<vmem>>, vector<128x1xf32>,
    } else {
    }
    return
  }
  func.func @transform_0(%arg0: i32, %arg1: i32, %arg2: i32) -> (i32, i32) {
    %c0_i32 = arith.constant 0 : i32
    return %arg0, %arg2 : i32, i32
  }
  func.func @transform_1(%arg0: i32, %arg1: i32, %arg2: i32) -> (i32, i32) {
    %c0_i32 = arith.constant 0 : i32
    return %arg2, %arg1 : i32, i32
  }
  func.func @transform_2(%arg0: i32, %arg1: i32, %arg2: i32) -> (i32, i32) {
    %c0_i32 = arith.constant 0 : i32
    %c0_i32_0 = arith.constant 0 : i32
    return %c0_i32, %arg1 : i32, i32
  }
  func.func @transform_3(%arg0: i32, %arg1: i32, %arg2: i32) -> (i32, i32) {
    %c0_i32 = arith.constant 0 : i32
    %c0_i32_0 = arith.constant 0 : i32
    return %c0_i32, %arg1 : i32, i32
  }
  func.func @transform_4(%arg0: i32, %arg1: i32, %arg2: i32) -> (i32, i32) {
    %c0_i32 = arith.constant 0 : i32
    return %arg0, %arg1 : i32, i32
  }
}

module attributes {stable_mosaic.version = 11 : i64} {
  func.func @_matmul_affine_kernel(%arg0: i32, %arg1: i32, %arg2: i32, %arg3: memref<128x96xbf16, #tpu.memory_space<vmem>>, %arg4: memref<96x32xbf16, #tpu.memory_space<vmem>>, %arg5: memref<1x32xf32, #tpu.memory_space<vmem>>, %arg6: memref<1x32xf32, #tpu.memory_space<vmem>>, %arg7: memref<128x32xf32, #tpu.memory_space<vmem>>, %arg8: memref<128x32xf32, #tpu.memory_space<vmem>>) attributes {dimension_semantics = [#tpu.dimension_semantics<parallel>, #tpu.dimension_semantics<parallel>, #tpu.dimension_semantics<arbitrary>], iteration_bounds = array<i64: 1, 1, 1>, scalar_prefetch = 0 : i64, scratch_operands = 1 : i64, tpu.core_type = #tpu.core_type<tc>, window_params = [{transform_indices = @transform_0, window_bounds = array<i64: 128, 96>}, {transform_indices = @transform_1, window_bounds = array<i64: 96, 32>}, {transform_indices = @transform_2, window_bounds = array<i64: 1, 32>}, {transform_indices = @transform_3, window_bounds = array<i64: 1, 32>}, {transform_indices = @transform_4, window_bounds = array<i64: 128, 32>}]} {
    %c0_i32 = arith.constant 0 : i32
    %0 = arith.cmpi eq, %arg2, %c0_i32 : i32
    %1 = arith.extui %0 : i1 to i32
    %c0_i32_0 = arith.constant 0 : i32
    %2 = arith.cmpi ne, %1, %c0_i32_0 : i32
    scf.if %2 {
      %cst_10 = arith.constant 0.000000e+00 : f32
      %12 = vector.broadcast %cst_10 : f32 to vector<128x32xf32>
      %c0_11 = arith.constant 0 : index
      %c0_12 = arith.constant 0 : index
      %13 = vector.load %arg8[%c0_11, %c0_12] : memref<128x32xf32, #tpu.memory_space<vmem>>, vector<128x32xf32>
      tpu.vector_store %arg8[%c0_11, %c0_12], %12 {strides = array<i32>} : memref<128x32xf32, #tpu.memory_space<vmem>>, vector<128x32xf32>,
    } else {
    }
    %c0 = arith.constant 0 : index
    %c0_1 = arith.constant 0 : index
    %3 = vector.load %arg8[%c0, %c0_1] : memref<128x32xf32, #tpu.memory_space<vmem>>, vector<128x32xf32>
    %c0_2 = arith.constant 0 : index
    %c0_3 = arith.constant 0 : index
    %4 = vector.load %arg3[%c0_2, %c0_3] : memref<128x96xbf16, #tpu.memory_space<vmem>>, vector<128x96xbf16>
    %c0_4 = arith.constant 0 : index
    %c0_5 = arith.constant 0 : index
    %5 = vector.load %arg4[%c0_4, %c0_5] : memref<96x32xbf16, #tpu.memory_space<vmem>>, vector<96x32xbf16>
    %cst = arith.constant dense<0.000000e+00> : vector<128x32xf32>
    %6 = tpu.matmul %4, %5, %cst {dimension_numbers = #tpu.dot_dimension_numbers<[1], [0], [0], [1], [0, 0, 1, 1], [], []>} : vector<128x96xbf16>, vector<96x32xbf16>, vector<128x32xf32> -> vector<128x32xf32>
    %7 = arith.addf %3, %6 : vector<128x32xf32>
    %c0_6 = arith.constant 0 : index
    %c0_7 = arith.constant 0 : index
    %8 = vector.load %arg8[%c0_6, %c0_7] : memref<128x32xf32, #tpu.memory_space<vmem>>, vector<128x32xf32>
    tpu.vector_store %arg8[%c0_6, %c0_7], %7 {strides = array<i32>} : memref<128x32xf32, #tpu.memory_space<vmem>>, vector<128x32xf32>,
    %c0_i32_8 = arith.constant 0 : i32
    %9 = arith.cmpi eq, %arg2, %c0_i32_8 : i32
    %10 = arith.extui %9 : i1 to i32
    %c0_i32_9 = arith.constant 0 : i32
    %11 = arith.cmpi ne, %10, %c0_i32_9 : i32
    scf.if %11 {
      %c0_10 = arith.constant 0 : index
      %c0_11 = arith.constant 0 : index
      %12 = vector.load %arg8[%c0_10, %c0_11] : memref<128x32xf32, #tpu.memory_space<vmem>>, vector<128x32xf32>
      %c0_12 = arith.constant 0 : index
      %c0_13 = arith.constant 0 : index
      %13 = vector.load %arg5[%c0_12, %c0_13] : memref<1x32xf32, #tpu.memory_space<vmem>>, vector<1x32xf32>
      %14 = vector.broadcast %13 : vector<1x32xf32> to vector<128x32xf32>
      %15 = arith.mulf %12, %14 : vector<128x32xf32>
      %c0_14 = arith.constant 0 : index
      %c0_15 = arith.constant 0 : index
      %16 = vector.load %arg6[%c0_14, %c0_15] : memref<1x32xf32, #tpu.memory_space<vmem>>, vector<1x32xf32>
      %17 = vector.broadcast %16 : vector<1x32xf32> to vector<128x32xf32>
      %18 = arith.addf %15, %17 : vector<128x32xf32>
      %cst_16 = arith.constant 0.000000e+00 : f32
      %19 = vector.broadcast %cst_16 : f32 to vector<128x32xf32>
      %20 = arith.maximumf %18, %19 : vector<128x32xf32>
      %c0_17 = arith.constant 0 : index
      %c0_18 = arith.constant 0 : index
      %21 = vector.load %arg7[%c0_17, %c0_18] : memref<128x32xf32, #tpu.memory_space<vmem>>, vector<128x32xf32>
      tpu.vector_store %arg7[%c0_17, %c0_18], %20 {strides = array<i32>} : memref<128x32xf32, #tpu.memory_space<vmem>>, vector<128x32xf32>,
    } else {
    }
    return
  }
  func.func @transform_0(%arg0: i32, %arg1: i32, %arg2: i32) -> (i32, i32) {
    %c0_i32 = arith.constant 0 : i32
    return %arg0, %arg2 : i32, i32
  }
  func.func @transform_1(%arg0: i32, %arg1: i32, %arg2: i32) -> (i32, i32) {
    %c0_i32 = arith.constant 0 : i32
    return %arg2, %arg1 : i32, i32
  }
  func.func @transform_2(%arg0: i32, %arg1: i32, %arg2: i32) -> (i32, i32) {
    %c0_i32 = arith.constant 0 : i32
    %c0_i32_0 = arith.constant 0 : i32
    return %c0_i32, %arg1 : i32, i32
  }
  func.func @transform_3(%arg0: i32, %arg1: i32, %arg2: i32) -> (i32, i32) {
    %c0_i32 = arith.constant 0 : i32
    %c0_i32_0 = arith.constant 0 : i32
    return %c0_i32, %arg1 : i32, i32
  }
  func.func @transform_4(%arg0: i32, %arg1: i32, %arg2: i32) -> (i32, i32) {
    %c0_i32 = arith.constant 0 : i32
    return %arg0, %arg1 : i32, i32
  }
}

</mosaic_0001>

<bundles_post_ra>
// kernel: _lambda_.86
= control target key start
LH: loop header
LB: loop body
LE: loop exit
PB: predicated region body
PF: predicated region fallthrough
CT: control target
= control target key end

     0   :  { %vm22_vm0 = vcmask 121856   ;;  %v433_v1 = vmov 0.0   ;;  %vm119_vm1 = vcmask 130048   ;;  %s632_s1 = inlined_call_operand.vmem [shape: bf16[16,15], index: 1, kind: input, shape index: {}]   ;;  %s633_s0 = inlined_call_operand.vmem [shape: bf16[128,16], index: 0, kind: input, shape index: {}]   ;;  %s634_s2 = inlined_call_operand.vmem [shape: f32[1,15], index: 2, kind: input, shape index: {}]   ;;  %s635_s3 = inlined_call_operand.vmem [shape: f32[1,15], index: 3, kind: input, shape index: {}]   ;;  %s636_s4 = inlined_call_operand.vmem [shape: f32[128,15], index: 4, kind: output, shape index: {}]  }
   0x1   :  { %v424_v0 = vld [vmem:[%s632_s1] sm:$0xff]   ;;  %25 = vst.msk [vmem:[#allocation2 + $0x10] sm:$0xff] %vm22_vm0, %v433_v1  ;;  %23 = vst.msk [vmem:[#allocation2] sm:$0xff] %vm22_vm0, %v433_v1  ;;  %v427_v4 = vld [vmem:[%s633_s0 + $0x8] sm:$0xff]  }
   0x2   :  { %24 = vst.msk [vmem:[#allocation2 + $0x8] sm:$0xff] %vm22_vm0, %v433_v1  ;;  %26 = vst.msk [vmem:[#allocation2 + $0x18] sm:$0xff] %vm22_vm0, %v433_v1  ;;  %v425_v2 = vld [vmem:[%s633_s0] sm:$0xff]   ;;  %403 = vmatprep.subr.bf16.mxu0 %v424_v0  ;;  %421 = vmatprep.subr.bf16.mxu1 %v424_v0  ;;  %v428_v5 = vld [vmem:[%s633_s0 + $0x28] sm:$0xff]  }
   0x3   :  { %27 = vst.msk [vmem:[#allocation2 + $0x20] sm:$0xff] %vm22_vm0, %v433_v1  ;;  %28 = vst.msk [vmem:[#allocation2 + $0x28] sm:$0xff] %vm22_vm0, %v433_v1  ;;  %v426_v3 = vld [vmem:[%s633_s0 + $0x20] sm:$0xff]   ;;  %404 = vmatpush3.bf16.msra.mxu0 %v424_v0  ;;  %422 = vmatpush3.bf16.msra.mxu1 %v424_v0  ;;  %v429_v6 = vld [vmem:[%s633_s0 + $0x10] sm:$0xff]  }
   0x4   :  { %29 = vst.msk [vmem:[#allocation2 + $0x30] sm:$0xff] %vm22_vm0, %v433_v1  ;;  %30 = vst.msk [vmem:[#allocation2 + $0x38] sm:$0xff] %vm22_vm0, %v433_v1  ;;  %405 = vmatprep.mubr.msk.bf16.mxu0 %vm119_vm1, %v425_v2  ;;  %413 = vmatprep.mubr.msk.bf16.mxu1 %vm119_vm1, %v426_v3  ;;  %v430_v7 = vld [vmem:[%s633_s0 + $0x30] sm:$0xff]   ;;  %v431_v8 = vld [vmem:[%s633_s0 + $0x18] sm:$0xff]  }
   0x5   :  { %31 = vst.msk [vmem:[#allocation2 + $0x40] sm:$0xff] %vm22_vm0, %v433_v1  ;;  %32 = vst.msk [vmem:[#allocation2 + $0x48] sm:$0xff] %vm22_vm0, %v433_v1  ;;  %v432_v9 = vld [vmem:[%s633_s0 + $0x38] sm:$0xff]   ;;  %v521_v38 = vld [vmem:[%s634_s2] ss:$0 sm:$0xff] }
   0x6   :  { %33 = vst.msk [vmem:[#allocation2 + $0x50] sm:$0xff] %vm22_vm0, %v433_v1  ;;  %34 = vst.msk [vmem:[#allocation2 + $0x58] sm:$0xff] %vm22_vm0, %v433_v1  ;;  %406 = vmatmul.mubr.msk.bf16.vlgmr.msra.gmra.mrb[0].mxu0 %vm119_vm1, %v427_v4  ;;  %414 = vmatmul.mubr.msk.bf16.vlgmr.msra.gmra.mrb[0].mxu1 %vm119_vm1, %v428_v5  ;;  %v526_v50 = vld [vmem:[%s635_s3] ss:$0 sm:$0xff] }
   0x7   :  { %35 = vst.msk [vmem:[#allocation2 + $0x60] sm:$0xff] %vm22_vm0, %v433_v1  ;;  %36 = vst.msk [vmem:[#allocation2 + $0x68] sm:$0xff] %vm22_vm0, %v433_v1  ;;  %409 = vmatprep.mubr.msk.bf16.mxu0 %vm119_vm1, %v429_v6  ;;  %417 = vmatprep.mubr.msk.bf16.mxu1 %vm119_vm1, %v430_v7 }
   0x8   :  { %37 = vst.msk [vmem:[#allocation2 + $0x70] sm:$0xff] %vm22_vm0, %v433_v1  ;;  %38 = vst.msk [vmem:[#allocation2 + $0x78] sm:$0xff] %vm22_vm0, %v433_v1  ;;  %v41_v10 = vld [vmem:[#allocation2 + $0x10] sm:$0xff]  ;;  %v39_v12 = vld [vmem:[#allocation2] sm:$0xff] }
   0x9   :  { %v42_v16 = vld [vmem:[#allocation2 + $0x18] sm:$0xff]  ;;  %v40_v22 = vld [vmem:[#allocation2 + $0x8] sm:$0xff] }
   0xa   :  { %v43_v36 = vld [vmem:[#allocation2 + $0x20] sm:$0xff]  ;;  %v44_v47 = vld [vmem:[#allocation2 + $0x28] sm:$0xff] }
   0xb   :  { %v45_v34 = vld [vmem:[#allocation2 + $0x30] sm:$0xff]  ;;  %v46_v41 = vld [vmem:[#allocation2 + $0x38] sm:$0xff] }
   0xc   :  { %v47_v13 = vld [vmem:[#allocation2 + $0x40] sm:$0xff]  ;;  %v48_v23 = vld [vmem:[#allocation2 + $0x48] sm:$0xff] }
   0xd   :  { %v49_v11 = vld [vmem:[#allocation2 + $0x50] sm:$0xff]  ;;  %v50_v17 = vld [vmem:[#allocation2 + $0x58] sm:$0xff] }
   0xe   :  { %410 = vmatmul.mubr.msk.bf16.gmra.mrb[4].mxu0 %vm119_vm1, %v431_v8  ;;  %418 = vmatmul.mubr.msk.bf16.gmra.mrb[4].mxu1 %vm119_vm1, %v432_v9  ;;  %v51_v37 = vld [vmem:[#allocation2 + $0x60] sm:$0xff]  ;;  %v52_v48 = vld [vmem:[#allocation2 + $0x68] sm:$0xff] }
   0xf   :  { %v53_v35 = vld [vmem:[#allocation2 + $0x70] sm:$0xff]  ;;  %v54_v42 = vld [vmem:[#allocation2 + $0x78] sm:$0xff] }
  0xd9   :  { %v407_v14 = vpop.f32.mrb[0].mxu0  ;;  %v415_v15 = vpop.f32.mrb[0].mxu1 }
  0xda   :  { %v243_v18 = vadd.f32 %v407_v14, %v41_v10  ;;  %v251_v19 = vadd.f32 %v415_v15, %v49_v11  ;;  %v178_v20 = vpop.f32.mrb[1].mxu0  ;;  %v210_v21 = vpop.f32.mrb[1].mxu1 }
  0xdb   :  { %v241_v24 = vadd.f32 %v178_v20, %v39_v12  ;;  %v249_v25 = vadd.f32 %v210_v21, %v47_v13  ;;  %v408_v26 = vpop.f32.mrb[2].mxu0  ;;  %v416_v27 = vpop.f32.mrb[2].mxu1 }
  0xdc   :  { %260 = vst.msk [vmem:[#allocation2 + $0x10] sm:$0xff] %vm22_vm0, %v243_v18  ;;  %268 = vst.msk [vmem:[#allocation2 + $0x50] sm:$0xff] %vm22_vm0, %v251_v19  ;;  %v244_v28 = vadd.f32 %v408_v26, %v42_v16  ;;  %v252_v29 = vadd.f32 %v416_v27, %v50_v17  ;;  %v181_v30 = vpop.f32.mrb[3].mxu0  ;;  %v213_v31 = vpop.f32.mrb[3].mxu1 }
  0xdd   :  { %258 = vst.msk [vmem:[#allocation2] sm:$0xff] %vm22_vm0, %v241_v24  ;;  %266 = vst.msk [vmem:[#allocation2 + $0x40] sm:$0xff] %vm22_vm0, %v249_v25  ;;  %v242_v32 = vadd.f32 %v181_v30, %v40_v22  ;;  %v250_v33 = vadd.f32 %v213_v31, %v48_v23 }
  0xde   :  { %261 = vst.msk [vmem:[#allocation2 + $0x18] sm:$0xff] %vm22_vm0, %v244_v28  ;;  %269 = vst.msk [vmem:[#allocation2 + $0x58] sm:$0xff] %vm22_vm0, %v252_v29 }
  0xdf   :  { %259 = vst.msk [vmem:[#allocation2 + $0x8] sm:$0xff] %vm22_vm0, %v242_v32  ;;  %267 = vst.msk [vmem:[#allocation2 + $0x48] sm:$0xff] %vm22_vm0, %v250_v33 }
  0xe1   :  { %v411_v39 = vpop.f32.mrb[4].mxu0  ;;  %v419_v40 = vpop.f32.mrb[4].mxu1 }
  0xe2   :  { %v247_v43 = vadd.f32 %v411_v39, %v45_v34  ;;  %v255_v44 = vadd.f32 %v419_v40, %v53_v35  ;;  %v194_v45 = vpop.f32.mrb[5].mxu0  ;;  %v226_v46 = vpop.f32.mrb[5].mxu1 }
  0xe3   :  { %v279_v49 = vld [vmem:[#allocation2 + $0x10] sm:$0xff]  ;;  %v245_v52 = vadd.f32 %v194_v45, %v43_v36  ;;  %v253_v53 = vadd.f32 %v226_v46, %v51_v37  ;;  %v412_v54 = vpop.f32.mrb[6].mxu0  ;;  %v420_v55 = vpop.f32.mrb[6].mxu1 }
  0xe4   :  { %v287_v51 = vld [vmem:[#allocation2 + $0x50] sm:$0xff]  ;;  %v302_v56 = vmul.f32 %v521_v38, %v279_v49  ;;  %v277_v58 = vld [vmem:[#allocation2] sm:$0xff]  ;;  %264 = vst.msk [vmem:[#allocation2 + $0x30] sm:$0xff] %vm22_vm0, %v247_v43  ;;  %272 = vst.msk [vmem:[#allocation2 + $0x70] sm:$0xff] %vm22_vm0, %v255_v44  ;;  %v248_v60 = vadd.f32 %v412_v54, %v46_v41  ;;  %v256_v61 = vadd.f32 %v420_v55, %v54_v42  ;;  %v197_v62 = vpop.f32.mrb[7].mxu0  ;;  %v229_v63 = vpop.f32.mrb[7].mxu1 }
  0xe5   :  { %v310_v57 = vmul.f32 %v521_v38, %v287_v51  ;;  %v285_v59 = vld [vmem:[#allocation2 + $0x40] sm:$0xff]  ;;  %v300_v0 = vmul.f32 %v521_v38, %v277_v58  ;;  %v280_v2 = vld [vmem:[#allocation2 + $0x18] sm:$0xff]  ;;  %262 = vst.msk [vmem:[#allocation2 + $0x20] sm:$0xff] %vm22_vm0, %v245_v52  ;;  %270 = vst.msk [vmem:[#allocation2 + $0x60] sm:$0xff] %vm22_vm0, %v253_v53  ;;  %v246_v4 = vadd.f32 %v197_v62, %v44_v47 }
  0xe6   :  { %v308_v1 = vmul.f32 %v521_v38, %v285_v59  ;;  %v288_v3 = vld [vmem:[#allocation2 + $0x58] sm:$0xff]  ;;  %v254_v5 = vadd.f32 %v229_v63, %v52_v48  ;;  %v325_v6 = vadd.f32 %v526_v50, %v302_v56  ;;  %v303_v8 = vmul.f32 %v521_v38, %v280_v2  ;;  %v278_v10 = vld [vmem:[#allocation2 + $0x8] sm:$0xff]  ;;  %265 = vst.msk [vmem:[#allocation2 + $0x38] sm:$0xff] %vm22_vm0, %v248_v60 }
  0xe7   :  { %v333_v7 = vadd.f32 %v526_v50, %v310_v57  ;;  %v311_v9 = vmul.f32 %v521_v38, %v288_v3  ;;  %v286_v11 = vld [vmem:[#allocation2 + $0x48] sm:$0xff]  ;;  %273 = vst.msk [vmem:[#allocation2 + $0x78] sm:$0xff] %vm22_vm0, %v256_v61  ;;  %v323_v12 = vadd.f32 %v526_v50, %v300_v0  ;;  %v301_v14 = vmul.f32 %v521_v38, %v278_v10 }
  0xe8   :  { %v331_v13 = vadd.f32 %v526_v50, %v308_v1  ;;  %v309_v15 = vmul.f32 %v521_v38, %v286_v11  ;;  %263 = vst.msk [vmem:[#allocation2 + $0x28] sm:$0xff] %vm22_vm0, %v246_v4  ;;  %271 = vst.msk [vmem:[#allocation2 + $0x68] sm:$0xff] %vm22_vm0, %v254_v5  ;;  %v341_v16 = vmax.f32 %v325_v6, 0.0  ;;  %v326_v18 = vadd.f32 %v526_v50, %v303_v8 }
  0xe9   :  { %v349_v17 = vmax.f32 %v333_v7, 0.0  ;;  %v334_v19 = vadd.f32 %v526_v50, %v311_v9  ;;  %v339_v20 = vmax.f32 %v323_v12, 0.0  ;;  %v324_v22 = vadd.f32 %v526_v50, %v301_v14 }
  0xea   :  { %v347_v21 = vmax.f32 %v331_v13, 0.0  ;;  %v332_v23 = vadd.f32 %v526_v50, %v309_v15  ;;  %357 = vst.msk [vmem:[%s636_s4 + $0x10] sm:$0xff] %vm22_vm0, %v341_v16  ;;  %v342_v24 = vmax.f32 %v326_v18, 0.0 }
  0xeb   :  { %365 = vst.msk [vmem:[%s636_s4 + $0x50] sm:$0xff] %vm22_vm0, %v349_v17  ;;  %v350_v25 = vmax.f32 %v334_v19, 0.0  ;;  %355 = vst.msk [vmem:[%s636_s4] sm:$0xff] %vm22_vm0, %v339_v20  ;;  %v340_v26 = vmax.f32 %v324_v22, 0.0  ;;  %v283_v28 = vld [vmem:[#allocation2 + $0x30] sm:$0xff] }
  0xec   :  { %363 = vst.msk [vmem:[%s636_s4 + $0x40] sm:$0xff] %vm22_vm0, %v347_v21  ;;  %v348_v27 = vmax.f32 %v332_v23, 0.0  ;;  %v291_v29 = vld [vmem:[#allocation2 + $0x70] sm:$0xff]  ;;  %358 = vst.msk [vmem:[%s636_s4 + $0x18] sm:$0xff] %vm22_vm0, %v342_v24  ;;  %v306_v30 = vmul.f32 %v521_v38, %v283_v28  ;;  %v281_v32 = vld [vmem:[#allocation2 + $0x20] sm:$0xff] }
  0xed   :  { %366 = vst.msk [vmem:[%s636_s4 + $0x58] sm:$0xff] %vm22_vm0, %v350_v25  ;;  %v314_v31 = vmul.f32 %v521_v38, %v291_v29  ;;  %v289_v33 = vld [vmem:[#allocation2 + $0x60] sm:$0xff]  ;;  %356 = vst.msk [vmem:[%s636_s4 + $0x8] sm:$0xff] %vm22_vm0, %v340_v26  ;;  %v304_v34 = vmul.f32 %v521_v38, %v281_v32  ;;  %v284_v36 = vld [vmem:[#allocation2 + $0x38] sm:$0xff] }
  0xee   :  { %364 = vst.msk [vmem:[%s636_s4 + $0x48] sm:$0xff] %vm22_vm0, %v348_v27  ;;  %v312_v35 = vmul.f32 %v521_v38, %v289_v33  ;;  %v292_v37 = vld [vmem:[#allocation2 + $0x78] sm:$0xff]  ;;  %v329_v39 = vadd.f32 %v526_v50, %v306_v30  ;;  %v307_v41 = vmul.f32 %v521_v38, %v284_v36 }
  0xef   :  { %v337_v40 = vadd.f32 %v526_v50, %v314_v31  ;;  %v315_v42 = vmul.f32 %v521_v38, %v292_v37  ;;  %v282_v43 = vld [vmem:[#allocation2 + $0x28] sm:$0xff]  ;;  %v327_v45 = vadd.f32 %v526_v50, %v304_v34 }
  0xf0   :  { %v290_v44 = vld [vmem:[#allocation2 + $0x68] sm:$0xff]  ;;  %v335_v46 = vadd.f32 %v526_v50, %v312_v35  ;;  %v305_v47 = vmul.f32 %v521_v38, %v282_v43  ;;  %v345_v49 = vmax.f32 %v329_v39, 0.0  ;;  %v330_v52 = vadd.f32 %v526_v50, %v307_v41 }
  0xf1   :  { %v313_v48 = vmul.f32 %v521_v38, %v290_v44  ;;  %v353_v51 = vmax.f32 %v337_v40, 0.0  ;;  %v338_v53 = vadd.f32 %v526_v50, %v315_v42  ;;  %v343_v54 = vmax.f32 %v327_v45, 0.0 }
  0xf2   :  { %v351_v55 = vmax.f32 %v335_v46, 0.0  ;;  %v328_v56 = vadd.f32 %v526_v50, %v305_v47  ;;  %361 = vst.msk [vmem:[%s636_s4 + $0x30] sm:$0xff] %vm22_vm0, %v345_v49  ;;  %v346_v38 = vmax.f32 %v330_v52, 0.0 }
  0xf3   :  { %v336_v57 = vadd.f32 %v526_v50, %v313_v48  ;;  %369 = vst.msk [vmem:[%s636_s4 + $0x70] sm:$0xff] %vm22_vm0, %v353_v51  ;;  %v354_v58 = vmax.f32 %v338_v53, 0.0  ;;  %359 = vst.msk [vmem:[%s636_s4 + $0x20] sm:$0xff] %vm22_vm0, %v343_v54 }
  0xf4   :  { %367 = vst.msk [vmem:[%s636_s4 + $0x60] sm:$0xff] %vm22_vm0, %v351_v55  ;;  %v344_v50 = vmax.f32 %v328_v56, 0.0  ;;  %362 = vst.msk [vmem:[%s636_s4 + $0x38] sm:$0xff] %vm22_vm0, %v346_v38 }
  0xf5   :  { %v352_v59 = vmax.f32 %v336_v57, 0.0  ;;  %370 = vst.msk [vmem:[%s636_s4 + $0x78] sm:$0xff] %vm22_vm0, %v354_v58 }
  0xf6   :  { %360 = vst.msk [vmem:[%s636_s4 + $0x28] sm:$0xff] %vm22_vm0, %v344_v50 }
  0xf7   :  { %368 = vst.msk [vmem:[%s636_s4 + $0x68] sm:$0xff] %vm22_vm0, %v352_v59 }

// kernel: _lambda_.87
= control target key start
LH: loop header
LB: loop body
LE: loop exit
PB: predicated region body
PF: predicated region fallthrough
CT: control target
= control target key end

     0   :  { %vm201_vm0 = vcmask 7168   ;;  %s557_s4 = inlined_call_operand.<no memory space> [shape: f32[1,1], index: 4, kind: input, shape index: {}]   ;;  %s558_s5 = inlined_call_operand.<no memory space> [shape: f32[1,1], index: 5, kind: input, shape index: {}]   ;;  %s559_s0 = inlined_call_operand.vmem [shape: f32[128,1], index: 0, kind: input, shape index: {}]   ;;  %s560_s1 = inlined_call_operand.vmem [shape: f32[128,1], index: 1, kind: input, shape index: {}]   ;;  %s561_s2 = inlined_call_operand.vmem [shape: f32[128,1], index: 2, kind: input, shape index: {}]   ;;  %s562_s3 = inlined_call_operand.vmem [shape: f32[128,1], index: 3, kind: input, shape index: {}]   ;;  %s563_s6 = inlined_call_operand.vmem [shape: f32[128,1], index: 6, kind: output, shape index: {}]  }
   0x1   :  { %v11_v0 = vstv %s557_s4  ;;  %v13_v1 = vstv %s558_s5  ;;  %v27_v2 = vld [vmem:[%s559_s0] sm:$0xff]  ;;  %v28_v7 = vld [vmem:[%s559_s0 + $0x8] sm:$0xff] }
   0x2   :  { %v43_v3 = vld [vmem:[%s560_s1] sm:$0xff]  ;;  %12 = vst [vmem:[#allocation2] sm:$0x1] %v11_v0  ;;  %14 = vst [vmem:[#allocation3] sm:$0x1] %v13_v1  ;;  %v44_v9 = vld [vmem:[%s560_s1 + $0x8] sm:$0xff] }
   0x3   :  { %v59_v4 = vmax.f32 %v27_v2, %v43_v3  ;;  %v75_v5 = vld [vmem:[%s561_s2] sm:$0xff]  ;;  %v76_v10 = vld [vmem:[%s561_s2 + $0x8] sm:$0xff]  ;;  %v60_v12 = vmax.f32 %v28_v7, %v44_v9  ;;  %v29_v14 = vld [vmem:[%s559_s0 + $0x10] sm:$0xff] }
   0x4   :  { %v91_v6 = vld [vmem:[%s562_s3] sm:$0xff]  ;;  %v92_v11 = vld [vmem:[%s562_s3 + $0x8] sm:$0xff]  ;;  %v45_v15 = vld [vmem:[%s560_s1 + $0x10] sm:$0xff] }
   0x5   :  { %v107_v8 = vmax.f32 %v75_v5, %v91_v6  ;;  %v108_v13 = vmax.f32 %v76_v10, %v92_v11  ;;  %v77_v16 = vld [vmem:[%s561_s2 + $0x10] sm:$0xff]  ;;  %v61_v17 = vmax.f32 %v29_v14, %v45_v15  ;;  %v30_v19 = vld [vmem:[%s559_s0 + $0x18] sm:$0xff]  ;;  %v31_v27 = vld [vmem:[%s559_s0 + $0x20] sm:$0xff] }
   0x6   :  { %v93_v18 = vld [vmem:[%s562_s3 + $0x10] sm:$0xff]  ;;  %v46_v20 = vld [vmem:[%s560_s1 + $0x18] sm:$0xff]  ;;  %v47_v29 = vld [vmem:[%s560_s1 + $0x20] sm:$0xff] }
   0x7   :  { %v123_v21 = vmax.f32 %v59_v4, %v107_v8  ;;  %v124_v22 = vmax.f32 %v60_v12, %v108_v13  ;;  %v109_v23 = vmax.f32 %v77_v16, %v93_v18  ;;  %v62_v24 = vmax.f32 %v30_v19, %v46_v20  ;;  %v78_v25 = vld [vmem:[%s561_s2 + $0x18] sm:$0xff]  ;;  %v79_v30 = vld [vmem:[%s561_s2 + $0x20] sm:$0xff]  ;;  %v32_v35 = vld [vmem:[%s559_s0 + $0x28] sm:$0xff] }
   0x8   :  { %v94_v26 = vld [vmem:[%s562_s3 + $0x18] sm:$0xff]  ;;  %v95_v31 = vld [vmem:[%s562_s3 + $0x20] sm:$0xff]  ;;  %v63_v33 = vmax.f32 %v31_v27, %v47_v29  ;;  %v48_v36 = vld [vmem:[%s560_s1 + $0x28] sm:$0xff] }
   0x9   :  { %v110_v28 = vmax.f32 %v78_v25, %v94_v26  ;;  %v125_v32 = vmax.f32 %v61_v17, %v109_v23  ;;  %v111_v34 = vmax.f32 %v79_v30, %v95_v31  ;;  %v80_v37 = vld [vmem:[%s561_s2 + $0x28] sm:$0xff]  ;;  %v334_v38 = vld [vmem:[#allocation2] ss:$0 sm:$0xff]  ;;  %v336_v39 = vld [vmem:[#allocation3] ss:$0 sm:$0xff]  ;;  %v64_v41 = vmax.f32 %v32_v35, %v48_v36 }
   0xa   :  { %v96_v42 = vld [vmem:[%s562_s3 + $0x28] sm:$0xff]  ;;  %v146_v43 = vmul.f32 %v334_v38, %v123_v21  ;;  %v147_v44 = vmul.f32 %v334_v38, %v124_v22  ;;  %v33_v47 = vld [vmem:[%s559_s0 + $0x30] sm:$0xff]  ;;  %v34_v54 = vld [vmem:[%s559_s0 + $0x38] sm:$0xff] }
   0xb   :  { %v126_v40 = vmax.f32 %v62_v24, %v110_v28  ;;  %v148_v45 = vmul.f32 %v334_v38, %v125_v32  ;;  %v127_v46 = vmax.f32 %v63_v33, %v111_v34  ;;  %v49_v48 = vld [vmem:[%s560_s1 + $0x30] sm:$0xff]  ;;  %v112_v51 = vmax.f32 %v80_v37, %v96_v42  ;;  %v50_v55 = vld [vmem:[%s560_s1 + $0x38] sm:$0xff]  ;;  %v35_v62 = vld [vmem:[%s559_s0 + $0x40] sm:$0xff] }
   0xc   :  { %v81_v49 = vld [vmem:[%s561_s2 + $0x30] sm:$0xff]  ;;  %v65_v52 = vmax.f32 %v33_v47, %v49_v48  ;;  %v169_v56 = vadd.f32 %v336_v39, %v146_v43  ;;  %v170_v57 = vadd.f32 %v336_v39, %v147_v44  ;;  %v82_v60 = vld [vmem:[%s561_s2 + $0x38] sm:$0xff]  ;;  %v66_v2 = vmax.f32 %v34_v54, %v50_v55  ;;  %v51_v3 = vld [vmem:[%s560_s1 + $0x40] sm:$0xff] }
   0xd   :  { %v149_v50 = vmul.f32 %v334_v38, %v126_v40  ;;  %v97_v53 = vld [vmem:[%s562_s3 + $0x30] sm:$0xff]  ;;  %v171_v58 = vadd.f32 %v336_v39, %v148_v45  ;;  %v150_v59 = vmul.f32 %v334_v38, %v127_v46  ;;  %v98_v61 = vld [vmem:[%s562_s3 + $0x38] sm:$0xff]  ;;  %v128_v0 = vmax.f32 %v64_v41, %v112_v51  ;;  %v83_v4 = vld [vmem:[%s561_s2 + $0x40] sm:$0xff] }
   0xe   :  { %v113_v1 = vmax.f32 %v81_v49, %v97_v53  ;;  %v99_v5 = vld [vmem:[%s562_s3 + $0x40] sm:$0xff]  ;;  %v185_v6 = vmax.f32 %v169_v56, 0.0  ;;  %v186_v7 = vmax.f32 %v170_v57, 0.0  ;;  %v36_v10 = vld [vmem:[%s559_s0 + $0x48] sm:$0xff]  ;;  %v114_v16 = vmax.f32 %v82_v60, %v98_v61  ;;  %v37_v18 = vld [vmem:[%s559_s0 + $0x50] sm:$0xff] }
   0xf   :  { %v172_v63 = vadd.f32 %v336_v39, %v149_v50  ;;  %v187_v8 = vmax.f32 %v171_v58, 0.0  ;;  %v173_v9 = vadd.f32 %v336_v39, %v150_v59  ;;  %v52_v11 = vld [vmem:[%s560_s1 + $0x48] sm:$0xff]  ;;  %v151_v14 = vmul.f32 %v334_v38, %v128_v0  ;;  %v53_v19 = vld [vmem:[%s560_s1 + $0x50] sm:$0xff]  ;;  %v38_v26 = vld [vmem:[%s559_s0 + $0x58] sm:$0xff] }
  0x10   :  { %v84_v12 = vld [vmem:[%s561_s2 + $0x48] sm:$0xff]  ;;  %v129_v15 = vmax.f32 %v65_v52, %v113_v1  ;;  %202 = vst.msk [vmem:[%s563_s6] sm:$0xff] %vm201_vm0, %v185_v6  ;;  %203 = vst.msk [vmem:[%s563_s6 + $0x8] sm:$0xff] %vm201_vm0, %v186_v7  ;;  %v67_v21 = vmax.f32 %v35_v62, %v51_v3  ;;  %v115_v22 = vmax.f32 %v83_v4, %v99_v5  ;;  %v85_v24 = vld [vmem:[%s561_s2 + $0x50] sm:$0xff] }
  0x11   :  { %v188_v13 = vmax.f32 %v172_v63, 0.0  ;;  %v100_v17 = vld [vmem:[%s562_s3 + $0x48] sm:$0xff]  ;;  %204 = vst.msk [vmem:[%s563_s6 + $0x10] sm:$0xff] %vm201_vm0, %v187_v8  ;;  %v189_v20 = vmax.f32 %v173_v9, 0.0  ;;  %v68_v23 = vmax.f32 %v36_v10, %v52_v11  ;;  %v101_v25 = vld [vmem:[%s562_s3 + $0x50] sm:$0xff]  ;;  %v174_v27 = vadd.f32 %v336_v39, %v151_v14  ;;  %v54_v31 = vld [vmem:[%s560_s1 + $0x58] sm:$0xff] }
  0x12   :  { %v152_v28 = vmul.f32 %v334_v38, %v129_v15  ;;  %v130_v29 = vmax.f32 %v66_v2, %v114_v16  ;;  %v116_v30 = vmax.f32 %v84_v12, %v100_v17  ;;  %v86_v32 = vld [vmem:[%s561_s2 + $0x58] sm:$0xff]  ;;  %v131_v34 = vmax.f32 %v67_v21, %v115_v22  ;;  %v39_v40 = vld [vmem:[%s559_s0 + $0x60] sm:$0xff]  ;;  %v40_v48 = vld [vmem:[%s559_s0 + $0x68] sm:$0xff] }
  0x13   :  { %205 = vst.msk [vmem:[%s563_s6 + $0x18] sm:$0xff] %vm201_vm0, %v188_v13  ;;  %v102_v33 = vld [vmem:[%s562_s3 + $0x58] sm:$0xff]  ;;  %206 = vst.msk [vmem:[%s563_s6 + $0x20] sm:$0xff] %vm201_vm0, %v189_v20  ;;  %v69_v35 = vmax.f32 %v37_v18, %v53_v19  ;;  %v117_v36 = vmax.f32 %v85_v24, %v101_v25  ;;  %v70_v37 = vmax.f32 %v38_v26, %v54_v31  ;;  %v55_v41 = vld [vmem:[%s560_s1 + $0x60] sm:$0xff]  ;;  %v190_v43 = vmax.f32 %v174_v27, 0.0 }
  0x14   :  { %v87_v42 = vld [vmem:[%s561_s2 + $0x60] sm:$0xff]  ;;  %v175_v44 = vadd.f32 %v336_v39, %v152_v28  ;;  %v153_v45 = vmul.f32 %v334_v38, %v130_v29  ;;  %v132_v46 = vmax.f32 %v68_v23, %v116_v30  ;;  %v56_v49 = vld [vmem:[%s560_s1 + $0x68] sm:$0xff]  ;;  %v154_v50 = vmul.f32 %v334_v38, %v131_v34  ;;  %v41_v60 = vld [vmem:[%s559_s0 + $0x70] sm:$0xff] }
  0x15   :  { %v103_v47 = vld [vmem:[%s562_s3 + $0x60] sm:$0xff]  ;;  %v133_v51 = vmax.f32 %v69_v35, %v117_v36  ;;  %v118_v52 = vmax.f32 %v86_v32, %v102_v33  ;;  %v71_v53 = vmax.f32 %v39_v40, %v55_v41  ;;  %v88_v54 = vld [vmem:[%s561_s2 + $0x68] sm:$0xff]  ;;  %207 = vst.msk [vmem:[%s563_s6 + $0x28] sm:$0xff] %vm201_vm0, %v190_v43  ;;  %v57_v61 = vld [vmem:[%s560_s1 + $0x70] sm:$0xff]  ;;  %v72_v1 = vmax.f32 %v40_v48, %v56_v49 }
  0x16   :  { %v104_v55 = vld [vmem:[%s562_s3 + $0x68] sm:$0xff]  ;;  %v191_v56 = vmax.f32 %v175_v44, 0.0  ;;  %v176_v57 = vadd.f32 %v336_v39, %v153_v45  ;;  %v155_v58 = vmul.f32 %v334_v38, %v132_v46  ;;  %v119_v59 = vmax.f32 %v87_v42, %v103_v47  ;;  %v89_v2 = vld [vmem:[%s561_s2 + $0x70] sm:$0xff]  ;;  %v42_v4 = vld [vmem:[%s559_s0 + $0x78] sm:$0xff] }
  0x17   :  { %v177_v62 = vadd.f32 %v336_v39, %v154_v50  ;;  %v156_v63 = vmul.f32 %v334_v38, %v133_v51  ;;  %v134_v0 = vmax.f32 %v70_v37, %v118_v52  ;;  %v105_v3 = vld [vmem:[%s562_s3 + $0x70] sm:$0xff]  ;;  %v120_v8 = vmax.f32 %v88_v54, %v104_v55  ;;  %v58_v9 = vld [vmem:[%s560_s1 + $0x78] sm:$0xff] }
  0x18   :  { %208 = vst.msk [vmem:[%s563_s6 + $0x30] sm:$0xff] %vm201_vm0, %v191_v56  ;;  %v192_v5 = vmax.f32 %v176_v57, 0.0  ;;  %v178_v6 = vadd.f32 %v336_v39, %v155_v58  ;;  %v135_v7 = vmax.f32 %v71_v53, %v119_v59  ;;  %v90_v10 = vld [vmem:[%s561_s2 + $0x78] sm:$0xff]  ;;  %v73_v15 = vmax.f32 %v41_v60, %v57_v61 }
  0x19   :  { %v106_v11 = vld [vmem:[%s562_s3 + $0x78] sm:$0xff]  ;;  %v193_v12 = vmax.f32 %v177_v62, 0.0  ;;  %v179_v13 = vadd.f32 %v336_v39, %v156_v63  ;;  %v157_v14 = vmul.f32 %v334_v38, %v134_v0  ;;  %v136_v18 = vmax.f32 %v72_v1, %v120_v8 }
  0x1a   :  { %209 = vst.msk [vmem:[%s563_s6 + $0x38] sm:$0xff] %vm201_vm0, %v192_v5  ;;  %v194_v16 = vmax.f32 %v178_v6, 0.0  ;;  %v158_v17 = vmul.f32 %v334_v38, %v135_v7  ;;  %v121_v19 = vmax.f32 %v89_v2, %v105_v3  ;;  %v74_v22 = vmax.f32 %v42_v4, %v58_v9 }
  0x1b   :  { %210 = vst.msk [vmem:[%s563_s6 + $0x40] sm:$0xff] %vm201_vm0, %v193_v12  ;;  %v195_v20 = vmax.f32 %v179_v13, 0.0  ;;  %v180_v21 = vadd.f32 %v336_v39, %v157_v14  ;;  %v122_v23 = vmax.f32 %v90_v10, %v106_v11  ;;  %v159_v25 = vmul.f32 %v334_v38, %v136_v18 }
  0x1c   :  { %211 = vst.msk [vmem:[%s563_s6 + $0x48] sm:$0xff] %vm201_vm0, %v194_v16  ;;  %v181_v24 = vadd.f32 %v336_v39, %v158_v17  ;;  %v137_v26 = vmax.f32 %v73_v15, %v121_v19 }
  0x1d   :  { %212 = vst.msk [vmem:[%s563_s6 + $0x50] sm:$0xff] %vm201_vm0, %v195_v20  ;;  %v196_v27 = vmax.f32 %v180_v21, 0.0  ;;  %v138_v28 = vmax.f32 %v74_v22, %v122_v23  ;;  %v182_v30 = vadd.f32 %v336_v39, %v159_v25 }
  0x1e   :  { %v197_v29 = vmax.f32 %v181_v24, 0.0  ;;  %v160_v31 = vmul.f32 %v334_v38, %v137_v26 }
  0x1f   :  { %213 = vst.msk [vmem:[%s563_s6 + $0x58] sm:$0xff] %vm201_vm0, %v196_v27  ;;  %v161_v32 = vmul.f32 %v334_v38, %v138_v28  ;;  %v198_v33 = vmax.f32 %v182_v30, 0.0 }
  0x20   :  { %214 = vst.msk [vmem:[%s563_s6 + $0x60] sm:$0xff] %vm201_vm0, %v197_v29  ;;  %v183_v34 = vadd.f32 %v336_v39, %v160_v31 }
  0x21   :  { %v184_v35 = vadd.f32 %v336_v39, %v161_v32  ;;  %215 = vst.msk [vmem:[%s563_s6 + $0x68] sm:$0xff] %vm201_vm0, %v198_v33 }
  0x22   :  { %v199_v36 = vmax.f32 %v183_v34, 0.0 }
  0x23   :  { %v200_v37 = vmax.f32 %v184_v35, 0.0 }
  0x24   :  { %216 = vst.msk [vmem:[%s563_s6 + $0x70] sm:$0xff] %vm201_vm0, %v199_v36 }
  0x25   :  { %217 = vst.msk [vmem:[%s563_s6 + $0x78] sm:$0xff] %vm201_vm0, %v200_v37 }

// kernel: _lambda_.89
= control target key start
LH: loop header
LB: loop body
LE: loop exit
PB: predicated region body
PF: predicated region fallthrough
CT: control target
= control target key end

     0   :  { %vm77_vm0 = vcmask 130048   ;;  %s189_s0 = inlined_call_operand.vmem [shape: f32[32,16], index: 0, kind: input, shape index: {}]   ;;  %s190_s1 = inlined_call_operand.vmem [shape: f32[32,16], index: 1, kind: input, shape index: {}]   ;;  %s191_s2 = inlined_call_operand.vmem [shape: f32[32,16], index: 2, kind: input, shape index: {}]   ;;  %s192_s3 = inlined_call_operand.vmem [shape: f32[32,16], index: 3, kind: input, shape index: {}]   ;;  %s193_s4 = inlined_call_operand.vmem [shape: f32[1,16], index: 4, kind: input, shape index: {}]   ;;  %s194_s5 = inlined_call_operand.vmem [shape: f32[1,16], index: 5, kind: input, shape index: {}]   ;;  %s195_s6 = inlined_call_operand.vmem [shape: f32[32,16], index: 6, kind: output, shape index: {}]  }
   0x1   :  { %v23_v0 = vld [vmem:[%s189_s0] sm:$0xff]  ;;  %v24_v7 = vld [vmem:[%s189_s0 + $0x8] sm:$0xff]  ;;  %v25_v13 = vld [vmem:[%s189_s0 + $0x10] sm:$0xff] }
   0x2   :  { %v27_v1 = vld [vmem:[%s190_s1] sm:$0xff]  ;;  %v28_v8 = vld [vmem:[%s190_s1 + $0x8] sm:$0xff]  ;;  %v29_v14 = vld [vmem:[%s190_s1 + $0x10] sm:$0xff] }
   0x3   :  { %v35_v2 = vld [vmem:[%s191_s2] sm:$0xff]  ;;  %v31_v3 = vmax.f32 %v23_v0, %v27_v1  ;;  %v36_v9 = vld [vmem:[%s191_s2 + $0x8] sm:$0xff]  ;;  %v32_v11 = vmax.f32 %v24_v7, %v28_v8  ;;  %v33_v17 = vmax.f32 %v25_v13, %v29_v14  ;;  %v37_v18 = vld [vmem:[%s191_s2 + $0x10] sm:$0xff] }
   0x4   :  { %v39_v4 = vld [vmem:[%s192_s3] sm:$0xff]  ;;  %v40_v12 = vld [vmem:[%s192_s3 + $0x8] sm:$0xff]  ;;  %v41_v19 = vld [vmem:[%s192_s3 + $0x10] sm:$0xff] }
   0x5   :  { %v86_v5 = vld [vmem:[%s193_s4] ss:$0 sm:$0xff]  ;;  %v43_v6 = vmax.f32 %v35_v2, %v39_v4  ;;  %v44_v16 = vmax.f32 %v36_v9, %v40_v12  ;;  %v26_v20 = vld [vmem:[%s189_s0 + $0x18] sm:$0xff]  ;;  %v45_v21 = vmax.f32 %v37_v18, %v41_v19 }
   0x6   :  { %v87_v10 = vld [vmem:[%s194_s5] ss:$0 sm:$0xff]  ;;  %v30_v22 = vld [vmem:[%s190_s1 + $0x18] sm:$0xff] }
   0x7   :  { %v47_v15 = vmax.f32 %v31_v3, %v43_v6  ;;  %v38_v23 = vld [vmem:[%s191_s2 + $0x18] sm:$0xff]  ;;  %v48_v26 = vmax.f32 %v32_v11, %v44_v16  ;;  %v34_v27 = vmax.f32 %v26_v20, %v30_v22  ;;  %v49_v29 = vmax.f32 %v33_v17, %v45_v21 }
   0x8   :  { %v42_v24 = vld [vmem:[%s192_s3 + $0x18] sm:$0xff] }
   0x9   :  { %v58_v25 = vmul.f32 %v86_v5, %v47_v15  ;;  %v46_v28 = vmax.f32 %v38_v23, %v42_v24  ;;  %v59_v31 = vmul.f32 %v86_v5, %v48_v26  ;;  %v60_v33 = vmul.f32 %v86_v5, %v49_v29 }
   0xb   :  { %v69_v30 = vadd.f32 %v87_v10, %v58_v25  ;;  %v50_v32 = vmax.f32 %v34_v27, %v46_v28  ;;  %v70_v35 = vadd.f32 %v87_v10, %v59_v31  ;;  %v71_v37 = vadd.f32 %v87_v10, %v60_v33 }
   0xd   :  { %v73_v34 = vmax.f32 %v69_v30, 0.0  ;;  %v61_v36 = vmul.f32 %v86_v5, %v50_v32  ;;  %v74_v38 = vmax.f32 %v70_v35, 0.0  ;;  %v75_v40 = vmax.f32 %v71_v37, 0.0 }
   0xf   :  { %78 = vst.msk [vmem:[%s195_s6] sm:$0xff] %vm77_vm0, %v73_v34  ;;  %v72_v39 = vadd.f32 %v87_v10, %v61_v36  ;;  %79 = vst.msk [vmem:[%s195_s6 + $0x8] sm:$0xff] %vm77_vm0, %v74_v38 }
  0x10   :  { %80 = vst.msk [vmem:[%s195_s6 + $0x10] sm:$0xff] %vm77_vm0, %v75_v40 }
  0x11   :  { %v76_v41 = vmax.f32 %v72_v39, 0.0 }
  0x13   :  { %81 = vst.msk [vmem:[%s195_s6 + $0x18] sm:$0xff] %vm77_vm0, %v76_v41 }

// kernel: _lambda_.88
= control target key start
LH: loop header
LB: loop body
LE: loop exit
PB: predicated region body
PF: predicated region fallthrough
CT: control target
= control target key end

     0   :  { %vm22_vm0 = vcmask 392192   ;;  %v283_v0 = vmov 0   ;;  %v284_v2 = vmov 0.0   ;;  %vm125_vm1 = vcmask 130048   ;;  %s379_s1 = inlined_call_operand.vmem [shape: bf16[144,48], index: 1, kind: input, shape index: {}]   ;;  %s380_s0 = inlined_call_operand.vmem [shape: bf16[32,144], index: 0, kind: input, shape index: {}]   ;;  %s381_s2 = inlined_call_operand.vmem [shape: f32[1,48], index: 2, kind: input, shape index: {}]   ;;  %s382_s3 = inlined_call_operand.vmem [shape: f32[1,48], index: 3, kind: input, shape index: {}]   ;;  %s383_s4 = inlined_call_operand.vmem [shape: f32[32,48], index: 4, kind: output, shape index: {}]  }
   0x1   :  { %132 = vmatprep.subr.bf16.mxu0 %v283_v0  ;;  %248 = vmatprep.subr.bf16.mxu1 %v283_v0  ;;  %v268_v1 = vld [vmem:[%s379_s1] sm:$0xff]   ;;  %23 = vst.msk [vmem:[#allocation2] sm:$0xff] %vm22_vm0, %v284_v2  ;;  %24 = vst.msk [vmem:[#allocation2 + $0x8] sm:$0xff] %vm22_vm0, %v284_v2  ;;  %v269_v3 = vld [vmem:[%s379_s1 + $0x8] sm:$0xff]  }
   0x2   :  { %25 = vst.msk [vmem:[#allocation2 + $0x10] sm:$0xff] %vm22_vm0, %v284_v2  ;;  %26 = vst.msk [vmem:[#allocation2 + $0x18] sm:$0xff] %vm22_vm0, %v284_v2  ;;  %133 = vmatpush1.bf16.msra.mxu0 %v268_v1  ;;  %257 = vmatpush1.bf16.msra.mxu1 %v268_v1  ;;  %v270_v4 = vld [vmem:[%s379_s1 + $0x10] sm:$0xff]   ;;  %v271_v5 = vld [vmem:[%s379_s1 + $0x18] sm:$0xff]  }
   0x3   :  { %134 = vmatprep.subr.bf16.mxu0 %v283_v0  ;;  %249 = vmatprep.subr.bf16.mxu1 %v283_v0  ;;  %v279_v6 = vld [vmem:[%s380_s0 + $0x4] ss:$8 sps:$4 sm:$0xff]   ;;  %v282_v7 = vld [vmem:[%s380_s0 + $0x14] ss:$8 sps:$4 sm:$0xff]   ;;  %v277_v13 = vld [vmem:[%s380_s0] ss:$8 sps:$4 sm:$0xff]  }
   0x4   :  { %244 = vmatprep.mubr.msk.bf16.mxu0 %vm125_vm1, %v279_v6  ;;  %245 = vmatprep.mubr.msk.bf16.mxu1 %vm125_vm1, %v282_v7  ;;  %v272_v8 = vld [vmem:[%s379_s1 + $0x20] sm:$0xff]   ;;  %v273_v9 = vld [vmem:[%s379_s1 + $0x28] sm:$0xff]   ;;  %v274_v10 = vld [vmem:[%s379_s1 + $0x30] sm:$0xff]  }
   0x5   :  { %v275_v11 = vld [vmem:[%s379_s1 + $0x38] sm:$0xff]   ;;  %v276_v12 = vld [vmem:[%s379_s1 + $0x40] sm:$0xff]  }
   0x6   :  { %135 = vmatpush1.bf16.msra.mxu0 %v269_v3  ;;  %258 = vmatpush1.bf16.msra.mxu1 %v269_v3  ;;  %v280_v14 = vld [vmem:[%s380_s0 + $0x10] ss:$8 sps:$4 sm:$0xff]   ;;  %v246_v31 = vld [vmem:[%s381_s2] ss:$0 sm:$0xff] }
   0x7   :  { %136 = vmatprep.subr.bf16.mxu0 %v283_v0  ;;  %250 = vmatprep.subr.bf16.mxu1 %v283_v0  ;;  %v247_v33 = vld [vmem:[%s382_s3] ss:$0 sm:$0xff] }
   0x8   :  { %v27_v15 = vld [vmem:[#allocation2] sm:$0xff]  ;;  %v28_v19 = vld [vmem:[#allocation2 + $0x8] sm:$0xff] }
   0x9   :  { %v29_v16 = vld [vmem:[#allocation2 + $0x10] sm:$0xff]  ;;  %v30_v20 = vld [vmem:[#allocation2 + $0x18] sm:$0xff] }
   0xa   :  { %137 = vmatpush1.bf16.msra.mxu0 %v270_v4  ;;  %259 = vmatpush1.bf16.msra.mxu1 %v270_v4 }
   0xb   :  { %138 = vmatprep.subr.bf16.mxu0 %v283_v0  ;;  %251 = vmatprep.subr.bf16.mxu1 %v283_v0 }
   0xe   :  { %139 = vmatpush1.bf16.msra.mxu0 %v271_v5  ;;  %260 = vmatpush1.bf16.msra.mxu1 %v271_v5 }
   0xf   :  { %140 = vmatprep.subr.bf16.mxu0 %v283_v0  ;;  %252 = vmatprep.subr.bf16.mxu1 %v283_v0 }
  0x12   :  { %141 = vmatpush1.bf16.msra.mxu0 %v272_v8  ;;  %261 = vmatpush1.bf16.msra.mxu1 %v272_v8 }
  0x13   :  { %142 = vmatprep.subr.bf16.mxu0 %v283_v0  ;;  %253 = vmatprep.subr.bf16.mxu1 %v283_v0 }
  0x16   :  { %143 = vmatpush1.bf16.msra.mxu0 %v273_v9  ;;  %262 = vmatpush1.bf16.msra.mxu1 %v273_v9 }
  0x17   :  { %144 = vmatprep.subr.bf16.mxu0 %v283_v0  ;;  %254 = vmatprep.subr.bf16.mxu1 %v283_v0 }
  0x1a   :  { %145 = vmatpush1.bf16.msra.mxu0 %v274_v10  ;;  %263 = vmatpush1.bf16.msra.mxu1 %v274_v10 }
  0x1b   :  { %146 = vmatprep.subr.bf16.mxu0 %v283_v0  ;;  %255 = vmatprep.subr.bf16.mxu1 %v283_v0 }
  0x1e   :  { %147 = vmatpush1.bf16.msra.mxu0 %v275_v11  ;;  %264 = vmatpush1.bf16.msra.mxu1 %v275_v11 }
  0x1f   :  { %148 = vmatprep.subr.bf16.mxu0 %v283_v0  ;;  %256 = vmatprep.subr.bf16.mxu1 %v283_v0 }
  0x22   :  { %149 = vmatpush1.bf16.msra.mxu0 %v276_v12  ;;  %265 = vmatpush1.bf16.msra.mxu1 %v276_v12 }
  0x25   :  { %165 = vmatmul.mubr.bf16.vlgmr.msra.gmra.mrb[0].mxu0 %v277_v13  ;;  %173 = vmatmul.mubr.bf16.vlgmr.msra.gmra.mrb[0].mxu1 %v280_v14 }
  0xf8   :  { %v166_v17 = vpop.f32.mrb[0].mxu0  ;;  %v174_v18 = vpop.f32.mrb[0].mxu1 }
  0xf9   :  { %v181_v21 = vadd.f32 %v166_v17, %v27_v15  ;;  %v183_v22 = vadd.f32 %v174_v18, %v29_v16  ;;  %v168_v23 = vpop.f32.mrb[1].mxu0  ;;  %v176_v24 = vpop.f32.mrb[1].mxu1 }
  0xfa   :  { %v169_v25 = vpop.f32.mrb[2].mxu0  ;;  %v177_v26 = vpop.f32.mrb[2].mxu1 }
  0xfb   :  { %186 = vst.msk [vmem:[#allocation2] sm:$0xff] %vm22_vm0, %v181_v21  ;;  %188 = vst.msk [vmem:[#allocation2 + $0x10] sm:$0xff] %vm22_vm0, %v183_v22  ;;  %v182_v27 = vadd.f32 %v169_v25, %v28_v19  ;;  %v184_v28 = vadd.f32 %v177_v26, %v30_v20  ;;  %v171_v29 = vpop.f32.mrb[3].mxu0  ;;  %v179_v30 = vpop.f32.mrb[3].mxu1 }
  0xfd   :  { %187 = vst.msk [vmem:[#allocation2 + $0x8] sm:$0xff] %vm22_vm0, %v182_v27  ;;  %189 = vst.msk [vmem:[#allocation2 + $0x18] sm:$0xff] %vm22_vm0, %v184_v28 }
 0x102   :  { %v193_v32 = vld [vmem:[#allocation2] sm:$0xff]  ;;  %v195_v34 = vld [vmem:[#allocation2 + $0x10] sm:$0xff] }
 0x103   :  { %v204_v35 = vmul.f32 %v246_v31, %v193_v32  ;;  %v206_v36 = vmul.f32 %v246_v31, %v195_v34 }
 0x104   :  { %v194_v37 = vld [vmem:[#allocation2 + $0x8] sm:$0xff]  ;;  %v196_v38 = vld [vmem:[#allocation2 + $0x18] sm:$0xff] }
 0x105   :  { %v215_v39 = vadd.f32 %v247_v33, %v204_v35  ;;  %v217_v40 = vadd.f32 %v247_v33, %v206_v36  ;;  %v205_v41 = vmul.f32 %v246_v31, %v194_v37  ;;  %v207_v42 = vmul.f32 %v246_v31, %v196_v38 }
 0x107   :  { %v219_v43 = vmax.f32 %v215_v39, 0.0  ;;  %v221_v44 = vmax.f32 %v217_v40, 0.0  ;;  %v216_v45 = vadd.f32 %v247_v33, %v205_v41  ;;  %v218_v46 = vadd.f32 %v247_v33, %v207_v42 }
 0x109   :  { %223 = vst.msk [vmem:[%s383_s4] sm:$0xff] %vm22_vm0, %v219_v43  ;;  %225 = vst.msk [vmem:[%s383_s4 + $0x10] sm:$0xff] %vm22_vm0, %v221_v44  ;;  %v220_v47 = vmax.f32 %v216_v45, 0.0  ;;  %v222_v48 = vmax.f32 %v218_v46, 0.0 }
 0x10b   :  { %224 = vst.msk [vmem:[%s383_s4 + $0x8] sm:$0xff] %vm22_vm0, %v220_v47  ;;  %226 = vst.msk [vmem:[%s383_s4 + $0x18] sm:$0xff] %vm22_vm0, %v222_v48 }

// kernel: _lambda_.90
= control target key start
LH: loop header
LB: loop body
LE: loop exit
PB: predicated region body
PF: predicated region fallthrough
CT: control target
= control target key end

     0   :  { %vm22_vm0 = vcmask 523264   ;;  %v318_v0 = vmov 0   ;;  %v319_v2 = vmov 0.0   ;;  %s449_s1 = inlined_call_operand.vmem [shape: bf16[192,64], index: 1, kind: input, shape index: {}]   ;;  %s450_s0 = inlined_call_operand.vmem [shape: bf16[32,192], index: 0, kind: input, shape index: {}]   ;;  %s451_s2 = inlined_call_operand.vmem [shape: f32[1,64], index: 2, kind: input, shape index: {}]   ;;  %s452_s3 = inlined_call_operand.vmem [shape: f32[1,64], index: 3, kind: input, shape index: {}]   ;;  %s453_s4 = inlined_call_operand.vmem [shape: f32[32,64], index: 4, kind: output, shape index: {}]  }
   0x1   :  { %156 = vmatprep.subr.bf16.mxu0 %v318_v0  ;;  %274 = vmatprep.subr.bf16.mxu1 %v318_v0  ;;  %v300_v1 = vld [vmem:[%s449_s1] sm:$0xff]   ;;  %23 = vst.msk [vmem:[#allocation2] sm:$0xff] %vm22_vm0, %v319_v2  ;;  %24 = vst.msk [vmem:[#allocation2 + $0x8] sm:$0xff] %vm22_vm0, %v319_v2  ;;  %v301_v3 = vld [vmem:[%s449_s1 + $0x8] sm:$0xff]  }
   0x2   :  { %25 = vst.msk [vmem:[#allocation2 + $0x10] sm:$0xff] %vm22_vm0, %v319_v2  ;;  %26 = vst.msk [vmem:[#allocation2 + $0x18] sm:$0xff] %vm22_vm0, %v319_v2  ;;  %157 = vmatpush1.bf16.msra.mxu0 %v300_v1  ;;  %286 = vmatpush1.bf16.msra.mxu1 %v300_v1  ;;  %v302_v4 = vld [vmem:[%s449_s1 + $0x10] sm:$0xff]   ;;  %v303_v5 = vld [vmem:[%s449_s1 + $0x18] sm:$0xff]  }
   0x3   :  { %158 = vmatprep.subr.bf16.mxu0 %v318_v0  ;;  %275 = vmatprep.subr.bf16.mxu1 %v318_v0  ;;  %v314_v6 = vld [vmem:[%s450_s0 + $0x4] ss:$8 sps:$4 sm:$0xff]   ;;  %v317_v8 = vld [vmem:[%s450_s0 + $0x14] ss:$8 sps:$4 sm:$0xff]   ;;  %v312_v16 = vld [vmem:[%s450_s0] ss:$8 sps:$4 sm:$0xff]  }
   0x4   :  { %v304_v7 = vld [vmem:[%s449_s1 + $0x20] sm:$0xff]   ;;  %270 = vmatprep.mubr.msk.bf16.mxu0 %vm22_vm0, %v314_v6  ;;  %271 = vmatprep.mubr.msk.bf16.mxu1 %vm22_vm0, %v317_v8  ;;  %v305_v9 = vld [vmem:[%s449_s1 + $0x28] sm:$0xff]   ;;  %v306_v10 = vld [vmem:[%s449_s1 + $0x30] sm:$0xff]  }
   0x5   :  { %v307_v11 = vld [vmem:[%s449_s1 + $0x38] sm:$0xff]   ;;  %v308_v12 = vld [vmem:[%s449_s1 + $0x40] sm:$0xff]   ;;  %v309_v13 = vld [vmem:[%s449_s1 + $0x48] sm:$0xff]  }
   0x6   :  { %159 = vmatpush1.bf16.msra.mxu0 %v301_v3  ;;  %287 = vmatpush1.bf16.msra.mxu1 %v301_v3  ;;  %v310_v14 = vld [vmem:[%s449_s1 + $0x50] sm:$0xff]   ;;  %v311_v15 = vld [vmem:[%s449_s1 + $0x58] sm:$0xff]   ;;  %v272_v34 = vld [vmem:[%s451_s2] ss:$0 sm:$0xff] }
   0x7   :  { %160 = vmatprep.subr.bf16.mxu0 %v318_v0  ;;  %276 = vmatprep.subr.bf16.mxu1 %v318_v0  ;;  %v315_v17 = vld [vmem:[%s450_s0 + $0x10] ss:$8 sps:$4 sm:$0xff]   ;;  %v273_v36 = vld [vmem:[%s452_s3] ss:$0 sm:$0xff] }
   0x8   :  { %v27_v18 = vld [vmem:[#allocation2] sm:$0xff]  ;;  %v28_v22 = vld [vmem:[#allocation2 + $0x8] sm:$0xff] }
   0x9   :  { %v29_v19 = vld [vmem:[#allocation2 + $0x10] sm:$0xff]  ;;  %v30_v23 = vld [vmem:[#allocation2 + $0x18] sm:$0xff] }
   0xa   :  { %161 = vmatpush1.bf16.msra.mxu0 %v302_v4  ;;  %288 = vmatpush1.bf16.msra.mxu1 %v302_v4 }
   0xb   :  { %162 = vmatprep.subr.bf16.mxu0 %v318_v0  ;;  %277 = vmatprep.subr.bf16.mxu1 %v318_v0 }
   0xe   :  { %163 = vmatpush1.bf16.msra.mxu0 %v303_v5  ;;  %289 = vmatpush1.bf16.msra.mxu1 %v303_v5 }
   0xf   :  { %164 = vmatprep.subr.bf16.mxu0 %v318_v0  ;;  %278 = vmatprep.subr.bf16.mxu1 %v318_v0 }
  0x12   :  { %165 = vmatpush1.bf16.msra.mxu0 %v304_v7  ;;  %290 = vmatpush1.bf16.msra.mxu1 %v304_v7 }
  0x13   :  { %166 = vmatprep.subr.bf16.mxu0 %v318_v0  ;;  %279 = vmatprep.subr.bf16.mxu1 %v318_v0 }
  0x16   :  { %167 = vmatpush1.bf16.msra.mxu0 %v305_v9  ;;  %291 = vmatpush1.bf16.msra.mxu1 %v305_v9 }
  0x17   :  { %168 = vmatprep.subr.bf16.mxu0 %v318_v0  ;;  %280 = vmatprep.subr.bf16.mxu1 %v318_v0 }
  0x1a   :  { %169 = vmatpush1.bf16.msra.mxu0 %v306_v10  ;;  %292 = vmatpush1.bf16.msra.mxu1 %v306_v10 }
  0x1b   :  { %170 = vmatprep.subr.bf16.mxu0 %v318_v0  ;;  %281 = vmatprep.subr.bf16.mxu1 %v318_v0 }
  0x1e   :  { %171 = vmatpush1.bf16.msra.mxu0 %v307_v11  ;;  %293 = vmatpush1.bf16.msra.mxu1 %v307_v11 }
  0x1f   :  { %172 = vmatprep.subr.bf16.mxu0 %v318_v0  ;;  %282 = vmatprep.subr.bf16.mxu1 %v318_v0 }
  0x22   :  { %173 = vmatpush1.bf16.msra.mxu0 %v308_v12  ;;  %294 = vmatpush1.bf16.msra.mxu1 %v308_v12 }
  0x23   :  { %174 = vmatprep.subr.bf16.mxu0 %v318_v0  ;;  %283 = vmatprep.subr.bf16.mxu1 %v318_v0 }
  0x26   :  { %175 = vmatpush1.bf16.msra.mxu0 %v309_v13  ;;  %295 = vmatpush1.bf16.msra.mxu1 %v309_v13 }
  0x27   :  { %176 = vmatprep.subr.bf16.mxu0 %v318_v0  ;;  %284 = vmatprep.subr.bf16.mxu1 %v318_v0 }
  0x2a   :  { %177 = vmatpush1.bf16.msra.mxu0 %v310_v14  ;;  %296 = vmatpush1.bf16.msra.mxu1 %v310_v14 }
  0x2b   :  { %178 = vmatprep.subr.bf16.mxu0 %v318_v0  ;;  %285 = vmatprep.subr.bf16.mxu1 %v318_v0 }
  0x2e   :  { %179 = vmatpush1.bf16.msra.mxu0 %v311_v15  ;;  %297 = vmatpush1.bf16.msra.mxu1 %v311_v15 }
  0x31   :  { %189 = vmatmul.mubr.bf16.vlgmr.msra.gmra.mrb[0].mxu0 %v312_v16  ;;  %197 = vmatmul.mubr.bf16.vlgmr.msra.gmra.mrb[0].mxu1 %v315_v17 }
 0x104   :  { %v190_v20 = vpop.f32.mrb[0].mxu0  ;;  %v198_v21 = vpop.f32.mrb[0].mxu1 }
 0x105   :  { %v205_v24 = vadd.f32 %v190_v20, %v27_v18  ;;  %v207_v25 = vadd.f32 %v198_v21, %v29_v19  ;;  %v192_v26 = vpop.f32.mrb[1].mxu0  ;;  %v200_v27 = vpop.f32.mrb[1].mxu1 }
 0x106   :  { %v193_v28 = vpop.f32.mrb[2].mxu0  ;;  %v201_v29 = vpop.f32.mrb[2].mxu1 }
 0x107   :  { %209 = vst.msk [vmem:[#allocation2] sm:$0xff] %vm22_vm0, %v205_v24  ;;  %211 = vst.msk [vmem:[#allocation2 + $0x10] sm:$0xff] %vm22_vm0, %v207_v25  ;;  %v206_v30 = vadd.f32 %v193_v28, %v28_v22  ;;  %v208_v31 = vadd.f32 %v201_v29, %v30_v23  ;;  %v195_v32 = vpop.f32.mrb[3].mxu0  ;;  %v203_v33 = vpop.f32.mrb[3].mxu1 }
 0x109   :  { %210 = vst.msk [vmem:[#allocation2 + $0x8] sm:$0xff] %vm22_vm0, %v206_v30  ;;  %212 = vst.msk [vmem:[#allocation2 + $0x18] sm:$0xff] %vm22_vm0, %v208_v31 }
 0x10e   :  { %v216_v35 = vld [vmem:[#allocation2] sm:$0xff]  ;;  %v218_v37 = vld [vmem:[#allocation2 + $0x10] sm:$0xff] }
 0x10f   :  { %v227_v38 = vmul.f32 %v272_v34, %v216_v35  ;;  %v229_v39 = vmul.f32 %v272_v34, %v218_v37 }
 0x110   :  { %v217_v40 = vld [vmem:[#allocation2 + $0x8] sm:$0xff]  ;;  %v219_v41 = vld [vmem:[#allocation2 + $0x18] sm:$0xff] }
 0x111   :  { %v238_v42 = vadd.f32 %v273_v36, %v227_v38  ;;  %v240_v43 = vadd.f32 %v273_v36, %v229_v39  ;;  %v228_v44 = vmul.f32 %v272_v34, %v217_v40  ;;  %v230_v45 = vmul.f32 %v272_v34, %v219_v41 }
 0x113   :  { %v242_v46 = vmax.f32 %v238_v42, 0.0  ;;  %v244_v47 = vmax.f32 %v240_v43, 0.0  ;;  %v239_v48 = vadd.f32 %v273_v36, %v228_v44  ;;  %v241_v49 = vadd.f32 %v273_v36, %v230_v45 }
 0x115   :  { %246 = vst.msk [vmem:[%s453_s4] sm:$0xff] %vm22_vm0, %v242_v46  ;;  %248 = vst.msk [vmem:[%s453_s4 + $0x10] sm:$0xff] %vm22_vm0, %v244_v47  ;;  %v243_v50 = vmax.f32 %v239_v48, 0.0  ;;  %v245_v51 = vmax.f32 %v241_v49, 0.0 }
 0x117   :  { %247 = vst.msk [vmem:[%s453_s4 + $0x8] sm:$0xff] %vm22_vm0, %v243_v50  ;;  %249 = vst.msk [vmem:[%s453_s4 + $0x18] sm:$0xff] %vm22_vm0, %v245_v51 }

// kernel: _lambda_.93
= control target key start
LH: loop header
LB: loop body
LE: loop exit
PB: predicated region body
PF: predicated region fallthrough
CT: control target
= control target key end

     0   :  { %vm25_vm0 = vcmask 523264   ;;  %v329_v0 = vmov 0   ;;  %v330_v2 = vmov 0.0   ;;  %s477_s1 = inlined_call_operand.vmem [shape: bf16[192,64], index: 1, kind: input, shape index: {}]   ;;  %s478_s0 = inlined_call_operand.vmem [shape: bf16[32,192], index: 0, kind: input, shape index: {}]   ;;  %s479_s2 = inlined_call_operand.vmem [shape: f32[1,64], index: 2, kind: input, shape index: {}]   ;;  %s480_s3 = inlined_call_operand.vmem [shape: f32[1,64], index: 3, kind: input, shape index: {}]   ;;  %s481_s4 = inlined_call_operand.vmem [shape: f32[32,64], index: 4, kind: input, shape index: {}]   ;;  %s482_s5 = inlined_call_operand.vmem [shape: f32[32,64], index: 5, kind: output, shape index: {}]  }
   0x1   :  { %159 = vmatprep.subr.bf16.mxu0 %v329_v0  ;;  %285 = vmatprep.subr.bf16.mxu1 %v329_v0  ;;  %v311_v1 = vld [vmem:[%s477_s1] sm:$0xff]   ;;  %26 = vst.msk [vmem:[#allocation2] sm:$0xff] %vm25_vm0, %v330_v2  ;;  %27 = vst.msk [vmem:[#allocation2 + $0x8] sm:$0xff] %vm25_vm0, %v330_v2  ;;  %v312_v3 = vld [vmem:[%s477_s1 + $0x8] sm:$0xff]  }
   0x2   :  { %28 = vst.msk [vmem:[#allocation2 + $0x10] sm:$0xff] %vm25_vm0, %v330_v2  ;;  %29 = vst.msk [vmem:[#allocation2 + $0x18] sm:$0xff] %vm25_vm0, %v330_v2  ;;  %160 = vmatpush1.bf16.msra.mxu0 %v311_v1  ;;  %297 = vmatpush1.bf16.msra.mxu1 %v311_v1  ;;  %v313_v4 = vld [vmem:[%s477_s1 + $0x10] sm:$0xff]   ;;  %v314_v5 = vld [vmem:[%s477_s1 + $0x18] sm:$0xff]  }
   0x3   :  { %161 = vmatprep.subr.bf16.mxu0 %v329_v0  ;;  %286 = vmatprep.subr.bf16.mxu1 %v329_v0  ;;  %v325_v6 = vld [vmem:[%s478_s0 + $0x4] ss:$8 sps:$4 sm:$0xff]   ;;  %v328_v8 = vld [vmem:[%s478_s0 + $0x14] ss:$8 sps:$4 sm:$0xff]   ;;  %v323_v16 = vld [vmem:[%s478_s0] ss:$8 sps:$4 sm:$0xff]  }
   0x4   :  { %v315_v7 = vld [vmem:[%s477_s1 + $0x20] sm:$0xff]   ;;  %281 = vmatprep.mubr.msk.bf16.mxu0 %vm25_vm0, %v325_v6  ;;  %282 = vmatprep.mubr.msk.bf16.mxu1 %vm25_vm0, %v328_v8  ;;  %v316_v9 = vld [vmem:[%s477_s1 + $0x28] sm:$0xff]   ;;  %v317_v10 = vld [vmem:[%s477_s1 + $0x30] sm:$0xff]  }
   0x5   :  { %v318_v11 = vld [vmem:[%s477_s1 + $0x38] sm:$0xff]   ;;  %v319_v12 = vld [vmem:[%s477_s1 + $0x40] sm:$0xff]   ;;  %v320_v13 = vld [vmem:[%s477_s1 + $0x48] sm:$0xff]  }
   0x6   :  { %162 = vmatpush1.bf16.msra.mxu0 %v312_v3  ;;  %298 = vmatpush1.bf16.msra.mxu1 %v312_v3  ;;  %v321_v14 = vld [vmem:[%s477_s1 + $0x50] sm:$0xff]   ;;  %v322_v15 = vld [vmem:[%s477_s1 + $0x58] sm:$0xff]   ;;  %v283_v34 = vld [vmem:[%s479_s2] ss:$0 sm:$0xff] }
   0x7   :  { %163 = vmatprep.subr.bf16.mxu0 %v329_v0  ;;  %287 = vmatprep.subr.bf16.mxu1 %v329_v0  ;;  %v326_v17 = vld [vmem:[%s478_s0 + $0x10] ss:$8 sps:$4 sm:$0xff]   ;;  %v284_v36 = vld [vmem:[%s480_s3] ss:$0 sm:$0xff]  ;;  %v246_v48 = vld [vmem:[%s481_s4 + $0x8] sm:$0xff] }
   0x8   :  { %v30_v18 = vld [vmem:[#allocation2] sm:$0xff]  ;;  %v31_v22 = vld [vmem:[#allocation2 + $0x8] sm:$0xff]  ;;  %v247_v41 = vld [vmem:[%s481_s4 + $0x10] sm:$0xff] }
   0x9   :  { %v32_v19 = vld [vmem:[#allocation2 + $0x10] sm:$0xff]  ;;  %v33_v23 = vld [vmem:[#allocation2 + $0x18] sm:$0xff]  ;;  %v245_v39 = vld [vmem:[%s481_s4] sm:$0xff] }
   0xa   :  { %164 = vmatpush1.bf16.msra.mxu0 %v313_v4  ;;  %299 = vmatpush1.bf16.msra.mxu1 %v313_v4  ;;  %v248_v49 = vld [vmem:[%s481_s4 + $0x18] sm:$0xff] }
   0xb   :  { %165 = vmatprep.subr.bf16.mxu0 %v329_v0  ;;  %288 = vmatprep.subr.bf16.mxu1 %v329_v0 }
   0xe   :  { %166 = vmatpush1.bf16.msra.mxu0 %v314_v5  ;;  %300 = vmatpush1.bf16.msra.mxu1 %v314_v5 }
   0xf   :  { %167 = vmatprep.subr.bf16.mxu0 %v329_v0  ;;  %289 = vmatprep.subr.bf16.mxu1 %v329_v0 }
  0x12   :  { %168 = vmatpush1.bf16.msra.mxu0 %v315_v7  ;;  %301 = vmatpush1.bf16.msra.mxu1 %v315_v7 }
  0x13   :  { %169 = vmatprep.subr.bf16.mxu0 %v329_v0  ;;  %290 = vmatprep.subr.bf16.mxu1 %v329_v0 }
  0x16   :  { %170 = vmatpush1.bf16.msra.mxu0 %v316_v9  ;;  %302 = vmatpush1.bf16.msra.mxu1 %v316_v9 }
  0x17   :  { %171 = vmatprep.subr.bf16.mxu0 %v329_v0  ;;  %291 = vmatprep.subr.bf16.mxu1 %v329_v0 }
  0x1a   :  { %172 = vmatpush1.bf16.msra.mxu0 %v317_v10  ;;  %303 = vmatpush1.bf16.msra.mxu1 %v317_v10 }
  0x1b   :  { %173 = vmatprep.subr.bf16.mxu0 %v329_v0  ;;  %292 = vmatprep.subr.bf16.mxu1 %v329_v0 }
  0x1e   :  { %174 = vmatpush1.bf16.msra.mxu0 %v318_v11  ;;  %304 = vmatpush1.bf16.msra.mxu1 %v318_v11 }
  0x1f   :  { %175 = vmatprep.subr.bf16.mxu0 %v329_v0  ;;  %293 = vmatprep.subr.bf16.mxu1 %v329_v0 }
  0x22   :  { %176 = vmatpush1.bf16.msra.mxu0 %v319_v12  ;;  %305 = vmatpush1.bf16.msra.mxu1 %v319_v12 }
  0x23   :  { %177 = vmatprep.subr.bf16.mxu0 %v329_v0  ;;  %294 = vmatprep.subr.bf16.mxu1 %v329_v0 }
  0x26   :  { %178 = vmatpush1.bf16.msra.mxu0 %v320_v13  ;;  %306 = vmatpush1.bf16.msra.mxu1 %v320_v13 }
  0x27   :  { %179 = vmatprep.subr.bf16.mxu0 %v329_v0  ;;  %295 = vmatprep.subr.bf16.mxu1 %v329_v0 }
  0x2a   :  { %180 = vmatpush1.bf16.msra.mxu0 %v321_v14  ;;  %307 = vmatpush1.bf16.msra.mxu1 %v321_v14 }
  0x2b   :  { %181 = vmatprep.subr.bf16.mxu0 %v329_v0  ;;  %296 = vmatprep.subr.bf16.mxu1 %v329_v0 }
  0x2e   :  { %182 = vmatpush1.bf16.msra.mxu0 %v322_v15  ;;  %308 = vmatpush1.bf16.msra.mxu1 %v322_v15 }
  0x31   :  { %192 = vmatmul.mubr.bf16.vlgmr.msra.gmra.mrb[0].mxu0 %v323_v16  ;;  %200 = vmatmul.mubr.bf16.vlgmr.msra.gmra.mrb[0].mxu1 %v326_v17 }
 0x104   :  { %v193_v20 = vpop.f32.mrb[0].mxu0  ;;  %v201_v21 = vpop.f32.mrb[0].mxu1 }
 0x105   :  { %v208_v24 = vadd.f32 %v193_v20, %v30_v18  ;;  %v210_v25 = vadd.f32 %v201_v21, %v32_v19  ;;  %v195_v26 = vpop.f32.mrb[1].mxu0  ;;  %v203_v27 = vpop.f32.mrb[1].mxu1 }
 0x106   :  { %v196_v28 = vpop.f32.mrb[2].mxu0  ;;  %v204_v29 = vpop.f32.mrb[2].mxu1 }
 0x107   :  { %212 = vst.msk [vmem:[#allocation2] sm:$0xff] %vm25_vm0, %v208_v24  ;;  %214 = vst.msk [vmem:[#allocation2 + $0x10] sm:$0xff] %vm25_vm0, %v210_v25  ;;  %v209_v30 = vadd.f32 %v196_v28, %v31_v22  ;;  %v211_v31 = vadd.f32 %v204_v29, %v33_v23  ;;  %v198_v32 = vpop.f32.mrb[3].mxu0  ;;  %v206_v33 = vpop.f32.mrb[3].mxu1 }
 0x109   :  { %213 = vst.msk [vmem:[#allocation2 + $0x8] sm:$0xff] %vm25_vm0, %v209_v30  ;;  %215 = vst.msk [vmem:[#allocation2 + $0x18] sm:$0xff] %vm25_vm0, %v211_v31 }
 0x10e   :  { %v219_v35 = vld [vmem:[#allocation2] sm:$0xff]  ;;  %v221_v37 = vld [vmem:[#allocation2 + $0x10] sm:$0xff] }
 0x10f   :  { %v230_v38 = vmul.f32 %v283_v34, %v219_v35  ;;  %v232_v40 = vmul.f32 %v283_v34, %v221_v37 }
 0x110   :  { %v220_v42 = vld [vmem:[#allocation2 + $0x8] sm:$0xff]  ;;  %v222_v43 = vld [vmem:[#allocation2 + $0x18] sm:$0xff] }
 0x111   :  { %v241_v44 = vadd.f32 %v284_v36, %v230_v38  ;;  %v243_v45 = vadd.f32 %v284_v36, %v232_v40  ;;  %v231_v46 = vmul.f32 %v283_v34, %v220_v42  ;;  %v233_v47 = vmul.f32 %v283_v34, %v222_v43 }
 0x113   :  { %v249_v50 = vadd.f32 %v245_v39, %v241_v44  ;;  %v251_v51 = vadd.f32 %v247_v41, %v243_v45  ;;  %v242_v52 = vadd.f32 %v284_v36, %v231_v46  ;;  %v244_v53 = vadd.f32 %v284_v36, %v233_v47 }
 0x115   :  { %v253_v54 = vmax.f32 %v249_v50, 0.0  ;;  %v255_v55 = vmax.f32 %v251_v51, 0.0  ;;  %v250_v56 = vadd.f32 %v246_v48, %v242_v52  ;;  %v252_v57 = vadd.f32 %v248_v49, %v244_v53 }
 0x117   :  { %257 = vst.msk [vmem:[%s482_s5] sm:$0xff] %vm25_vm0, %v253_v54  ;;  %259 = vst.msk [vmem:[%s482_s5 + $0x10] sm:$0xff] %vm25_vm0, %v255_v55  ;;  %v254_v58 = vmax.f32 %v250_v56, 0.0  ;;  %v256_v59 = vmax.f32 %v252_v57, 0.0 }
 0x119   :  { %258 = vst.msk [vmem:[%s482_s5 + $0x8] sm:$0xff] %vm25_vm0, %v254_v58  ;;  %260 = vst.msk [vmem:[%s482_s5 + $0x18] sm:$0xff] %vm25_vm0, %v256_v59 }

// kernel: _lambda_.111
= control target key start
LH: loop header
LB: loop body
LE: loop exit
PB: predicated region body
PF: predicated region fallthrough
CT: control target
= control target key end

     0   :  { %vm47_vm0 = vcmask 523264   ;;  %s111_s0 = inlined_call_operand.vmem [shape: f32[8,64], index: 0, kind: input, shape index: {}]   ;;  %s112_s1 = inlined_call_operand.vmem [shape: f32[8,64], index: 1, kind: input, shape index: {}]   ;;  %s113_s2 = inlined_call_operand.vmem [shape: f32[8,64], index: 2, kind: input, shape index: {}]   ;;  %s114_s3 = inlined_call_operand.vmem [shape: f32[8,64], index: 3, kind: input, shape index: {}]   ;;  %s115_s4 = inlined_call_operand.vmem [shape: f32[1,64], index: 4, kind: input, shape index: {}]   ;;  %s116_s5 = inlined_call_operand.vmem [shape: f32[1,64], index: 5, kind: input, shape index: {}]   ;;  %s117_s6 = inlined_call_operand.vmem [shape: f32[8,64], index: 6, kind: output, shape index: {}]  }
   0x1   :  { %v23_v0 = vld [vmem:[%s111_s0] sm:$0xff] }
   0x2   :  { %v24_v1 = vld [vmem:[%s112_s1] sm:$0xff] }
   0x3   :  { %v26_v2 = vld [vmem:[%s113_s2] sm:$0xff]  ;;  %v25_v3 = vmax.f32 %v23_v0, %v24_v1 }
   0x4   :  { %v27_v4 = vld [vmem:[%s114_s3] sm:$0xff] }
   0x5   :  { %v28_v5 = vmax.f32 %v26_v2, %v27_v4  ;;  %v53_v6 = vld [vmem:[%s115_s4] ss:$0 sm:$0xff] }
   0x6   :  { %v54_v8 = vld [vmem:[%s116_s5] ss:$0 sm:$0xff] }
   0x7   :  { %v29_v7 = vmax.f32 %v25_v3, %v28_v5 }
   0x9   :  { %v37_v9 = vmul.f32 %v53_v6, %v29_v7 }
   0xb   :  { %v45_v10 = vadd.f32 %v54_v8, %v37_v9 }
   0xd   :  { %v46_v11 = vmax.f32 %v45_v10, 0.0 }
   0xf   :  { %48 = vst.msk [vmem:[%s117_s6] sm:$0xff] %vm47_vm0, %v46_v11 }

// kernel: _lambda_.110
= control target key start
LH: loop header
LB: loop body
LE: loop exit
PB: predicated region body
PF: predicated region fallthrough
CT: control target
= control target key end

     0   :  { %vm22_vm0 = vcmask 523264   ;;  %v633_v1 = vmov 0.0   ;;  %vm634_vm1 = vmmov 0   ;;  %s796_s1 = inlined_call_operand.vmem [shape: bf16[576,64], index: 1, kind: input, shape index: {}]   ;;  %s797_s0 = inlined_call_operand.vmem [shape: bf16[8,576], index: 0, kind: input, shape index: {}]   ;;  %s798_s2 = inlined_call_operand.vmem [shape: f32[1,64], index: 2, kind: input, shape index: {}]   ;;  %s799_s3 = inlined_call_operand.vmem [shape: f32[1,64], index: 3, kind: input, shape index: {}]   ;;  %s800_s4 = inlined_call_operand.vmem [shape: f32[8,64], index: 4, kind: output, shape index: {}]  }
   0x1   :  { %v592_v0 = vld [vmem:[%s796_s1 + $0x40] sm:$0xff]   ;;  %23 = vst.msk [vmem:[#allocation2] sm:$0xff] %vm22_vm0, %v633_v1  ;;  %v596_v5 = vld [vmem:[%s796_s1 + $0x48] sm:$0xff]   ;;  %v600_v9 = vld [vmem:[%s796_s1 + $0x50] sm:$0xff]  }
   0x2   :  { %v593_v2 = vld [vmem:[%s796_s1 + $0xc0] sm:$0xff]   ;;  %529 = vmatprep.subr.bf16.mxu0 %v592_v0  ;;  %v597_v6 = vld [vmem:[%s796_s1 + $0xc8] sm:$0xff]   ;;  %v601_v10 = vld [vmem:[%s796_s1 + $0xd0] sm:$0xff]  }
   0x3   :  { %v594_v3 = vld [vmem:[%s796_s1] sm:$0xff]   ;;  %551 = vmatprep.subr.bf16.mxu1 %v593_v2  ;;  %v598_v7 = vld [vmem:[%s796_s1 + $0x8] sm:$0xff]   ;;  %v602_v11 = vld [vmem:[%s796_s1 + $0x10] sm:$0xff]  }
   0x4   :  { %v595_v4 = vld [vmem:[%s796_s1 + $0x80] sm:$0xff]   ;;  %530 = vmatpush3.bf16.msra.mxu0 %v594_v3  ;;  %v599_v8 = vld [vmem:[%s796_s1 + $0x88] sm:$0xff]   ;;  %v603_v12 = vld [vmem:[%s796_s1 + $0x90] sm:$0xff]  }
   0x5   :  { %552 = vmatpush3.bf16.msra.mxu1 %v595_v4  ;;  %531 = vmatprep.subr.bf16.mxu0 %v596_v5  ;;  %v604_v13 = vld [vmem:[%s796_s1 + $0x58] sm:$0xff]   ;;  %v608_v17 = vld [vmem:[%s796_s1 + $0x60] sm:$0xff]   ;;  %v612_v21 = vld [vmem:[%s796_s1 + $0x68] sm:$0xff]  }
   0x6   :  { %553 = vmatprep.subr.bf16.mxu1 %v597_v6  ;;  %v605_v14 = vld [vmem:[%s796_s1 + $0xd8] sm:$0xff]   ;;  %v609_v18 = vld [vmem:[%s796_s1 + $0xe0] sm:$0xff]   ;;  %v613_v22 = vld [vmem:[%s796_s1 + $0xe8] sm:$0xff]  }
   0x7   :  { %v606_v15 = vld [vmem:[%s796_s1 + $0x18] sm:$0xff]   ;;  %v610_v19 = vld [vmem:[%s796_s1 + $0x20] sm:$0xff]   ;;  %v614_v23 = vld [vmem:[%s796_s1 + $0x28] sm:$0xff]  }
   0x8   :  { %532 = vmatpush3.bf16.msra.mxu0 %v598_v7  ;;  %v607_v16 = vld [vmem:[%s796_s1 + $0x98] sm:$0xff]   ;;  %v611_v20 = vld [vmem:[%s796_s1 + $0xa0] sm:$0xff]   ;;  %v615_v24 = vld [vmem:[%s796_s1 + $0xa8] sm:$0xff]  }
   0x9   :  { %554 = vmatpush3.bf16.msra.mxu1 %v599_v8  ;;  %533 = vmatprep.subr.bf16.mxu0 %v600_v9  ;;  %v616_v25 = vld [vmem:[%s796_s1 + $0x70] sm:$0xff]   ;;  %v620_v29 = vld [vmem:[%s796_s1 + $0x78] sm:$0xff]   ;;  %v25_v33 = vld [vmem:[%s797_s0] sm:$0xff] }
   0xa   :  { %555 = vmatprep.subr.bf16.mxu1 %v601_v10  ;;  %v617_v26 = vld [vmem:[%s796_s1 + $0xf0] sm:$0xff]   ;;  %v621_v30 = vld [vmem:[%s796_s1 + $0xf8] sm:$0xff]   ;;  %v485_v34 = vcombine.low %v25_v33, %v25_v33  ;;  %v486_v35 = vcombine.high %v25_v33, %v25_v33  ;;  %v26_v36 = vld [vmem:[%s797_s0 + $0x8] sm:$0xff] }
   0xb   :  { %v618_v27 = vld [vmem:[%s796_s1 + $0x30] sm:$0xff]   ;;  %v622_v31 = vld [vmem:[%s796_s1 + $0x38] sm:$0xff]   ;;  %v487_v37 = vcombine.low %v26_v36, %v26_v36  ;;  %v488_v38 = vcombine.high %v26_v36, %v26_v36  ;;  %v629_v39 = vld [vmem:[%s796_s1 + $0x100] sm:$0xff]  }
   0xc   :  { %534 = vmatpush3.bf16.msra.mxu0 %v602_v11  ;;  %v619_v28 = vld [vmem:[%s796_s1 + $0xb0] sm:$0xff]   ;;  %v623_v32 = vld [vmem:[%s796_s1 + $0xb8] sm:$0xff]   ;;  %369 = vmatprep.mubr.bf16.mxu0 %v486_v35  ;;  %v630_v40 = vld [vmem:[%s796_s1 + $0x108] sm:$0xff]  }
   0xd   :  { %556 = vmatpush3.bf16.msra.mxu1 %v603_v12  ;;  %535 = vmatprep.subr.bf16.mxu0 %v604_v13  ;;  %v631_v41 = vld [vmem:[%s796_s1 + $0x110] sm:$0xff]   ;;  %v632_v42 = vld [vmem:[%s796_s1 + $0x118] sm:$0xff]   ;;  %v24_v55 = vld [vmem:[#allocation2] sm:$0xff] }
   0xe   :  { %557 = vmatprep.subr.bf16.mxu1 %v605_v14  ;;  %409 = vmatprep.mubr.bf16.mxu1 %v488_v38  ;;  %v626_v43 = vld [vmem:[%s797_s0 + $0x10] ss:$0 sps:$4 sm:$0xff]   ;;  %v527_v62 = vld [vmem:[%s798_s2] ss:$0 sm:$0xff] }
   0xf   :  { %v528_v0 = vld [vmem:[%s799_s3] ss:$0 sm:$0xff] }
  0x10   :  { %536 = vmatpush3.bf16.msra.mxu0 %v606_v15 }
  0x11   :  { %558 = vmatpush3.bf16.msra.mxu1 %v607_v16  ;;  %537 = vmatprep.subr.bf16.mxu0 %v608_v17 }
  0x12   :  { %559 = vmatprep.subr.bf16.mxu1 %v609_v18 }
  0x14   :  { %538 = vmatpush3.bf16.msra.mxu0 %v610_v19 }
  0x15   :  { %560 = vmatpush3.bf16.msra.mxu1 %v611_v20  ;;  %539 = vmatprep.subr.bf16.mxu0 %v612_v21 }
  0x16   :  { %561 = vmatprep.subr.bf16.mxu1 %v613_v22 }
  0x18   :  { %540 = vmatpush3.bf16.msra.mxu0 %v614_v23 }
  0x19   :  { %562 = vmatpush3.bf16.msra.mxu1 %v615_v24  ;;  %541 = vmatprep.subr.bf16.mxu0 %v616_v25 }
  0x1a   :  { %563 = vmatprep.subr.bf16.mxu1 %v617_v26 }
  0x1c   :  { %542 = vmatpush3.bf16.msra.mxu0 %v618_v27 }
  0x1d   :  { %564 = vmatpush3.bf16.msra.mxu1 %v619_v28  ;;  %543 = vmatprep.subr.bf16.mxu0 %v620_v29 }
  0x1e   :  { %565 = vmatprep.subr.bf16.mxu1 %v621_v30 }
  0x20   :  { %544 = vmatpush3.bf16.msra.mxu0 %v622_v31 }
  0x21   :  { %566 = vmatpush3.bf16.msra.mxu1 %v623_v32  ;;  %578 = vmatprep.subr.bf16.mxu0 %v633_v1 }
  0x23   :  { %370 = vmatmul.mubr.bf16.vlgmr.msra.gmra.mrb[0].mxu0 %v485_v34 }
  0x24   :  { %410 = vmatmul.mubr.bf16.vlgmr.msra.gmra.mrb[0].mxu1 %v487_v37  ;;  %579 = vmatpush3.bf16.msra.mxu0 %v629_v39 }
  0x25   :  { %580 = vmatprep.subr.bf16.mxu0 %v633_v1  ;;  %586 = vmatprep.mubr.msk.bf16.mxu0 %vm634_vm1, %v633_v1 }
  0x28   :  { %581 = vmatpush3.bf16.msra.mxu0 %v630_v40 }
  0x29   :  { %582 = vmatprep.subr.bf16.mxu0 %v633_v1 }
  0x2c   :  { %583 = vmatpush3.bf16.msra.mxu0 %v631_v41 }
  0x2d   :  { %584 = vmatprep.subr.bf16.mxu0 %v633_v1 }
  0x30   :  { %585 = vmatpush3.bf16.msra.mxu0 %v632_v42 }
  0x33   :  { %587 = vmatmul.mubr.msk.bf16.vlgmr.msra.gmra.mrb[4].mxu0 %vm22_vm0, %v626_v43 }
  0xf6   :  { %v545_v44 = vpop.f32.mrb[0].mxu0 }
  0xf7   :  { %v567_v45 = vpop.f32.mrb[0].mxu1  ;;  %v546_v46 = vpop.f32.mrb[1].mxu0 }
  0xf8   :  { %v547_v47 = vadd.f32 %v546_v46, %v545_v44  ;;  %v568_v48 = vpop.f32.mrb[1].mxu1  ;;  %v548_v49 = vpop.f32.mrb[2].mxu0 }
  0xf9   :  { %v569_v50 = vadd.f32 %v568_v48, %v567_v45  ;;  %v549_v51 = vpop.f32.mrb[3].mxu0  ;;  %v570_v52 = vpop.f32.mrb[2].mxu1 }
  0xfa   :  { %v571_v53 = vpop.f32.mrb[3].mxu1 }
  0xfb   :  { %v412_v54 = vadd.f32 %v569_v50, %v547_v47 }
 0x106   :  { %v451_v56 = vpop.f32.mrb[4].mxu0 }
 0x107   :  { %v452_v57 = vadd.f32 %v451_v56, %v412_v54  ;;  %v588_v58 = vpop.f32.mrb[5].mxu0 }
 0x108   :  { %v454_v59 = vpop.f32.mrb[6].mxu0 }
 0x109   :  { %v457_v60 = vadd.f32 %v452_v57, %v24_v55  ;;  %v589_v61 = vpop.f32.mrb[7].mxu0 }
 0x10b   :  { %458 = vst.msk [vmem:[#allocation2] sm:$0xff] %vm22_vm0, %v457_v60 }
 0x112   :  { %v462_v63 = vld [vmem:[#allocation2] sm:$0xff] }
 0x113   :  { %v470_v1 = vmul.f32 %v527_v62, %v462_v63 }
 0x115   :  { %v478_v2 = vadd.f32 %v528_v0, %v470_v1 }
 0x117   :  { %v479_v3 = vmax.f32 %v478_v2, 0.0 }
 0x119   :  { %480 = vst.msk [vmem:[%s800_s4] sm:$0xff] %vm22_vm0, %v479_v3 }

// kernel: _lambda_.115
= control target key start
LH: loop header
LB: loop body
LE: loop exit
PB: predicated region body
PF: predicated region fallthrough
CT: control target
= control target key end

     0   :  { %v451_v1 = vmov 0.0   ;;  %vm452_vm0 = vmmov 0   ;;  %s573_s1 = inlined_call_operand.vmem [shape: bf16[384,128], index: 1, kind: input, shape index: {}]   ;;  %s574_s0 = inlined_call_operand.vmem [shape: bf16[8,384], index: 0, kind: input, shape index: {}]   ;;  %s575_s2 = inlined_call_operand.vmem [shape: f32[1,128], index: 2, kind: input, shape index: {}]   ;;  %s576_s3 = inlined_call_operand.vmem [shape: f32[1,128], index: 3, kind: input, shape index: {}]   ;;  %s577_s4 = inlined_call_operand.vmem [shape: f32[8,128], index: 4, kind: input, shape index: {}]   ;;  %s578_s5 = inlined_call_operand.vmem [shape: f32[8,128], index: 5, kind: output, shape index: {}]  }
   0x1   :  { %v424_v0 = vld [vmem:[%s573_s1 + $0x40] sm:$0xff]   ;;  %402 = vmatprep.subr.bf16.mxu1 %v451_v1  ;;  %418 = vmatprep.mubr.msk.bf16.mxu1 %vm452_vm0, %v451_v1  ;;  %v427_v4 = vld [vmem:[%s573_s1 + $0x48] sm:$0xff]   ;;  %v430_v7 = vld [vmem:[%s573_s1 + $0x50] sm:$0xff]  }
   0x2   :  { %v425_v2 = vld [vmem:[%s573_s1] sm:$0xff]   ;;  %371 = vmatprep.subr.bf16.mxu0 %v424_v0  ;;  %v428_v5 = vld [vmem:[%s573_s1 + $0x8] sm:$0xff]   ;;  %v431_v8 = vld [vmem:[%s573_s1 + $0x10] sm:$0xff]  }
   0x3   :  { %v426_v3 = vld [vmem:[%s573_s1 + $0x80] sm:$0xff]   ;;  %372 = vmatpush3.bf16.msra.mxu0 %v425_v2  ;;  %v429_v6 = vld [vmem:[%s573_s1 + $0x88] sm:$0xff]   ;;  %v432_v9 = vld [vmem:[%s573_s1 + $0x90] sm:$0xff]  }
   0x4   :  { %403 = vmatpush3.bf16.msra.mxu1 %v426_v3  ;;  %373 = vmatprep.subr.bf16.mxu0 %v427_v4  ;;  %v433_v10 = vld [vmem:[%s573_s1 + $0x58] sm:$0xff]   ;;  %v436_v13 = vld [vmem:[%s573_s1 + $0x60] sm:$0xff]   ;;  %v439_v16 = vld [vmem:[%s573_s1 + $0x68] sm:$0xff]  }
   0x5   :  { %404 = vmatprep.subr.bf16.mxu1 %v451_v1  ;;  %v434_v11 = vld [vmem:[%s573_s1 + $0x18] sm:$0xff]   ;;  %v437_v14 = vld [vmem:[%s573_s1 + $0x20] sm:$0xff]   ;;  %v440_v17 = vld [vmem:[%s573_s1 + $0x28] sm:$0xff]  }
   0x6   :  { %v435_v12 = vld [vmem:[%s573_s1 + $0x98] sm:$0xff]   ;;  %v438_v15 = vld [vmem:[%s573_s1 + $0xa0] sm:$0xff]   ;;  %v441_v18 = vld [vmem:[%s573_s1 + $0xa8] sm:$0xff]  }
   0x7   :  { %374 = vmatpush3.bf16.msra.mxu0 %v428_v5  ;;  %v442_v19 = vld [vmem:[%s573_s1 + $0x70] sm:$0xff]   ;;  %v445_v22 = vld [vmem:[%s573_s1 + $0x78] sm:$0xff]   ;;  %v27_v23 = vld [vmem:[%s574_s0] sm:$0xff] }
   0x8   :  { %405 = vmatpush3.bf16.msra.mxu1 %v429_v6  ;;  %375 = vmatprep.subr.bf16.mxu0 %v430_v7  ;;  %v443_v20 = vld [vmem:[%s573_s1 + $0x30] sm:$0xff]   ;;  %v343_v24 = vcombine.high %v27_v23, %v27_v23  ;;  %v446_v25 = vld [vmem:[%s573_s1 + $0x38] sm:$0xff]   ;;  %v342_v27 = vcombine.low %v27_v23, %v27_v23  ;;  %v450_v28 = vld [vmem:[%s574_s0 + $0x8] ss:$0 sps:$4 sm:$0xff]  }
   0x9   :  { %406 = vmatprep.subr.bf16.mxu1 %v451_v1  ;;  %v444_v21 = vld [vmem:[%s573_s1 + $0xb0] sm:$0xff]   ;;  %v447_v26 = vld [vmem:[%s573_s1 + $0xb8] sm:$0xff]   ;;  %v369_v35 = vld [vmem:[%s575_s2] ss:$0 sm:$0xff] }
   0xa   :  { %264 = vmatprep.mubr.bf16.mxu0 %v343_v24  ;;  %v370_v40 = vld [vmem:[%s576_s3] ss:$0 sm:$0xff] }
   0xb   :  { %376 = vmatpush3.bf16.msra.mxu0 %v431_v8  ;;  %v334_v42 = vld [vmem:[%s577_s4] sm:$0xff] }
   0xc   :  { %407 = vmatpush3.bf16.msra.mxu1 %v432_v9  ;;  %377 = vmatprep.subr.bf16.mxu0 %v433_v10 }
   0xd   :  { %408 = vmatprep.subr.bf16.mxu1 %v451_v1 }
   0xf   :  { %378 = vmatpush3.bf16.msra.mxu0 %v434_v11 }
  0x10   :  { %409 = vmatpush3.bf16.msra.mxu1 %v435_v12  ;;  %379 = vmatprep.subr.bf16.mxu0 %v436_v13 }
  0x11   :  { %410 = vmatprep.subr.bf16.mxu1 %v451_v1 }
  0x13   :  { %380 = vmatpush3.bf16.msra.mxu0 %v437_v14 }
  0x14   :  { %411 = vmatpush3.bf16.msra.mxu1 %v438_v15  ;;  %381 = vmatprep.subr.bf16.mxu0 %v439_v16 }
  0x15   :  { %412 = vmatprep.subr.bf16.mxu1 %v451_v1 }
  0x17   :  { %382 = vmatpush3.bf16.msra.mxu0 %v440_v17 }
  0x18   :  { %413 = vmatpush3.bf16.msra.mxu1 %v441_v18  ;;  %383 = vmatprep.subr.bf16.mxu0 %v442_v19 }
  0x19   :  { %414 = vmatprep.subr.bf16.mxu1 %v451_v1 }
  0x1b   :  { %384 = vmatpush3.bf16.msra.mxu0 %v443_v20 }
  0x1c   :  { %415 = vmatpush3.bf16.msra.mxu1 %v444_v21  ;;  %385 = vmatprep.subr.bf16.mxu0 %v445_v22 }
  0x1d   :  { %416 = vmatprep.subr.bf16.mxu1 %v451_v1 }
  0x1f   :  { %386 = vmatpush3.bf16.msra.mxu0 %v446_v25 }
  0x20   :  { %417 = vmatpush3.bf16.msra.mxu1 %v447_v26 }
  0x22   :  { %265 = vmatmul.mubr.bf16.vlgmr.msra.gmra.mrb[0].mxu0 %v342_v27 }
  0x23   :  { %419 = vmatmul.mubr.bf16.vlgmr.msra.gmra.mrb[0].mxu1 %v450_v28 }
  0xf5   :  { %v387_v29 = vpop.f32.mrb[0].mxu0 }
  0xf6   :  { %v306_v30 = vpop.f32.mrb[0].mxu1  ;;  %v388_v31 = vpop.f32.mrb[1].mxu0 }
  0xf7   :  { %v389_v32 = vadd.f32 %v388_v31, %v387_v29  ;;  %v420_v33 = vpop.f32.mrb[1].mxu1  ;;  %v390_v34 = vpop.f32.mrb[2].mxu0 }
  0xf8   :  { %v309_v36 = vpop.f32.mrb[2].mxu1  ;;  %v391_v37 = vpop.f32.mrb[3].mxu0 }
  0xf9   :  { %v307_v38 = vadd.f32 %v389_v32, %v306_v30  ;;  %v421_v39 = vpop.f32.mrb[3].mxu1 }
  0xfb   :  { %v325_v41 = vmul.f32 %v369_v35, %v307_v38 }
  0xfd   :  { %v333_v43 = vadd.f32 %v370_v40, %v325_v41 }
  0xff   :  { %v335_v44 = vadd.f32 %v334_v42, %v333_v43 }
 0x101   :  { %v336_v45 = vmax.f32 %v335_v44, 0.0 }
 0x103   :  { %337 = vst [vmem:[%s578_s5] sm:$0xff] %v336_v45 }

// kernel: _lambda_.112
= control target key start
LH: loop header
LB: loop body
LE: loop exit
PB: predicated region body
PF: predicated region fallthrough
CT: control target
= control target key end

     0   :  { %v446_v1 = vmov 0.0   ;;  %vm447_vm0 = vmmov 0   ;;  %s560_s1 = inlined_call_operand.vmem [shape: bf16[384,128], index: 1, kind: input, shape index: {}]   ;;  %s561_s0 = inlined_call_operand.vmem [shape: bf16[8,384], index: 0, kind: input, shape index: {}]   ;;  %s562_s2 = inlined_call_operand.vmem [shape: f32[1,128], index: 2, kind: input, shape index: {}]   ;;  %s563_s3 = inlined_call_operand.vmem [shape: f32[1,128], index: 3, kind: input, shape index: {}]   ;;  %s564_s4 = inlined_call_operand.vmem [shape: f32[8,128], index: 4, kind: output, shape index: {}]  }
   0x1   :  { %v419_v0 = vld [vmem:[%s560_s1 + $0x40] sm:$0xff]   ;;  %397 = vmatprep.subr.bf16.mxu1 %v446_v1  ;;  %413 = vmatprep.mubr.msk.bf16.mxu1 %vm447_vm0, %v446_v1  ;;  %v422_v4 = vld [vmem:[%s560_s1 + $0x48] sm:$0xff]   ;;  %v425_v7 = vld [vmem:[%s560_s1 + $0x50] sm:$0xff]  }
   0x2   :  { %v420_v2 = vld [vmem:[%s560_s1] sm:$0xff]   ;;  %366 = vmatprep.subr.bf16.mxu0 %v419_v0  ;;  %v423_v5 = vld [vmem:[%s560_s1 + $0x8] sm:$0xff]   ;;  %v426_v8 = vld [vmem:[%s560_s1 + $0x10] sm:$0xff]  }
   0x3   :  { %v421_v3 = vld [vmem:[%s560_s1 + $0x80] sm:$0xff]   ;;  %367 = vmatpush3.bf16.msra.mxu0 %v420_v2  ;;  %v424_v6 = vld [vmem:[%s560_s1 + $0x88] sm:$0xff]   ;;  %v427_v9 = vld [vmem:[%s560_s1 + $0x90] sm:$0xff]  }
   0x4   :  { %398 = vmatpush3.bf16.msra.mxu1 %v421_v3  ;;  %368 = vmatprep.subr.bf16.mxu0 %v422_v4  ;;  %v428_v10 = vld [vmem:[%s560_s1 + $0x58] sm:$0xff]   ;;  %v431_v13 = vld [vmem:[%s560_s1 + $0x60] sm:$0xff]   ;;  %v434_v16 = vld [vmem:[%s560_s1 + $0x68] sm:$0xff]  }
   0x5   :  { %399 = vmatprep.subr.bf16.mxu1 %v446_v1  ;;  %v429_v11 = vld [vmem:[%s560_s1 + $0x18] sm:$0xff]   ;;  %v432_v14 = vld [vmem:[%s560_s1 + $0x20] sm:$0xff]   ;;  %v435_v17 = vld [vmem:[%s560_s1 + $0x28] sm:$0xff]  }
   0x6   :  { %v430_v12 = vld [vmem:[%s560_s1 + $0x98] sm:$0xff]   ;;  %v433_v15 = vld [vmem:[%s560_s1 + $0xa0] sm:$0xff]   ;;  %v436_v18 = vld [vmem:[%s560_s1 + $0xa8] sm:$0xff]  }
   0x7   :  { %369 = vmatpush3.bf16.msra.mxu0 %v423_v5  ;;  %v437_v19 = vld [vmem:[%s560_s1 + $0x70] sm:$0xff]   ;;  %v440_v22 = vld [vmem:[%s560_s1 + $0x78] sm:$0xff]   ;;  %v24_v23 = vld [vmem:[%s561_s0] sm:$0xff] }
   0x8   :  { %400 = vmatpush3.bf16.msra.mxu1 %v424_v6  ;;  %370 = vmatprep.subr.bf16.mxu0 %v425_v7  ;;  %v438_v20 = vld [vmem:[%s560_s1 + $0x30] sm:$0xff]   ;;  %v338_v24 = vcombine.high %v24_v23, %v24_v23  ;;  %v441_v25 = vld [vmem:[%s560_s1 + $0x38] sm:$0xff]   ;;  %v337_v27 = vcombine.low %v24_v23, %v24_v23  ;;  %v445_v28 = vld [vmem:[%s561_s0 + $0x8] ss:$0 sps:$4 sm:$0xff]  }
   0x9   :  { %401 = vmatprep.subr.bf16.mxu1 %v446_v1  ;;  %v439_v21 = vld [vmem:[%s560_s1 + $0xb0] sm:$0xff]   ;;  %v442_v26 = vld [vmem:[%s560_s1 + $0xb8] sm:$0xff]   ;;  %v364_v35 = vld [vmem:[%s562_s2] ss:$0 sm:$0xff] }
   0xa   :  { %261 = vmatprep.mubr.bf16.mxu0 %v338_v24  ;;  %v365_v40 = vld [vmem:[%s563_s3] ss:$0 sm:$0xff] }
   0xb   :  { %371 = vmatpush3.bf16.msra.mxu0 %v426_v8 }
   0xc   :  { %402 = vmatpush3.bf16.msra.mxu1 %v427_v9  ;;  %372 = vmatprep.subr.bf16.mxu0 %v428_v10 }
   0xd   :  { %403 = vmatprep.subr.bf16.mxu1 %v446_v1 }
   0xf   :  { %373 = vmatpush3.bf16.msra.mxu0 %v429_v11 }
  0x10   :  { %404 = vmatpush3.bf16.msra.mxu1 %v430_v12  ;;  %374 = vmatprep.subr.bf16.mxu0 %v431_v13 }
  0x11   :  { %405 = vmatprep.subr.bf16.mxu1 %v446_v1 }
  0x13   :  { %375 = vmatpush3.bf16.msra.mxu0 %v432_v14 }
  0x14   :  { %406 = vmatpush3.bf16.msra.mxu1 %v433_v15  ;;  %376 = vmatprep.subr.bf16.mxu0 %v434_v16 }
  0x15   :  { %407 = vmatprep.subr.bf16.mxu1 %v446_v1 }
  0x17   :  { %377 = vmatpush3.bf16.msra.mxu0 %v435_v17 }
  0x18   :  { %408 = vmatpush3.bf16.msra.mxu1 %v436_v18  ;;  %378 = vmatprep.subr.bf16.mxu0 %v437_v19 }
  0x19   :  { %409 = vmatprep.subr.bf16.mxu1 %v446_v1 }
  0x1b   :  { %379 = vmatpush3.bf16.msra.mxu0 %v438_v20 }
  0x1c   :  { %410 = vmatpush3.bf16.msra.mxu1 %v439_v21  ;;  %380 = vmatprep.subr.bf16.mxu0 %v440_v22 }
  0x1d   :  { %411 = vmatprep.subr.bf16.mxu1 %v446_v1 }
  0x1f   :  { %381 = vmatpush3.bf16.msra.mxu0 %v441_v25 }
  0x20   :  { %412 = vmatpush3.bf16.msra.mxu1 %v442_v26 }
  0x22   :  { %262 = vmatmul.mubr.bf16.vlgmr.msra.gmra.mrb[0].mxu0 %v337_v27 }
  0x23   :  { %414 = vmatmul.mubr.bf16.vlgmr.msra.gmra.mrb[0].mxu1 %v445_v28 }
  0xf5   :  { %v382_v29 = vpop.f32.mrb[0].mxu0 }
  0xf6   :  { %v303_v30 = vpop.f32.mrb[0].mxu1  ;;  %v383_v31 = vpop.f32.mrb[1].mxu0 }
  0xf7   :  { %v384_v32 = vadd.f32 %v383_v31, %v382_v29  ;;  %v415_v33 = vpop.f32.mrb[1].mxu1  ;;  %v385_v34 = vpop.f32.mrb[2].mxu0 }
  0xf8   :  { %v306_v36 = vpop.f32.mrb[2].mxu1  ;;  %v386_v37 = vpop.f32.mrb[3].mxu0 }
  0xf9   :  { %v304_v38 = vadd.f32 %v384_v32, %v303_v30  ;;  %v416_v39 = vpop.f32.mrb[3].mxu1 }
  0xfb   :  { %v322_v41 = vmul.f32 %v364_v35, %v304_v38 }
  0xfd   :  { %v330_v42 = vadd.f32 %v365_v40, %v322_v41 }
  0xff   :  { %v331_v43 = vmax.f32 %v330_v42, 0.0 }
 0x101   :  { %332 = vst [vmem:[%s564_s4] sm:$0xff] %v331_v43 }

// kernel: _lambda_.145
= control target key start
LH: loop header
LB: loop body
LE: loop exit
PB: predicated region body
PF: predicated region fallthrough
CT: control target
= control target key end

     0   :  { %vm22_vm0 = vcmask 523264   ;;  %v291_v19 = vmov 0.0   ;;  %s380_s1 = inlined_call_operand.vmem [shape: bf16[256,64], index: 1, kind: input, shape index: {}]   ;;  %s381_s0 = inlined_call_operand.vmem [shape: bf16[8,256], index: 0, kind: input, shape index: {}]   ;;  %s382_s2 = inlined_call_operand.vmem [shape: f32[1,64], index: 2, kind: input, shape index: {}]   ;;  %s383_s3 = inlined_call_operand.vmem [shape: f32[1,64], index: 3, kind: input, shape index: {}]   ;;  %s384_s4 = inlined_call_operand.vmem [shape: f32[8,64], index: 4, kind: output, shape index: {}]  }
   0x1   :  { %v273_v0 = vld [vmem:[%s380_s1 + $0x40] sm:$0xff]   ;;  %v275_v2 = vld [vmem:[%s380_s1 + $0x48] sm:$0xff]   ;;  %v277_v4 = vld [vmem:[%s380_s1 + $0x50] sm:$0xff]   ;;  %23 = vst.msk [vmem:[#allocation2] sm:$0xff] %vm22_vm0, %v291_v19 }
   0x2   :  { %v274_v1 = vld [vmem:[%s380_s1] sm:$0xff]   ;;  %250 = vmatprep.subr.bf16.mxu0 %v273_v0  ;;  %v276_v3 = vld [vmem:[%s380_s1 + $0x8] sm:$0xff]   ;;  %v278_v5 = vld [vmem:[%s380_s1 + $0x10] sm:$0xff]  }
   0x3   :  { %251 = vmatpush3.bf16.msra.mxu0 %v274_v1  ;;  %v279_v6 = vld [vmem:[%s380_s1 + $0x58] sm:$0xff]   ;;  %v281_v8 = vld [vmem:[%s380_s1 + $0x60] sm:$0xff]   ;;  %v283_v10 = vld [vmem:[%s380_s1 + $0x68] sm:$0xff]  }
   0x4   :  { %252 = vmatprep.subr.bf16.mxu0 %v275_v2  ;;  %v280_v7 = vld [vmem:[%s380_s1 + $0x18] sm:$0xff]   ;;  %v282_v9 = vld [vmem:[%s380_s1 + $0x20] sm:$0xff]   ;;  %v284_v13 = vld [vmem:[%s380_s1 + $0x28] sm:$0xff]  }
   0x5   :  { %v25_v11 = vld [vmem:[%s381_s0] sm:$0xff]  ;;  %v285_v14 = vld [vmem:[%s380_s1 + $0x70] sm:$0xff]   ;;  %v287_v16 = vld [vmem:[%s380_s1 + $0x78] sm:$0xff]  }
   0x6   :  { %v231_v12 = vcombine.high %v25_v11, %v25_v11  ;;  %v286_v15 = vld [vmem:[%s380_s1 + $0x30] sm:$0xff]   ;;  %v288_v17 = vld [vmem:[%s380_s1 + $0x38] sm:$0xff]   ;;  %v230_v18 = vcombine.low %v25_v11, %v25_v11  ;;  %v248_v27 = vld [vmem:[%s382_s2] ss:$0 sm:$0xff] }
   0x7   :  { %253 = vmatpush3.bf16.msra.mxu0 %v276_v3  ;;  %v249_v29 = vld [vmem:[%s383_s3] ss:$0 sm:$0xff] }
   0x8   :  { %254 = vmatprep.subr.bf16.mxu0 %v277_v4  ;;  %193 = vmatprep.mubr.bf16.mxu0 %v231_v12  ;;  %v24_v21 = vld [vmem:[#allocation2] sm:$0xff] }
   0xb   :  { %255 = vmatpush3.bf16.msra.mxu0 %v278_v5 }
   0xc   :  { %256 = vmatprep.subr.bf16.mxu0 %v279_v6 }
   0xf   :  { %257 = vmatpush3.bf16.msra.mxu0 %v280_v7 }
  0x10   :  { %258 = vmatprep.subr.bf16.mxu0 %v281_v8 }
  0x13   :  { %259 = vmatpush3.bf16.msra.mxu0 %v282_v9 }
  0x14   :  { %260 = vmatprep.subr.bf16.mxu0 %v283_v10 }
  0x17   :  { %261 = vmatpush3.bf16.msra.mxu0 %v284_v13 }
  0x18   :  { %262 = vmatprep.subr.bf16.mxu0 %v285_v14 }
  0x1b   :  { %263 = vmatpush3.bf16.msra.mxu0 %v286_v15 }
  0x1c   :  { %264 = vmatprep.subr.bf16.mxu0 %v287_v16 }
  0x1f   :  { %265 = vmatpush3.bf16.msra.mxu0 %v288_v17 }
  0x22   :  { %194 = vmatmul.mubr.bf16.vlgmr.msra.gmra.mrb[0].mxu0 %v230_v18 }
  0xf5   :  { %v266_v20 = vpop.f32.mrb[0].mxu0 }
  0xf6   :  { %v267_v22 = vpop.f32.mrb[1].mxu0 }
  0xf7   :  { %v268_v23 = vadd.f32 %v267_v22, %v266_v20  ;;  %v269_v24 = vpop.f32.mrb[2].mxu0 }
  0xf8   :  { %v270_v25 = vpop.f32.mrb[3].mxu0 }
  0xf9   :  { %v201_v26 = vadd.f32 %v268_v23, %v24_v21 }
  0xfb   :  { %203 = vst.msk [vmem:[#allocation2] sm:$0xff] %vm22_vm0, %v201_v26 }
 0x102   :  { %v207_v28 = vld [vmem:[#allocation2] sm:$0xff] }
 0x103   :  { %v215_v30 = vmul.f32 %v248_v27, %v207_v28 }
 0x105   :  { %v223_v31 = vadd.f32 %v249_v29, %v215_v30 }
 0x107   :  { %v224_v32 = vmax.f32 %v223_v31, 0.0 }
 0x109   :  { %225 = vst.msk [vmem:[%s384_s4] sm:$0xff] %vm22_vm0, %v224_v32 }

// kernel: _lambda_.144
= control target key start
LH: loop header
LB: loop body
LE: loop exit
PB: predicated region body
PF: predicated region fallthrough
CT: control target
= control target key end

     0   :  { %vm22_vm0 = vcmask 523264   ;;  %v208_v0 = vmov 0.0   ;;  %vm209_vm1 = vmmov 0   ;;  %s274_s1 = inlined_call_operand.vmem [shape: bf16[128,64], index: 1, kind: input, shape index: {}]   ;;  %s275_s0 = inlined_call_operand.vmem [shape: bf16[8,128], index: 0, kind: input, shape index: {}]   ;;  %s276_s2 = inlined_call_operand.vmem [shape: f32[1,64], index: 2, kind: input, shape index: {}]   ;;  %s277_s3 = inlined_call_operand.vmem [shape: f32[1,64], index: 3, kind: input, shape index: {}]   ;;  %s278_s4 = inlined_call_operand.vmem [shape: f32[8,64], index: 4, kind: output, shape index: {}]  }
   0x1   :  { %178 = vmatprep.subr.bf16.mxu0 %v208_v0  ;;  %v200_v1 = vld [vmem:[%s274_s1] sm:$0xff]   ;;  %194 = vmatprep.mubr.msk.bf16.mxu0 %vm209_vm1, %v208_v0  ;;  %23 = vst.msk [vmem:[#allocation2] sm:$0xff] %vm22_vm0, %v208_v0  ;;  %v201_v2 = vld [vmem:[%s274_s1 + $0x8] sm:$0xff]   ;;  %v202_v3 = vld [vmem:[%s274_s1 + $0x10] sm:$0xff]  }
   0x2   :  { %179 = vmatpush3.bf16.msra.mxu0 %v200_v1  ;;  %v203_v4 = vld [vmem:[%s274_s1 + $0x18] sm:$0xff]   ;;  %v204_v5 = vld [vmem:[%s274_s1 + $0x20] sm:$0xff]   ;;  %v205_v6 = vld [vmem:[%s274_s1 + $0x28] sm:$0xff]  }
   0x3   :  { %180 = vmatprep.subr.bf16.mxu0 %v208_v0  ;;  %v206_v7 = vld [vmem:[%s274_s1 + $0x30] sm:$0xff]   ;;  %v207_v8 = vld [vmem:[%s274_s1 + $0x38] sm:$0xff]   ;;  %v25_v9 = vld [vmem:[%s275_s0] sm:$0xf] }
   0x4   :  { %v167_v16 = vld [vmem:[%s276_s2] ss:$0 sm:$0xff] }
   0x5   :  { %v168_v18 = vld [vmem:[%s277_s3] ss:$0 sm:$0xff] }
   0x6   :  { %181 = vmatpush3.bf16.msra.mxu0 %v201_v2 }
   0x7   :  { %182 = vmatprep.subr.bf16.mxu0 %v208_v0 }
   0x8   :  { %v24_v10 = vld [vmem:[#allocation2] sm:$0xff] }
   0xa   :  { %183 = vmatpush3.bf16.msra.mxu0 %v202_v3 }
   0xb   :  { %184 = vmatprep.subr.bf16.mxu0 %v208_v0 }
   0xe   :  { %185 = vmatpush3.bf16.msra.mxu0 %v203_v4 }
   0xf   :  { %186 = vmatprep.subr.bf16.mxu0 %v208_v0 }
  0x12   :  { %187 = vmatpush3.bf16.msra.mxu0 %v204_v5 }
  0x13   :  { %188 = vmatprep.subr.bf16.mxu0 %v208_v0 }
  0x16   :  { %189 = vmatpush3.bf16.msra.mxu0 %v205_v6 }
  0x17   :  { %190 = vmatprep.subr.bf16.mxu0 %v208_v0 }
  0x1a   :  { %191 = vmatpush3.bf16.msra.mxu0 %v206_v7 }
  0x1b   :  { %192 = vmatprep.subr.bf16.mxu0 %v208_v0 }
  0x1e   :  { %193 = vmatpush3.bf16.msra.mxu0 %v207_v8 }
  0x21   :  { %195 = vmatmul.mubr.bf16.vlgmr.msra.gmra.mrb[0].mxu0 %v25_v9 }
  0xf4   :  { %v124_v11 = vpop.f32.mrb[0].mxu0 }
  0xf5   :  { %v130_v12 = vadd.f32 %v124_v11, %v24_v10  ;;  %v196_v13 = vpop.f32.mrb[1].mxu0 }
  0xf6   :  { %v127_v14 = vpop.f32.mrb[2].mxu0 }
  0xf7   :  { %132 = vst.msk [vmem:[#allocation2] sm:$0xff] %vm22_vm0, %v130_v12  ;;  %v197_v15 = vpop.f32.mrb[3].mxu0 }
  0xfe   :  { %v136_v17 = vld [vmem:[#allocation2] sm:$0xff] }
  0xff   :  { %v144_v19 = vmul.f32 %v167_v16, %v136_v17 }
 0x101   :  { %v152_v20 = vadd.f32 %v168_v18, %v144_v19 }
 0x103   :  { %v153_v21 = vmax.f32 %v152_v20, 0.0 }
 0x105   :  { %154 = vst.msk [vmem:[%s278_s4] sm:$0xff] %vm22_vm0, %v153_v21 }

// kernel: _lambda_.147
= control target key start
LH: loop header
LB: loop body
LE: loop exit
PB: predicated region body
PF: predicated region fallthrough
CT: control target
= control target key end

     0   :  { %vm22_vm0 = vcmask 523264   ;;  %v525_v38 = vmov 0.0   ;;  %s665_s1 = inlined_call_operand.vmem [shape: bf16[512,64], index: 1, kind: input, shape index: {}]   ;;  %s666_s0 = inlined_call_operand.vmem [shape: bf16[8,512], index: 0, kind: input, shape index: {}]   ;;  %s667_s2 = inlined_call_operand.vmem [shape: f32[1,64], index: 2, kind: input, shape index: {}]   ;;  %s668_s3 = inlined_call_operand.vmem [shape: f32[1,64], index: 3, kind: input, shape index: {}]   ;;  %s669_s4 = inlined_call_operand.vmem [shape: f32[8,64], index: 4, kind: output, shape index: {}]  }
   0x1   :  { %v489_v0 = vld [vmem:[%s665_s1 + $0x40] sm:$0xff]   ;;  %v493_v4 = vld [vmem:[%s665_s1 + $0x48] sm:$0xff]   ;;  %v497_v8 = vld [vmem:[%s665_s1 + $0x50] sm:$0xff]   ;;  %23 = vst.msk [vmem:[#allocation2] sm:$0xff] %vm22_vm0, %v525_v38 }
   0x2   :  { %v490_v1 = vld [vmem:[%s665_s1 + $0xc0] sm:$0xff]   ;;  %444 = vmatprep.subr.bf16.mxu0 %v489_v0  ;;  %v494_v5 = vld [vmem:[%s665_s1 + $0xc8] sm:$0xff]   ;;  %v498_v9 = vld [vmem:[%s665_s1 + $0xd0] sm:$0xff]  }
   0x3   :  { %v491_v2 = vld [vmem:[%s665_s1] sm:$0xff]   ;;  %466 = vmatprep.subr.bf16.mxu1 %v490_v1  ;;  %v495_v6 = vld [vmem:[%s665_s1 + $0x8] sm:$0xff]   ;;  %v499_v10 = vld [vmem:[%s665_s1 + $0x10] sm:$0xff]  }
   0x4   :  { %v492_v3 = vld [vmem:[%s665_s1 + $0x80] sm:$0xff]   ;;  %445 = vmatpush3.bf16.msra.mxu0 %v491_v2  ;;  %v496_v7 = vld [vmem:[%s665_s1 + $0x88] sm:$0xff]   ;;  %v500_v11 = vld [vmem:[%s665_s1 + $0x90] sm:$0xff]  }
   0x5   :  { %467 = vmatpush3.bf16.msra.mxu1 %v492_v3  ;;  %446 = vmatprep.subr.bf16.mxu0 %v493_v4  ;;  %v501_v12 = vld [vmem:[%s665_s1 + $0x58] sm:$0xff]   ;;  %v505_v16 = vld [vmem:[%s665_s1 + $0x60] sm:$0xff]   ;;  %v509_v20 = vld [vmem:[%s665_s1 + $0x68] sm:$0xff]  }
   0x6   :  { %468 = vmatprep.subr.bf16.mxu1 %v494_v5  ;;  %v502_v13 = vld [vmem:[%s665_s1 + $0xd8] sm:$0xff]   ;;  %v506_v17 = vld [vmem:[%s665_s1 + $0xe0] sm:$0xff]   ;;  %v510_v21 = vld [vmem:[%s665_s1 + $0xe8] sm:$0xff]  }
   0x7   :  { %v503_v14 = vld [vmem:[%s665_s1 + $0x18] sm:$0xff]   ;;  %v507_v18 = vld [vmem:[%s665_s1 + $0x20] sm:$0xff]   ;;  %v511_v22 = vld [vmem:[%s665_s1 + $0x28] sm:$0xff]  }
   0x8   :  { %447 = vmatpush3.bf16.msra.mxu0 %v495_v6  ;;  %v504_v15 = vld [vmem:[%s665_s1 + $0x98] sm:$0xff]   ;;  %v508_v19 = vld [vmem:[%s665_s1 + $0xa0] sm:$0xff]   ;;  %v512_v23 = vld [vmem:[%s665_s1 + $0xa8] sm:$0xff]  }
   0x9   :  { %469 = vmatpush3.bf16.msra.mxu1 %v496_v7  ;;  %448 = vmatprep.subr.bf16.mxu0 %v497_v8  ;;  %v513_v24 = vld [vmem:[%s665_s1 + $0x70] sm:$0xff]   ;;  %v517_v28 = vld [vmem:[%s665_s1 + $0x78] sm:$0xff]   ;;  %v25_v32 = vld [vmem:[%s666_s0] sm:$0xff] }
   0xa   :  { %470 = vmatprep.subr.bf16.mxu1 %v498_v9  ;;  %v514_v25 = vld [vmem:[%s665_s1 + $0xf0] sm:$0xff]   ;;  %v518_v29 = vld [vmem:[%s665_s1 + $0xf8] sm:$0xff]   ;;  %v26_v33 = vld [vmem:[%s666_s0 + $0x8] sm:$0xff]  ;;  %v406_v34 = vcombine.low %v25_v32, %v25_v32  ;;  %v407_v35 = vcombine.high %v25_v32, %v25_v32 }
   0xb   :  { %v515_v26 = vld [vmem:[%s665_s1 + $0x30] sm:$0xff]   ;;  %v519_v30 = vld [vmem:[%s665_s1 + $0x38] sm:$0xff]   ;;  %v408_v36 = vcombine.low %v26_v33, %v26_v33  ;;  %v409_v37 = vcombine.high %v26_v33, %v26_v33  ;;  %v24_v47 = vld [vmem:[#allocation2] sm:$0xff] }
   0xc   :  { %449 = vmatpush3.bf16.msra.mxu0 %v499_v10  ;;  %v516_v27 = vld [vmem:[%s665_s1 + $0xb0] sm:$0xff]   ;;  %v520_v31 = vld [vmem:[%s665_s1 + $0xb8] sm:$0xff]   ;;  %329 = vmatprep.mubr.bf16.mxu0 %v407_v35  ;;  %v442_v52 = vld [vmem:[%s667_s2] ss:$0 sm:$0xff] }
   0xd   :  { %471 = vmatpush3.bf16.msra.mxu1 %v500_v11  ;;  %450 = vmatprep.subr.bf16.mxu0 %v501_v12  ;;  %v443_v54 = vld [vmem:[%s668_s3] ss:$0 sm:$0xff] }
   0xe   :  { %472 = vmatprep.subr.bf16.mxu1 %v502_v13  ;;  %369 = vmatprep.mubr.bf16.mxu1 %v409_v37 }
  0x10   :  { %451 = vmatpush3.bf16.msra.mxu0 %v503_v14 }
  0x11   :  { %473 = vmatpush3.bf16.msra.mxu1 %v504_v15  ;;  %452 = vmatprep.subr.bf16.mxu0 %v505_v16 }
  0x12   :  { %474 = vmatprep.subr.bf16.mxu1 %v506_v17 }
  0x14   :  { %453 = vmatpush3.bf16.msra.mxu0 %v507_v18 }
  0x15   :  { %475 = vmatpush3.bf16.msra.mxu1 %v508_v19  ;;  %454 = vmatprep.subr.bf16.mxu0 %v509_v20 }
  0x16   :  { %476 = vmatprep.subr.bf16.mxu1 %v510_v21 }
  0x18   :  { %455 = vmatpush3.bf16.msra.mxu0 %v511_v22 }
  0x19   :  { %477 = vmatpush3.bf16.msra.mxu1 %v512_v23  ;;  %456 = vmatprep.subr.bf16.mxu0 %v513_v24 }
  0x1a   :  { %478 = vmatprep.subr.bf16.mxu1 %v514_v25 }
  0x1c   :  { %457 = vmatpush3.bf16.msra.mxu0 %v515_v26 }
  0x1d   :  { %479 = vmatpush3.bf16.msra.mxu1 %v516_v27  ;;  %458 = vmatprep.subr.bf16.mxu0 %v517_v28 }
  0x1e   :  { %480 = vmatprep.subr.bf16.mxu1 %v518_v29 }
  0x20   :  { %459 = vmatpush3.bf16.msra.mxu0 %v519_v30 }
  0x21   :  { %481 = vmatpush3.bf16.msra.mxu1 %v520_v31 }
  0x23   :  { %330 = vmatmul.mubr.bf16.vlgmr.msra.gmra.mrb[0].mxu0 %v406_v34 }
  0x24   :  { %370 = vmatmul.mubr.bf16.vlgmr.msra.gmra.mrb[0].mxu1 %v408_v36 }
  0xf6   :  { %v460_v39 = vpop.f32.mrb[0].mxu0 }
  0xf7   :  { %v482_v40 = vpop.f32.mrb[0].mxu1  ;;  %v461_v41 = vpop.f32.mrb[1].mxu0 }
  0xf8   :  { %v483_v42 = vpop.f32.mrb[1].mxu1  ;;  %v462_v43 = vadd.f32 %v461_v41, %v460_v39  ;;  %v463_v45 = vpop.f32.mrb[2].mxu0 }
  0xf9   :  { %v484_v44 = vadd.f32 %v483_v42, %v482_v40  ;;  %v485_v46 = vpop.f32.mrb[2].mxu1  ;;  %v464_v48 = vpop.f32.mrb[3].mxu0 }
  0xfa   :  { %v486_v49 = vpop.f32.mrb[3].mxu1 }
  0xfb   :  { %v372_v50 = vadd.f32 %v484_v44, %v462_v43 }
  0xfd   :  { %v377_v51 = vadd.f32 %v372_v50, %v24_v47 }
  0xff   :  { %379 = vst.msk [vmem:[#allocation2] sm:$0xff] %vm22_vm0, %v377_v51 }
 0x106   :  { %v383_v53 = vld [vmem:[#allocation2] sm:$0xff] }
 0x107   :  { %v391_v55 = vmul.f32 %v442_v52, %v383_v53 }
 0x109   :  { %v399_v56 = vadd.f32 %v443_v54, %v391_v55 }
 0x10b   :  { %v400_v57 = vmax.f32 %v399_v56, 0.0 }
 0x10d   :  { %401 = vst.msk [vmem:[%s669_s4] sm:$0xff] %vm22_vm0, %v400_v57 }

// kernel: _lambda_.159
= control target key start
LH: loop header
LB: loop body
LE: loop exit
PB: predicated region body
PF: predicated region fallthrough
CT: control target
= control target key end

     0   :  { %vm22_vm0 = vcmask 261120   ;;  %v371_v20 = vmov 0.0   ;;  %s487_s1 = inlined_call_operand.vmem [shape: bf16[256,32], index: 1, kind: input, shape index: {}]   ;;  %s488_s0 = inlined_call_operand.vmem [shape: bf16[32,256], index: 0, kind: input, shape index: {}]   ;;  %s489_s2 = inlined_call_operand.vmem [shape: f32[1,32], index: 2, kind: input, shape index: {}]   ;;  %s490_s3 = inlined_call_operand.vmem [shape: f32[1,32], index: 3, kind: input, shape index: {}]   ;;  %s491_s4 = inlined_call_operand.vmem [shape: f32[32,32], index: 4, kind: output, shape index: {}]  }
   0x1   :  { %v349_v0 = vld [vmem:[%s487_s1 + $0x40] sm:$0xff]   ;;  %v351_v2 = vld [vmem:[%s487_s1 + $0x48] sm:$0xff]   ;;  %v353_v4 = vld [vmem:[%s487_s1 + $0x50] sm:$0xff]   ;;  %23 = vst.msk [vmem:[#allocation2] sm:$0xff] %vm22_vm0, %v371_v20 }
   0x2   :  { %v350_v1 = vld [vmem:[%s487_s1] sm:$0xff]   ;;  %304 = vmatprep.subr.bf16.mxu0 %v349_v0  ;;  %332 = vmatprep.subr.bf16.mxu1 %v349_v0  ;;  %v352_v3 = vld [vmem:[%s487_s1 + $0x8] sm:$0xff]   ;;  %v354_v5 = vld [vmem:[%s487_s1 + $0x10] sm:$0xff]   ;;  %24 = vst.msk [vmem:[#allocation2 + $0x8] sm:$0xff] %vm22_vm0, %v371_v20 }
   0x3   :  { %305 = vmatpush3.bf16.msra.mxu0 %v350_v1  ;;  %340 = vmatpush3.bf16.msra.mxu1 %v350_v1  ;;  %v355_v6 = vld [vmem:[%s487_s1 + $0x58] sm:$0xff]   ;;  %v357_v8 = vld [vmem:[%s487_s1 + $0x60] sm:$0xff]   ;;  %v359_v10 = vld [vmem:[%s487_s1 + $0x68] sm:$0xff]   ;;  %25 = vst.msk [vmem:[#allocation2 + $0x10] sm:$0xff] %vm22_vm0, %v371_v20 }
   0x4   :  { %306 = vmatprep.subr.bf16.mxu0 %v351_v2  ;;  %333 = vmatprep.subr.bf16.mxu1 %v351_v2  ;;  %v356_v7 = vld [vmem:[%s487_s1 + $0x18] sm:$0xff]   ;;  %v358_v9 = vld [vmem:[%s487_s1 + $0x20] sm:$0xff]   ;;  %v360_v13 = vld [vmem:[%s487_s1 + $0x28] sm:$0xff]   ;;  %26 = vst.msk [vmem:[#allocation2 + $0x18] sm:$0xff] %vm22_vm0, %v371_v20 }
   0x5   :  { %v367_v11 = vld [vmem:[%s488_s0 + $0x4] ss:$8 sps:$4 sm:$0xff]   ;;  %v370_v12 = vld [vmem:[%s488_s0 + $0x14] ss:$8 sps:$4 sm:$0xff]   ;;  %v365_v18 = vld [vmem:[%s488_s0] ss:$8 sps:$4 sm:$0xff]  }
   0x6   :  { %v361_v14 = vld [vmem:[%s487_s1 + $0x70] sm:$0xff]   ;;  %215 = vmatprep.mubr.bf16.mxu0 %v367_v11  ;;  %223 = vmatprep.mubr.bf16.mxu1 %v370_v12  ;;  %v363_v16 = vld [vmem:[%s487_s1 + $0x78] sm:$0xff]   ;;  %v302_v41 = vld [vmem:[%s489_s2] ss:$0 sm:$0xff] }
   0x7   :  { %307 = vmatpush3.bf16.msra.mxu0 %v352_v3  ;;  %341 = vmatpush3.bf16.msra.mxu1 %v352_v3  ;;  %v362_v15 = vld [vmem:[%s487_s1 + $0x30] sm:$0xff]   ;;  %v364_v17 = vld [vmem:[%s487_s1 + $0x38] sm:$0xff]   ;;  %v303_v43 = vld [vmem:[%s490_s3] ss:$0 sm:$0xff] }
   0x8   :  { %308 = vmatprep.subr.bf16.mxu0 %v353_v4  ;;  %334 = vmatprep.subr.bf16.mxu1 %v353_v4  ;;  %v368_v19 = vld [vmem:[%s488_s0 + $0x10] ss:$8 sps:$4 sm:$0xff]   ;;  %v27_v23 = vld [vmem:[#allocation2] sm:$0xff] }
   0x9   :  { %v28_v31 = vld [vmem:[#allocation2 + $0x8] sm:$0xff] }
   0xa   :  { %v29_v25 = vld [vmem:[#allocation2 + $0x10] sm:$0xff] }
   0xb   :  { %309 = vmatpush3.bf16.msra.mxu0 %v354_v5  ;;  %342 = vmatpush3.bf16.msra.mxu1 %v354_v5  ;;  %v30_v33 = vld [vmem:[#allocation2 + $0x18] sm:$0xff] }
   0xc   :  { %310 = vmatprep.subr.bf16.mxu0 %v355_v6  ;;  %335 = vmatprep.subr.bf16.mxu1 %v355_v6 }
   0xf   :  { %311 = vmatpush3.bf16.msra.mxu0 %v356_v7  ;;  %343 = vmatpush3.bf16.msra.mxu1 %v356_v7 }
  0x10   :  { %312 = vmatprep.subr.bf16.mxu0 %v357_v8  ;;  %336 = vmatprep.subr.bf16.mxu1 %v357_v8 }
  0x13   :  { %313 = vmatpush3.bf16.msra.mxu0 %v358_v9  ;;  %344 = vmatpush3.bf16.msra.mxu1 %v358_v9 }
  0x14   :  { %314 = vmatprep.subr.bf16.mxu0 %v359_v10  ;;  %337 = vmatprep.subr.bf16.mxu1 %v359_v10 }
  0x17   :  { %315 = vmatpush3.bf16.msra.mxu0 %v360_v13  ;;  %345 = vmatpush3.bf16.msra.mxu1 %v360_v13 }
  0x18   :  { %316 = vmatprep.subr.bf16.mxu0 %v361_v14  ;;  %338 = vmatprep.subr.bf16.mxu1 %v361_v14 }
  0x1b   :  { %317 = vmatpush3.bf16.msra.mxu0 %v362_v15  ;;  %346 = vmatpush3.bf16.msra.mxu1 %v362_v15 }
  0x1c   :  { %318 = vmatprep.subr.bf16.mxu0 %v363_v16  ;;  %339 = vmatprep.subr.bf16.mxu1 %v363_v16 }
  0x1f   :  { %319 = vmatpush3.bf16.msra.mxu0 %v364_v17  ;;  %347 = vmatpush3.bf16.msra.mxu1 %v364_v17 }
  0x22   :  { %216 = vmatmul.mubr.bf16.vlgmr.msra.gmra.mrb[0].mxu0 %v365_v18  ;;  %224 = vmatmul.mubr.bf16.vlgmr.msra.gmra.mrb[0].mxu1 %v368_v19 }
  0xf5   :  { %v320_v21 = vpop.f32.mrb[0].mxu0  ;;  %v326_v22 = vpop.f32.mrb[0].mxu1 }
  0xf6   :  { %v321_v24 = vpop.f32.mrb[1].mxu0  ;;  %v327_v26 = vpop.f32.mrb[1].mxu1 }
  0xf7   :  { %v322_v27 = vadd.f32 %v321_v24, %v320_v21  ;;  %v328_v28 = vadd.f32 %v327_v26, %v326_v22  ;;  %v323_v29 = vpop.f32.mrb[2].mxu0  ;;  %v329_v30 = vpop.f32.mrb[2].mxu1 }
  0xf8   :  { %v324_v32 = vpop.f32.mrb[3].mxu0  ;;  %v330_v34 = vpop.f32.mrb[3].mxu1 }
  0xf9   :  { %v232_v35 = vadd.f32 %v322_v27, %v27_v23  ;;  %v234_v36 = vadd.f32 %v328_v28, %v29_v25  ;;  %v325_v37 = vadd.f32 %v324_v32, %v323_v29  ;;  %v331_v38 = vadd.f32 %v330_v34, %v329_v30 }
  0xfb   :  { %237 = vst.msk [vmem:[#allocation2] sm:$0xff] %vm22_vm0, %v232_v35  ;;  %239 = vst.msk [vmem:[#allocation2 + $0x10] sm:$0xff] %vm22_vm0, %v234_v36  ;;  %v233_v39 = vadd.f32 %v325_v37, %v28_v31  ;;  %v235_v40 = vadd.f32 %v331_v38, %v30_v33 }
  0xfd   :  { %238 = vst.msk [vmem:[#allocation2 + $0x8] sm:$0xff] %vm22_vm0, %v233_v39  ;;  %240 = vst.msk [vmem:[#allocation2 + $0x18] sm:$0xff] %vm22_vm0, %v235_v40 }
 0x102   :  { %v244_v42 = vld [vmem:[#allocation2] sm:$0xff]  ;;  %v246_v44 = vld [vmem:[#allocation2 + $0x10] sm:$0xff] }
 0x103   :  { %v255_v45 = vmul.f32 %v302_v41, %v244_v42  ;;  %v257_v46 = vmul.f32 %v302_v41, %v246_v44 }
 0x104   :  { %v245_v47 = vld [vmem:[#allocation2 + $0x8] sm:$0xff]  ;;  %v247_v48 = vld [vmem:[#allocation2 + $0x18] sm:$0xff] }
 0x105   :  { %v266_v49 = vadd.f32 %v303_v43, %v255_v45  ;;  %v268_v50 = vadd.f32 %v303_v43, %v257_v46  ;;  %v256_v51 = vmul.f32 %v302_v41, %v245_v47  ;;  %v258_v52 = vmul.f32 %v302_v41, %v247_v48 }
 0x107   :  { %v270_v53 = vmax.f32 %v266_v49, 0.0  ;;  %v272_v54 = vmax.f32 %v268_v50, 0.0  ;;  %v267_v55 = vadd.f32 %v303_v43, %v256_v51  ;;  %v269_v56 = vadd.f32 %v303_v43, %v258_v52 }
 0x109   :  { %274 = vst.msk [vmem:[%s491_s4] sm:$0xff] %vm22_vm0, %v270_v53  ;;  %276 = vst.msk [vmem:[%s491_s4 + $0x10] sm:$0xff] %vm22_vm0, %v272_v54  ;;  %v271_v57 = vmax.f32 %v267_v55, 0.0  ;;  %v273_v58 = vmax.f32 %v269_v56, 0.0 }
 0x10b   :  { %275 = vst.msk [vmem:[%s491_s4 + $0x8] sm:$0xff] %vm22_vm0, %v271_v57  ;;  %277 = vst.msk [vmem:[%s491_s4 + $0x18] sm:$0xff] %vm22_vm0, %v273_v58 }

// kernel: _lambda_.158
= control target key start
LH: loop header
LB: loop body
LE: loop exit
PB: predicated region body
PF: predicated region fallthrough
CT: control target
= control target key end

     0   :  { %vm22_vm0 = vcmask 261120   ;;  %v263_v1 = vmov 0.0   ;;  %s349_s1 = inlined_call_operand.vmem [shape: bf16[128,32], index: 1, kind: input, shape index: {}]   ;;  %s350_s0 = inlined_call_operand.vmem [shape: bf16[32,128], index: 0, kind: input, shape index: {}]   ;;  %s351_s2 = inlined_call_operand.vmem [shape: f32[1,32], index: 2, kind: input, shape index: {}]   ;;  %s352_s3 = inlined_call_operand.vmem [shape: f32[1,32], index: 3, kind: input, shape index: {}]   ;;  %s353_s4 = inlined_call_operand.vmem [shape: f32[32,32], index: 4, kind: output, shape index: {}]  }
   0x1   :  { %v253_v0 = vld [vmem:[%s349_s1] sm:$0xff]   ;;  %25 = vst.msk [vmem:[#allocation2 + $0x10] sm:$0xff] %vm22_vm0, %v263_v1  ;;  %23 = vst.msk [vmem:[#allocation2] sm:$0xff] %vm22_vm0, %v263_v1  ;;  %v254_v2 = vld [vmem:[%s349_s1 + $0x8] sm:$0xff]  }
   0x2   :  { %24 = vst.msk [vmem:[#allocation2 + $0x8] sm:$0xff] %vm22_vm0, %v263_v1  ;;  %26 = vst.msk [vmem:[#allocation2 + $0x18] sm:$0xff] %vm22_vm0, %v263_v1  ;;  %232 = vmatprep.subr.bf16.mxu0 %v253_v0  ;;  %v255_v3 = vld [vmem:[%s349_s1 + $0x10] sm:$0xff]   ;;  %v256_v4 = vld [vmem:[%s349_s1 + $0x18] sm:$0xff]  }
   0x3   :  { %233 = vmatpush3.bf16.msra.mxu0 %v253_v0  ;;  %v261_v5 = vld [vmem:[%s350_s0] sm:$0xff]   ;;  %v258_v7 = vld [vmem:[%s349_s1 + $0x28] sm:$0xff]   ;;  %v259_v8 = vld [vmem:[%s349_s1 + $0x30] sm:$0xff]  }
   0x4   :  { %234 = vmatprep.subr.bf16.mxu0 %v254_v2  ;;  %248 = vmatprep.mubr.bf16.mxu0 %v261_v5  ;;  %v257_v6 = vld [vmem:[%s349_s1 + $0x20] sm:$0xff]   ;;  %v260_v9 = vld [vmem:[%s349_s1 + $0x38] sm:$0xff]   ;;  %v262_v10 = vld [vmem:[%s350_s0 + $0x8] sm:$0xff]  }
   0x5   :  { %v220_v23 = vld [vmem:[%s351_s2] ss:$0 sm:$0xff] }
   0x6   :  { %v221_v25 = vld [vmem:[%s352_s3] ss:$0 sm:$0xff] }
   0x7   :  { %235 = vmatpush3.bf16.msra.mxu0 %v254_v2 }
   0x8   :  { %236 = vmatprep.subr.bf16.mxu0 %v255_v3  ;;  %v29_v11 = vld [vmem:[#allocation2 + $0x10] sm:$0xff]  ;;  %v27_v12 = vld [vmem:[#allocation2] sm:$0xff] }
   0x9   :  { %v30_v14 = vld [vmem:[#allocation2 + $0x18] sm:$0xff]  ;;  %v28_v17 = vld [vmem:[#allocation2 + $0x8] sm:$0xff] }
   0xb   :  { %237 = vmatpush3.bf16.msra.mxu0 %v255_v3 }
   0xc   :  { %238 = vmatprep.subr.bf16.mxu0 %v256_v4 }
   0xf   :  { %239 = vmatpush3.bf16.msra.mxu0 %v256_v4 }
  0x10   :  { %240 = vmatprep.subr.bf16.mxu0 %v257_v6 }
  0x13   :  { %241 = vmatpush3.bf16.msra.mxu0 %v257_v6 }
  0x14   :  { %242 = vmatprep.subr.bf16.mxu0 %v258_v7 }
  0x17   :  { %243 = vmatpush3.bf16.msra.mxu0 %v258_v7 }
  0x18   :  { %244 = vmatprep.subr.bf16.mxu0 %v259_v8 }
  0x1b   :  { %245 = vmatpush3.bf16.msra.mxu0 %v259_v8 }
  0x1c   :  { %246 = vmatprep.subr.bf16.mxu0 %v260_v9 }
  0x1f   :  { %247 = vmatpush3.bf16.msra.mxu0 %v260_v9 }
  0x22   :  { %249 = vmatmul.mubr.bf16.vlgmr.msra.gmra.mrb[0].mxu0 %v262_v10 }
  0xf5   :  { %v250_v13 = vpop.f32.mrb[0].mxu0 }
  0xf6   :  { %v162_v15 = vadd.f32 %v250_v13, %v29_v11  ;;  %v145_v16 = vpop.f32.mrb[1].mxu0 }
  0xf7   :  { %v160_v18 = vadd.f32 %v145_v16, %v27_v12  ;;  %v251_v19 = vpop.f32.mrb[2].mxu0 }
  0xf8   :  { %167 = vst.msk [vmem:[#allocation2 + $0x10] sm:$0xff] %vm22_vm0, %v162_v15  ;;  %v163_v20 = vadd.f32 %v251_v19, %v30_v14  ;;  %v148_v21 = vpop.f32.mrb[3].mxu0 }
  0xf9   :  { %165 = vst.msk [vmem:[#allocation2] sm:$0xff] %vm22_vm0, %v160_v18  ;;  %v161_v22 = vadd.f32 %v148_v21, %v28_v17 }
  0xfa   :  { %168 = vst.msk [vmem:[#allocation2 + $0x18] sm:$0xff] %vm22_vm0, %v163_v20 }
  0xfb   :  { %166 = vst.msk [vmem:[#allocation2 + $0x8] sm:$0xff] %vm22_vm0, %v161_v22 }
  0xff   :  { %v174_v24 = vld [vmem:[#allocation2 + $0x10] sm:$0xff] }
 0x100   :  { %v185_v26 = vmul.f32 %v220_v23, %v174_v24  ;;  %v172_v27 = vld [vmem:[#allocation2] sm:$0xff] }
 0x101   :  { %v183_v28 = vmul.f32 %v220_v23, %v172_v27  ;;  %v175_v29 = vld [vmem:[#allocation2 + $0x18] sm:$0xff] }
 0x102   :  { %v196_v30 = vadd.f32 %v221_v25, %v185_v26  ;;  %v186_v31 = vmul.f32 %v220_v23, %v175_v29  ;;  %v173_v32 = vld [vmem:[#allocation2 + $0x8] sm:$0xff] }
 0x103   :  { %v194_v33 = vadd.f32 %v221_v25, %v183_v28  ;;  %v184_v34 = vmul.f32 %v220_v23, %v173_v32 }
 0x104   :  { %v200_v35 = vmax.f32 %v196_v30, 0.0  ;;  %v197_v36 = vadd.f32 %v221_v25, %v186_v31 }
 0x105   :  { %v198_v37 = vmax.f32 %v194_v33, 0.0  ;;  %v195_v38 = vadd.f32 %v221_v25, %v184_v34 }
 0x106   :  { %204 = vst.msk [vmem:[%s353_s4 + $0x10] sm:$0xff] %vm22_vm0, %v200_v35  ;;  %v201_v39 = vmax.f32 %v197_v36, 0.0 }
 0x107   :  { %202 = vst.msk [vmem:[%s353_s4] sm:$0xff] %vm22_vm0, %v198_v37  ;;  %v199_v40 = vmax.f32 %v195_v38, 0.0 }
 0x108   :  { %205 = vst.msk [vmem:[%s353_s4 + $0x18] sm:$0xff] %vm22_vm0, %v201_v39 }
 0x109   :  { %203 = vst.msk [vmem:[%s353_s4 + $0x8] sm:$0xff] %vm22_vm0, %v199_v40 }

// kernel: _lambda_.156
= control target key start
LH: loop header
LB: loop body
LE: loop exit
PB: predicated region body
PF: predicated region fallthrough
CT: control target
= control target key end

     0   :  { %vm22_vm0 = vcmask 261120   ;;  %v218_v1 = vmov 0.0   ;;  %vm77_vm1 = vcmask 523264   ;;  %s292_s1 = inlined_call_operand.vmem [shape: bf16[64,32], index: 1, kind: input, shape index: {}]   ;;  %s293_s0 = inlined_call_operand.vmem [shape: bf16[32,64], index: 0, kind: input, shape index: {}]   ;;  %s294_s2 = inlined_call_operand.vmem [shape: f32[1,32], index: 2, kind: input, shape index: {}]   ;;  %s295_s3 = inlined_call_operand.vmem [shape: f32[1,32], index: 3, kind: input, shape index: {}]   ;;  %s296_s4 = inlined_call_operand.vmem [shape: f32[32,32], index: 4, kind: output, shape index: {}]  }
   0x1   :  { %v212_v0 = vld [vmem:[%s292_s1] sm:$0xff]   ;;  %25 = vst.msk [vmem:[#allocation2 + $0x10] sm:$0xff] %vm22_vm0, %v218_v1  ;;  %23 = vst.msk [vmem:[#allocation2] sm:$0xff] %vm22_vm0, %v218_v1  ;;  %v213_v2 = vld [vmem:[%s292_s1 + $0x8] sm:$0xff]  }
   0x2   :  { %24 = vst.msk [vmem:[#allocation2 + $0x8] sm:$0xff] %vm22_vm0, %v218_v1  ;;  %26 = vst.msk [vmem:[#allocation2 + $0x18] sm:$0xff] %vm22_vm0, %v218_v1  ;;  %199 = vmatprep.subr.bf16.mxu0 %v212_v0  ;;  %v214_v3 = vld [vmem:[%s292_s1 + $0x10] sm:$0xff]   ;;  %v216_v4 = vld [vmem:[%s293_s0] sm:$0xff]  }
   0x3   :  { %200 = vmatpush3.bf16.msra.mxu0 %v212_v0  ;;  %207 = vmatprep.mubr.msk.bf16.mxu0 %vm77_vm1, %v216_v4  ;;  %v215_v5 = vld [vmem:[%s292_s1 + $0x18] sm:$0xff]   ;;  %v217_v6 = vld [vmem:[%s293_s0 + $0x8] sm:$0xff]   ;;  %v191_v19 = vld [vmem:[%s294_s2] ss:$0 sm:$0xff] }
   0x4   :  { %201 = vmatprep.subr.bf16.mxu0 %v213_v2  ;;  %v192_v21 = vld [vmem:[%s295_s3] ss:$0 sm:$0xff] }
   0x7   :  { %202 = vmatpush3.bf16.msra.mxu0 %v213_v2 }
   0x8   :  { %203 = vmatprep.subr.bf16.mxu0 %v214_v3  ;;  %v29_v7 = vld [vmem:[#allocation2 + $0x10] sm:$0xff]  ;;  %v27_v8 = vld [vmem:[#allocation2] sm:$0xff] }
   0x9   :  { %v30_v10 = vld [vmem:[#allocation2 + $0x18] sm:$0xff]  ;;  %v28_v13 = vld [vmem:[#allocation2 + $0x8] sm:$0xff] }
   0xb   :  { %204 = vmatpush3.bf16.msra.mxu0 %v214_v3 }
   0xc   :  { %205 = vmatprep.subr.bf16.mxu0 %v215_v5 }
   0xf   :  { %206 = vmatpush3.bf16.msra.mxu0 %v215_v5 }
  0x12   :  { %208 = vmatmul.mubr.msk.bf16.vlgmr.msra.gmra.mrb[0].mxu0 %vm77_vm1, %v217_v6 }
  0xe5   :  { %v209_v9 = vpop.f32.mrb[0].mxu0 }
  0xe6   :  { %v135_v11 = vadd.f32 %v209_v9, %v29_v7  ;;  %v118_v12 = vpop.f32.mrb[1].mxu0 }
  0xe7   :  { %v133_v14 = vadd.f32 %v118_v12, %v27_v8  ;;  %v210_v15 = vpop.f32.mrb[2].mxu0 }
  0xe8   :  { %140 = vst.msk [vmem:[#allocation2 + $0x10] sm:$0xff] %vm22_vm0, %v135_v11  ;;  %v136_v16 = vadd.f32 %v210_v15, %v30_v10  ;;  %v121_v17 = vpop.f32.mrb[3].mxu0 }
  0xe9   :  { %138 = vst.msk [vmem:[#allocation2] sm:$0xff] %vm22_vm0, %v133_v14  ;;  %v134_v18 = vadd.f32 %v121_v17, %v28_v13 }
  0xea   :  { %141 = vst.msk [vmem:[#allocation2 + $0x18] sm:$0xff] %vm22_vm0, %v136_v16 }
  0xeb   :  { %139 = vst.msk [vmem:[#allocation2 + $0x8] sm:$0xff] %vm22_vm0, %v134_v18 }
  0xef   :  { %v147_v20 = vld [vmem:[#allocation2 + $0x10] sm:$0xff] }
  0xf0   :  { %v158_v22 = vmul.f32 %v191_v19, %v147_v20  ;;  %v145_v23 = vld [vmem:[#allocation2] sm:$0xff] }
  0xf1   :  { %v156_v24 = vmul.f32 %v191_v19, %v145_v23  ;;  %v148_v25 = vld [vmem:[#allocation2 + $0x18] sm:$0xff] }
  0xf2   :  { %v169_v26 = vadd.f32 %v192_v21, %v158_v22  ;;  %v159_v27 = vmul.f32 %v191_v19, %v148_v25  ;;  %v146_v28 = vld [vmem:[#allocation2 + $0x8] sm:$0xff] }
  0xf3   :  { %v167_v29 = vadd.f32 %v192_v21, %v156_v24  ;;  %v157_v30 = vmul.f32 %v191_v19, %v146_v28 }
  0xf4   :  { %v173_v31 = vmax.f32 %v169_v26, 0.0  ;;  %v170_v32 = vadd.f32 %v192_v21, %v159_v27 }
  0xf5   :  { %v171_v33 = vmax.f32 %v167_v29, 0.0  ;;  %v168_v34 = vadd.f32 %v192_v21, %v157_v30 }
  0xf6   :  { %177 = vst.msk [vmem:[%s296_s4 + $0x10] sm:$0xff] %vm22_vm0, %v173_v31  ;;  %v174_v35 = vmax.f32 %v170_v32, 0.0 }
  0xf7   :  { %175 = vst.msk [vmem:[%s296_s4] sm:$0xff] %vm22_vm0, %v171_v33  ;;  %v172_v36 = vmax.f32 %v168_v34, 0.0 }
  0xf8   :  { %178 = vst.msk [vmem:[%s296_s4 + $0x18] sm:$0xff] %vm22_vm0, %v174_v35 }
  0xf9   :  { %176 = vst.msk [vmem:[%s296_s4 + $0x8] sm:$0xff] %vm22_vm0, %v172_v36 }

// kernel: _lambda_.163
= control target key start
LH: loop header
LB: loop body
LE: loop exit
PB: predicated region body
PF: predicated region fallthrough
CT: control target
= control target key end

     0   :  { %vm25_vm0 = vcmask 261120   ;;  %v543_v1 = vmov 0.0   ;;  %vm162_vm1 = vcmask 785408   ;;  %s810_s1 = inlined_call_operand.vmem [shape: bf16[96,32], index: 1, kind: input, shape index: {}]   ;;  %s811_s0 = inlined_call_operand.vmem [shape: bf16[128,96], index: 0, kind: input, shape index: {}]   ;;  %s812_s2 = inlined_call_operand.vmem [shape: f32[1,32], index: 2, kind: input, shape index: {}]   ;;  %s813_s3 = inlined_call_operand.vmem [shape: f32[1,32], index: 3, kind: input, shape index: {}]   ;;  %s814_s4 = inlined_call_operand.vmem [shape: f32[128,32], index: 4, kind: input, shape index: {}]   ;;  %s815_s5 = inlined_call_operand.vmem [shape: f32[128,32], index: 5, kind: output, shape index: {}]  }
   0x1   :  { %v529_v0 = vld [vmem:[%s810_s1] sm:$0xff]   ;;  %28 = vst.msk [vmem:[#allocation2 + $0x10] sm:$0xff] %vm25_vm0, %v543_v1  ;;  %26 = vst.msk [vmem:[#allocation2] sm:$0xff] %vm25_vm0, %v543_v1  ;;  %v530_v2 = vld [vmem:[%s810_s1 + $0x8] sm:$0xff]  }
   0x2   :  { %27 = vst.msk [vmem:[#allocation2 + $0x8] sm:$0xff] %vm25_vm0, %v543_v1  ;;  %29 = vst.msk [vmem:[#allocation2 + $0x18] sm:$0xff] %vm25_vm0, %v543_v1  ;;  %488 = vmatprep.subr.bf16.mxu0 %v529_v0  ;;  %516 = vmatprep.subr.bf16.mxu1 %v529_v0  ;;  %v531_v3 = vld [vmem:[%s810_s1 + $0x10] sm:$0xff]   ;;  %v535_v4 = vld [vmem:[%s811_s0] sm:$0xff]  }
   0x3   :  { %30 = vst.msk [vmem:[#allocation2 + $0x20] sm:$0xff] %vm25_vm0, %v543_v1  ;;  %31 = vst.msk [vmem:[#allocation2 + $0x28] sm:$0xff] %vm25_vm0, %v543_v1  ;;  %489 = vmatpush3.bf16.msra.mxu0 %v529_v0  ;;  %522 = vmatpush3.bf16.msra.mxu1 %v529_v0  ;;  %v536_v5 = vld [vmem:[%s811_s0 + $0x20] sm:$0xff]   ;;  %v532_v6 = vld [vmem:[%s810_s1 + $0x18] sm:$0xff]  }
   0x4   :  { %32 = vst.msk [vmem:[#allocation2 + $0x30] sm:$0xff] %vm25_vm0, %v543_v1  ;;  %33 = vst.msk [vmem:[#allocation2 + $0x38] sm:$0xff] %vm25_vm0, %v543_v1  ;;  %490 = vmatprep.subr.bf16.mxu0 %v530_v2  ;;  %517 = vmatprep.subr.bf16.mxu1 %v530_v2  ;;  %v533_v7 = vld [vmem:[%s810_s1 + $0x20] sm:$0xff]   ;;  %v534_v8 = vld [vmem:[%s810_s1 + $0x28] sm:$0xff]  }
   0x5   :  { %34 = vst.msk [vmem:[#allocation2 + $0x40] sm:$0xff] %vm25_vm0, %v543_v1  ;;  %35 = vst.msk [vmem:[#allocation2 + $0x48] sm:$0xff] %vm25_vm0, %v543_v1  ;;  %500 = vmatprep.mubr.msk.bf16.mxu0 %vm162_vm1, %v535_v4  ;;  %508 = vmatprep.mubr.msk.bf16.mxu1 %vm162_vm1, %v536_v5  ;;  %v537_v9 = vld [vmem:[%s811_s0 + $0x8] sm:$0xff]   ;;  %v539_v11 = vld [vmem:[%s811_s0 + $0x10] sm:$0xff]  }
   0x6   :  { %36 = vst.msk [vmem:[#allocation2 + $0x50] sm:$0xff] %vm25_vm0, %v543_v1  ;;  %37 = vst.msk [vmem:[#allocation2 + $0x58] sm:$0xff] %vm25_vm0, %v543_v1  ;;  %v538_v10 = vld [vmem:[%s811_s0 + $0x28] sm:$0xff]   ;;  %v540_v12 = vld [vmem:[%s811_s0 + $0x30] sm:$0xff]  }
   0x7   :  { %38 = vst.msk [vmem:[#allocation2 + $0x60] sm:$0xff] %vm25_vm0, %v543_v1  ;;  %39 = vst.msk [vmem:[#allocation2 + $0x68] sm:$0xff] %vm25_vm0, %v543_v1  ;;  %491 = vmatpush3.bf16.msra.mxu0 %v530_v2  ;;  %523 = vmatpush3.bf16.msra.mxu1 %v530_v2  ;;  %v541_v13 = vld [vmem:[%s811_s0 + $0x18] sm:$0xff]   ;;  %v651_v43 = vld [vmem:[%s812_s2] ss:$0 sm:$0xff] }
   0x8   :  { %40 = vst.msk [vmem:[#allocation2 + $0x70] sm:$0xff] %vm25_vm0, %v543_v1  ;;  %41 = vst.msk [vmem:[#allocation2 + $0x78] sm:$0xff] %vm25_vm0, %v543_v1  ;;  %492 = vmatprep.subr.bf16.mxu0 %v531_v3  ;;  %518 = vmatprep.subr.bf16.mxu1 %v531_v3  ;;  %v542_v14 = vld [vmem:[%s811_s0 + $0x38] sm:$0xff]   ;;  %v44_v15 = vld [vmem:[#allocation2 + $0x10] sm:$0xff] }
   0x9   :  { %v42_v17 = vld [vmem:[#allocation2] sm:$0xff]  ;;  %v45_v21 = vld [vmem:[#allocation2 + $0x18] sm:$0xff]  ;;  %v43_v27 = vld [vmem:[#allocation2 + $0x8] sm:$0xff] }
   0xa   :  { %v46_v41 = vld [vmem:[#allocation2 + $0x20] sm:$0xff]  ;;  %v47_v53 = vld [vmem:[#allocation2 + $0x28] sm:$0xff]  ;;  %v384_v56 = vld [vmem:[%s814_s4 + $0x10] sm:$0xff] }
   0xb   :  { %493 = vmatpush3.bf16.msra.mxu0 %v531_v3  ;;  %524 = vmatpush3.bf16.msra.mxu1 %v531_v3  ;;  %v48_v39 = vld [vmem:[#allocation2 + $0x30] sm:$0xff]  ;;  %v49_v46 = vld [vmem:[#allocation2 + $0x38] sm:$0xff]  ;;  %v656_v48 = vld [vmem:[%s813_s3] ss:$0 sm:$0xff] }
   0xc   :  { %494 = vmatprep.subr.bf16.mxu0 %v532_v6  ;;  %519 = vmatprep.subr.bf16.mxu1 %v532_v6  ;;  %v50_v18 = vld [vmem:[#allocation2 + $0x40] sm:$0xff]  ;;  %v51_v28 = vld [vmem:[#allocation2 + $0x48] sm:$0xff]  ;;  %v392_v0 = vld [vmem:[%s814_s4 + $0x50] sm:$0xff] }
   0xd   :  { %v52_v16 = vld [vmem:[#allocation2 + $0x50] sm:$0xff]  ;;  %v53_v22 = vld [vmem:[#allocation2 + $0x58] sm:$0xff] }
   0xe   :  { %v54_v42 = vld [vmem:[#allocation2 + $0x60] sm:$0xff]  ;;  %v55_v54 = vld [vmem:[#allocation2 + $0x68] sm:$0xff] }
   0xf   :  { %495 = vmatpush3.bf16.msra.mxu0 %v532_v6  ;;  %525 = vmatpush3.bf16.msra.mxu1 %v532_v6  ;;  %v56_v40 = vld [vmem:[#allocation2 + $0x70] sm:$0xff]  ;;  %v57_v47 = vld [vmem:[#allocation2 + $0x78] sm:$0xff] }
  0x10   :  { %496 = vmatprep.subr.bf16.mxu0 %v533_v7  ;;  %520 = vmatprep.subr.bf16.mxu1 %v533_v7 }
  0x13   :  { %497 = vmatpush3.bf16.msra.mxu0 %v533_v7  ;;  %526 = vmatpush3.bf16.msra.mxu1 %v533_v7 }
  0x14   :  { %498 = vmatprep.subr.bf16.mxu0 %v534_v8  ;;  %521 = vmatprep.subr.bf16.mxu1 %v534_v8 }
  0x17   :  { %499 = vmatpush3.bf16.msra.mxu0 %v534_v8  ;;  %527 = vmatpush3.bf16.msra.mxu1 %v534_v8  ;;  %v382_v8 = vld [vmem:[%s814_s4] sm:$0xff] }
  0x1a   :  { %501 = vmatmul.mubr.msk.bf16.vlgmr.msra.gmra.mrb[0].mxu0 %vm162_vm1, %v537_v9  ;;  %509 = vmatmul.mubr.msk.bf16.vlgmr.msra.gmra.mrb[0].mxu1 %vm162_vm1, %v538_v10 }
  0x1b   :  { %504 = vmatprep.mubr.msk.bf16.mxu0 %vm162_vm1, %v539_v11  ;;  %512 = vmatprep.mubr.msk.bf16.mxu1 %vm162_vm1, %v540_v12 }
  0x22   :  { %505 = vmatmul.mubr.msk.bf16.gmra.mrb[4].mxu0 %vm162_vm1, %v541_v13  ;;  %513 = vmatmul.mubr.msk.bf16.gmra.mrb[4].mxu1 %vm162_vm1, %v542_v14 }
  0xed   :  { %v502_v19 = vpop.f32.mrb[0].mxu0  ;;  %v510_v20 = vpop.f32.mrb[0].mxu1 }
  0xee   :  { %v286_v23 = vadd.f32 %v502_v19, %v44_v15  ;;  %v294_v24 = vadd.f32 %v510_v20, %v52_v16  ;;  %v221_v25 = vpop.f32.mrb[1].mxu0  ;;  %v253_v26 = vpop.f32.mrb[1].mxu1  ;;  %v390_v16 = vld [vmem:[%s814_s4 + $0x40] sm:$0xff] }
  0xef   :  { %v284_v29 = vadd.f32 %v221_v25, %v42_v17  ;;  %v292_v30 = vadd.f32 %v253_v26, %v50_v18  ;;  %v503_v31 = vpop.f32.mrb[2].mxu0  ;;  %v511_v32 = vpop.f32.mrb[2].mxu1 }
  0xf0   :  { %303 = vst.msk [vmem:[#allocation2 + $0x10] sm:$0xff] %vm25_vm0, %v286_v23  ;;  %311 = vst.msk [vmem:[#allocation2 + $0x50] sm:$0xff] %vm25_vm0, %v294_v24  ;;  %v287_v33 = vadd.f32 %v503_v31, %v45_v21  ;;  %v295_v34 = vadd.f32 %v511_v32, %v53_v22  ;;  %v224_v35 = vpop.f32.mrb[3].mxu0  ;;  %v256_v36 = vpop.f32.mrb[3].mxu1  ;;  %v385_v23 = vld [vmem:[%s814_s4 + $0x18] sm:$0xff]  ;;  %v383_v31 = vld [vmem:[%s814_s4 + $0x8] sm:$0xff] }
  0xf1   :  { %301 = vst.msk [vmem:[#allocation2] sm:$0xff] %vm25_vm0, %v284_v29  ;;  %309 = vst.msk [vmem:[#allocation2 + $0x40] sm:$0xff] %vm25_vm0, %v292_v30  ;;  %v285_v37 = vadd.f32 %v224_v35, %v43_v27  ;;  %v293_v38 = vadd.f32 %v256_v36, %v51_v28  ;;  %v393_v24 = vld [vmem:[%s814_s4 + $0x58] sm:$0xff]  ;;  %v391_v32 = vld [vmem:[%s814_s4 + $0x48] sm:$0xff] }
  0xf2   :  { %304 = vst.msk [vmem:[#allocation2 + $0x18] sm:$0xff] %vm25_vm0, %v287_v33  ;;  %312 = vst.msk [vmem:[#allocation2 + $0x58] sm:$0xff] %vm25_vm0, %v295_v34 }
  0xf3   :  { %302 = vst.msk [vmem:[#allocation2 + $0x8] sm:$0xff] %vm25_vm0, %v285_v37  ;;  %310 = vst.msk [vmem:[#allocation2 + $0x48] sm:$0xff] %vm25_vm0, %v293_v38 }
  0xf5   :  { %v506_v44 = vpop.f32.mrb[4].mxu0  ;;  %v514_v45 = vpop.f32.mrb[4].mxu1 }
  0xf6   :  { %v290_v49 = vadd.f32 %v506_v44, %v48_v39  ;;  %v298_v50 = vadd.f32 %v514_v45, %v56_v40  ;;  %v237_v51 = vpop.f32.mrb[5].mxu0  ;;  %v269_v52 = vpop.f32.mrb[5].mxu1 }
  0xf7   :  { %v322_v55 = vld [vmem:[#allocation2 + $0x10] sm:$0xff]  ;;  %v288_v58 = vadd.f32 %v237_v51, %v46_v41  ;;  %v296_v59 = vadd.f32 %v269_v52, %v54_v42  ;;  %v507_v60 = vpop.f32.mrb[6].mxu0  ;;  %v515_v61 = vpop.f32.mrb[6].mxu1 }
  0xf8   :  { %v330_v57 = vld [vmem:[#allocation2 + $0x50] sm:$0xff]  ;;  %v345_v62 = vmul.f32 %v651_v43, %v322_v55  ;;  %v320_v1 = vld [vmem:[#allocation2] sm:$0xff]  ;;  %307 = vst.msk [vmem:[#allocation2 + $0x30] sm:$0xff] %vm25_vm0, %v290_v49  ;;  %315 = vst.msk [vmem:[#allocation2 + $0x70] sm:$0xff] %vm25_vm0, %v298_v50  ;;  %v291_v3 = vadd.f32 %v507_v60, %v49_v46  ;;  %v299_v4 = vadd.f32 %v515_v61, %v57_v47  ;;  %v240_v5 = vpop.f32.mrb[7].mxu0  ;;  %v272_v6 = vpop.f32.mrb[7].mxu1 }
  0xf9   :  { %v353_v63 = vmul.f32 %v651_v43, %v330_v57  ;;  %v328_v2 = vld [vmem:[#allocation2 + $0x40] sm:$0xff]  ;;  %v343_v7 = vmul.f32 %v651_v43, %v320_v1  ;;  %v323_v10 = vld [vmem:[#allocation2 + $0x18] sm:$0xff]  ;;  %305 = vst.msk [vmem:[#allocation2 + $0x20] sm:$0xff] %vm25_vm0, %v288_v58  ;;  %313 = vst.msk [vmem:[#allocation2 + $0x60] sm:$0xff] %vm25_vm0, %v296_v59  ;;  %v289_v12 = vadd.f32 %v240_v5, %v47_v53 }
  0xfa   :  { %v351_v9 = vmul.f32 %v651_v43, %v328_v2  ;;  %v331_v11 = vld [vmem:[#allocation2 + $0x58] sm:$0xff]  ;;  %v297_v13 = vadd.f32 %v272_v6, %v55_v54  ;;  %v368_v14 = vadd.f32 %v656_v48, %v345_v62  ;;  %v346_v17 = vmul.f32 %v651_v43, %v323_v10  ;;  %v321_v19 = vld [vmem:[#allocation2 + $0x8] sm:$0xff]  ;;  %308 = vst.msk [vmem:[#allocation2 + $0x38] sm:$0xff] %vm25_vm0, %v291_v3  ;;  %v388_v47 = vld [vmem:[%s814_s4 + $0x30] sm:$0xff] }
  0xfb   :  { %v376_v15 = vadd.f32 %v656_v48, %v353_v63  ;;  %v354_v18 = vmul.f32 %v651_v43, %v331_v11  ;;  %v329_v20 = vld [vmem:[#allocation2 + $0x48] sm:$0xff]  ;;  %316 = vst.msk [vmem:[#allocation2 + $0x78] sm:$0xff] %vm25_vm0, %v299_v4  ;;  %v366_v21 = vadd.f32 %v656_v48, %v343_v7  ;;  %v344_v25 = vmul.f32 %v651_v43, %v321_v19  ;;  %v396_v54 = vld [vmem:[%s814_s4 + $0x70] sm:$0xff]  ;;  %v386_v60 = vld [vmem:[%s814_s4 + $0x20] sm:$0xff] }
  0xfc   :  { %v374_v22 = vadd.f32 %v656_v48, %v351_v9  ;;  %v352_v26 = vmul.f32 %v651_v43, %v329_v20  ;;  %306 = vst.msk [vmem:[#allocation2 + $0x28] sm:$0xff] %vm25_vm0, %v289_v12  ;;  %314 = vst.msk [vmem:[#allocation2 + $0x68] sm:$0xff] %vm25_vm0, %v297_v13  ;;  %v400_v27 = vadd.f32 %v384_v56, %v368_v14  ;;  %v394_v2 = vld [vmem:[%s814_s4 + $0x60] sm:$0xff]  ;;  %v389_v9 = vld [vmem:[%s814_s4 + $0x38] sm:$0xff] }
  0xfd   :  { %v408_v28 = vadd.f32 %v392_v0, %v376_v15  ;;  %v369_v29 = vadd.f32 %v656_v48, %v346_v17  ;;  %v377_v30 = vadd.f32 %v656_v48, %v354_v18  ;;  %v398_v33 = vadd.f32 %v382_v8, %v366_v21  ;;  %v397_v10 = vld [vmem:[%s814_s4 + $0x78] sm:$0xff]  ;;  %v387_v17 = vld [vmem:[%s814_s4 + $0x28] sm:$0xff] }
  0xfe   :  { %v406_v34 = vadd.f32 %v390_v16, %v374_v22  ;;  %v367_v35 = vadd.f32 %v656_v48, %v344_v25  ;;  %v375_v36 = vadd.f32 %v656_v48, %v352_v26  ;;  %v416_v37 = vmax.f32 %v400_v27, 0.0  ;;  %v395_v18 = vld [vmem:[%s814_s4 + $0x68] sm:$0xff] }
  0xff   :  { %v424_v38 = vmax.f32 %v408_v28, 0.0  ;;  %v401_v39 = vadd.f32 %v385_v23, %v369_v29  ;;  %v409_v40 = vadd.f32 %v393_v24, %v377_v30  ;;  %v414_v41 = vmax.f32 %v398_v33, 0.0  ;;  %v326_v46 = vld [vmem:[#allocation2 + $0x30] sm:$0xff] }
 0x100   :  { %v422_v42 = vmax.f32 %v406_v34, 0.0  ;;  %v399_v44 = vadd.f32 %v383_v31, %v367_v35  ;;  %v407_v45 = vadd.f32 %v391_v32, %v375_v36  ;;  %v334_v49 = vld [vmem:[#allocation2 + $0x70] sm:$0xff]  ;;  %432 = vst.msk [vmem:[%s815_s5 + $0x10] sm:$0xff] %vm25_vm0, %v416_v37  ;;  %v349_v52 = vmul.f32 %v651_v43, %v326_v46  ;;  %v324_v55 = vld [vmem:[#allocation2 + $0x20] sm:$0xff] }
 0x101   :  { %440 = vst.msk [vmem:[%s815_s5 + $0x50] sm:$0xff] %vm25_vm0, %v424_v38  ;;  %v417_v50 = vmax.f32 %v401_v39, 0.0  ;;  %v425_v51 = vmax.f32 %v409_v40, 0.0  ;;  %v357_v53 = vmul.f32 %v651_v43, %v334_v49  ;;  %v332_v56 = vld [vmem:[#allocation2 + $0x60] sm:$0xff]  ;;  %430 = vst.msk [vmem:[%s815_s5] sm:$0xff] %vm25_vm0, %v414_v41  ;;  %v347_v59 = vmul.f32 %v651_v43, %v324_v55  ;;  %v327_v62 = vld [vmem:[#allocation2 + $0x38] sm:$0xff] }
 0x102   :  { %438 = vst.msk [vmem:[%s815_s5 + $0x40] sm:$0xff] %vm25_vm0, %v422_v42  ;;  %v415_v57 = vmax.f32 %v399_v44, 0.0  ;;  %v423_v58 = vmax.f32 %v407_v45, 0.0  ;;  %v355_v61 = vmul.f32 %v651_v43, %v332_v56  ;;  %v335_v63 = vld [vmem:[#allocation2 + $0x78] sm:$0xff]  ;;  %v372_v0 = vadd.f32 %v656_v48, %v349_v52 }
 0x103   :  { %433 = vst.msk [vmem:[%s815_s5 + $0x18] sm:$0xff] %vm25_vm0, %v417_v50  ;;  %441 = vst.msk [vmem:[%s815_s5 + $0x58] sm:$0xff] %vm25_vm0, %v425_v51  ;;  %v380_v1 = vadd.f32 %v656_v48, %v357_v53  ;;  %v350_v3 = vmul.f32 %v651_v43, %v327_v62  ;;  %v358_v4 = vmul.f32 %v651_v43, %v335_v63  ;;  %v325_v5 = vld [vmem:[#allocation2 + $0x28] sm:$0xff] }
 0x104   :  { %v333_v6 = vld [vmem:[#allocation2 + $0x68] sm:$0xff]  ;;  %431 = vst.msk [vmem:[%s815_s5 + $0x8] sm:$0xff] %vm25_vm0, %v415_v57  ;;  %439 = vst.msk [vmem:[%s815_s5 + $0x48] sm:$0xff] %vm25_vm0, %v423_v58  ;;  %v370_v7 = vadd.f32 %v656_v48, %v347_v59  ;;  %v378_v8 = vadd.f32 %v656_v48, %v355_v61  ;;  %v348_v11 = vmul.f32 %v651_v43, %v325_v5 }
 0x105   :  { %v356_v12 = vmul.f32 %v651_v43, %v333_v6  ;;  %v404_v13 = vadd.f32 %v388_v47, %v372_v0  ;;  %v412_v14 = vadd.f32 %v396_v54, %v380_v1  ;;  %v373_v15 = vadd.f32 %v656_v48, %v350_v3 }
 0x106   :  { %v381_v16 = vadd.f32 %v656_v48, %v358_v4  ;;  %v402_v19 = vadd.f32 %v386_v60, %v370_v7  ;;  %v410_v20 = vadd.f32 %v394_v2, %v378_v8  ;;  %v371_v21 = vadd.f32 %v656_v48, %v348_v11 }
 0x107   :  { %v379_v43 = vadd.f32 %v656_v48, %v356_v12  ;;  %v420_v22 = vmax.f32 %v404_v13, 0.0  ;;  %v428_v23 = vmax.f32 %v412_v14, 0.0  ;;  %v405_v24 = vadd.f32 %v389_v9, %v373_v15 }
 0x108   :  { %v413_v25 = vadd.f32 %v397_v10, %v381_v16  ;;  %v418_v26 = vmax.f32 %v402_v19, 0.0  ;;  %v426_v27 = vmax.f32 %v410_v20, 0.0  ;;  %v403_v28 = vadd.f32 %v387_v17, %v371_v21 }
 0x109   :  { %v411_v29 = vadd.f32 %v395_v18, %v379_v43  ;;  %436 = vst.msk [vmem:[%s815_s5 + $0x30] sm:$0xff] %vm25_vm0, %v420_v22  ;;  %444 = vst.msk [vmem:[%s815_s5 + $0x70] sm:$0xff] %vm25_vm0, %v428_v23  ;;  %v421_v30 = vmax.f32 %v405_v24, 0.0 }
 0x10a   :  { %v429_v48 = vmax.f32 %v413_v25, 0.0  ;;  %434 = vst.msk [vmem:[%s815_s5 + $0x20] sm:$0xff] %vm25_vm0, %v418_v26  ;;  %442 = vst.msk [vmem:[%s815_s5 + $0x60] sm:$0xff] %vm25_vm0, %v426_v27  ;;  %v419_v31 = vmax.f32 %v403_v28, 0.0 }
 0x10b   :  { %v427_v32 = vmax.f32 %v411_v29, 0.0  ;;  %437 = vst.msk [vmem:[%s815_s5 + $0x38] sm:$0xff] %vm25_vm0, %v421_v30 }
 0x10c   :  { %445 = vst.msk [vmem:[%s815_s5 + $0x78] sm:$0xff] %vm25_vm0, %v429_v48  ;;  %435 = vst.msk [vmem:[%s815_s5 + $0x28] sm:$0xff] %vm25_vm0, %v419_v31 }
 0x10d   :  { %443 = vst.msk [vmem:[%s815_s5 + $0x68] sm:$0xff] %vm25_vm0, %v427_v32 }

// kernel: _lambda_.171
= control target key start
LH: loop header
LB: loop body
LE: loop exit
PB: predicated region body
PF: predicated region fallthrough
CT: control target
= control target key end

     0   :  { %vm26_vm0 = vcmask 7168   ;;  %v436_v2 = vmov 0.0   ;;  %vm131_vm1 = vcmask 261120   ;;  %s638_s1 = inlined_call_operand.vmem [shape: bf16[32,1], index: 1, kind: input, shape index: {}]   ;;  %s639_s0 = inlined_call_operand.vmem [shape: bf16[128,32], index: 0, kind: input, shape index: {}]   ;;  %s640_s2 = inlined_call_operand.<no memory space> [shape: f32[1,1], index: 2, kind: input, shape index: {}]   ;;  %s641_s3 = inlined_call_operand.<no memory space> [shape: f32[1,1], index: 3, kind: input, shape index: {}]   ;;  %s642_s4 = inlined_call_operand.vmem [shape: f32[128,1], index: 4, kind: output, shape index: {}]  }
   0x1   :  { %v426_v0 = vld [vmem:[%s638_s1] sm:$0xff]   ;;  %v9_v1 = vstv %s640_s2  ;;  %29 = vst.msk [vmem:[#allocation2 + $0x10] sm:$0xff] %vm26_vm0, %v436_v2  ;;  %27 = vst.msk [vmem:[#allocation2] sm:$0xff] %vm26_vm0, %v436_v2  ;;  %v427_v3 = vld [vmem:[%s638_s1 + $0x8] sm:$0xff]   ;;  %v11_v4 = vstv %s641_s3 }
   0x2   :  { %28 = vst.msk [vmem:[#allocation2 + $0x8] sm:$0xff] %vm26_vm0, %v436_v2  ;;  %30 = vst.msk [vmem:[#allocation2 + $0x18] sm:$0xff] %vm26_vm0, %v436_v2  ;;  %401 = vmatprep.subr.bf16.mxu0 %v426_v0  ;;  %421 = vmatprep.subr.bf16.mxu1 %v426_v0  ;;  %v428_v5 = vld [vmem:[%s639_s0] sm:$0xff]   ;;  %v430_v7 = vld [vmem:[%s639_s0 + $0x8] sm:$0xff]  }
   0x3   :  { %31 = vst.msk [vmem:[#allocation2 + $0x20] sm:$0xff] %vm26_vm0, %v436_v2  ;;  %32 = vst.msk [vmem:[#allocation2 + $0x28] sm:$0xff] %vm26_vm0, %v436_v2  ;;  %402 = vmatpush3.bf16.msra.mxu0 %v426_v0  ;;  %423 = vmatpush3.bf16.msra.mxu1 %v426_v0  ;;  %v429_v6 = vld [vmem:[%s639_s0 + $0x20] sm:$0xff]   ;;  %v431_v8 = vld [vmem:[%s639_s0 + $0x28] sm:$0xff]  }
   0x4   :  { %33 = vst.msk [vmem:[#allocation2 + $0x30] sm:$0xff] %vm26_vm0, %v436_v2  ;;  %34 = vst.msk [vmem:[#allocation2 + $0x38] sm:$0xff] %vm26_vm0, %v436_v2  ;;  %403 = vmatprep.subr.bf16.mxu0 %v427_v3  ;;  %422 = vmatprep.subr.bf16.mxu1 %v427_v3  ;;  %v432_v9 = vld [vmem:[%s639_s0 + $0x10] sm:$0xff]   ;;  %v434_v11 = vld [vmem:[%s639_s0 + $0x18] sm:$0xff]  }
   0x5   :  { %35 = vst.msk [vmem:[#allocation2 + $0x40] sm:$0xff] %vm26_vm0, %v436_v2  ;;  %36 = vst.msk [vmem:[#allocation2 + $0x48] sm:$0xff] %vm26_vm0, %v436_v2  ;;  %405 = vmatprep.mubr.msk.bf16.mxu0 %vm131_vm1, %v428_v5  ;;  %413 = vmatprep.mubr.msk.bf16.mxu1 %vm131_vm1, %v429_v6  ;;  %v433_v10 = vld [vmem:[%s639_s0 + $0x30] sm:$0xff]   ;;  %v435_v12 = vld [vmem:[%s639_s0 + $0x38] sm:$0xff]  }
   0x6   :  { %37 = vst.msk [vmem:[#allocation2 + $0x50] sm:$0xff] %vm26_vm0, %v436_v2  ;;  %38 = vst.msk [vmem:[#allocation2 + $0x58] sm:$0xff] %vm26_vm0, %v436_v2 }
   0x7   :  { %39 = vst.msk [vmem:[#allocation2 + $0x60] sm:$0xff] %vm26_vm0, %v436_v2  ;;  %40 = vst.msk [vmem:[#allocation2 + $0x68] sm:$0xff] %vm26_vm0, %v436_v2  ;;  %404 = vmatpush3.bf16.msra.mxu0 %v427_v3  ;;  %424 = vmatpush3.bf16.msra.mxu1 %v427_v3 }
   0x8   :  { %41 = vst.msk [vmem:[#allocation2 + $0x70] sm:$0xff] %vm26_vm0, %v436_v2  ;;  %42 = vst.msk [vmem:[#allocation2 + $0x78] sm:$0xff] %vm26_vm0, %v436_v2  ;;  %v45_v13 = vld [vmem:[#allocation2 + $0x10] sm:$0xff]  ;;  %v43_v15 = vld [vmem:[#allocation2] sm:$0xff] }
   0x9   :  { %10 = vst [vmem:[#allocation3] sm:$0x1] %v9_v1  ;;  %12 = vst [vmem:[#allocation4] sm:$0x1] %v11_v4  ;;  %v46_v19 = vld [vmem:[#allocation2 + $0x18] sm:$0xff]  ;;  %v44_v25 = vld [vmem:[#allocation2 + $0x8] sm:$0xff] }
   0xa   :  { %406 = vmatmul.mubr.msk.bf16.vlgmr.msra.gmra.mrb[0].mxu0 %vm131_vm1, %v430_v7  ;;  %414 = vmatmul.mubr.msk.bf16.vlgmr.msra.gmra.mrb[0].mxu1 %vm131_vm1, %v431_v8  ;;  %v47_v39 = vld [vmem:[#allocation2 + $0x20] sm:$0xff]  ;;  %v48_v50 = vld [vmem:[#allocation2 + $0x28] sm:$0xff] }
   0xb   :  { %409 = vmatprep.mubr.msk.bf16.mxu0 %vm131_vm1, %v432_v9  ;;  %417 = vmatprep.mubr.msk.bf16.mxu1 %vm131_vm1, %v433_v10  ;;  %v49_v37 = vld [vmem:[#allocation2 + $0x30] sm:$0xff]  ;;  %v50_v44 = vld [vmem:[#allocation2 + $0x38] sm:$0xff] }
   0xc   :  { %v51_v16 = vld [vmem:[#allocation2 + $0x40] sm:$0xff]  ;;  %v52_v26 = vld [vmem:[#allocation2 + $0x48] sm:$0xff] }
   0xd   :  { %v53_v14 = vld [vmem:[#allocation2 + $0x50] sm:$0xff]  ;;  %v54_v20 = vld [vmem:[#allocation2 + $0x58] sm:$0xff] }
   0xe   :  { %v55_v40 = vld [vmem:[#allocation2 + $0x60] sm:$0xff]  ;;  %v56_v51 = vld [vmem:[#allocation2 + $0x68] sm:$0xff] }
   0xf   :  { %v57_v38 = vld [vmem:[#allocation2 + $0x70] sm:$0xff]  ;;  %v58_v45 = vld [vmem:[#allocation2 + $0x78] sm:$0xff] }
  0x10   :  { %v530_v41 = vld [vmem:[#allocation3] ss:$0 sm:$0xff]  ;;  %v532_v53 = vld [vmem:[#allocation4] ss:$0 sm:$0xff] }
  0x12   :  { %410 = vmatmul.mubr.msk.bf16.gmra.mrb[4].mxu0 %vm131_vm1, %v434_v11  ;;  %418 = vmatmul.mubr.msk.bf16.gmra.mrb[4].mxu1 %vm131_vm1, %v435_v12 }
  0xdd   :  { %v407_v17 = vpop.f32.mrb[0].mxu0  ;;  %v415_v18 = vpop.f32.mrb[0].mxu1 }
  0xde   :  { %v255_v21 = vadd.f32 %v407_v17, %v45_v13  ;;  %v263_v22 = vadd.f32 %v415_v18, %v53_v14  ;;  %v190_v23 = vpop.f32.mrb[1].mxu0  ;;  %v222_v24 = vpop.f32.mrb[1].mxu1 }
  0xdf   :  { %v253_v27 = vadd.f32 %v190_v23, %v43_v15  ;;  %v261_v28 = vadd.f32 %v222_v24, %v51_v16  ;;  %v408_v29 = vpop.f32.mrb[2].mxu0  ;;  %v416_v30 = vpop.f32.mrb[2].mxu1 }
  0xe0   :  { %272 = vst.msk [vmem:[#allocation2 + $0x10] sm:$0xff] %vm26_vm0, %v255_v21  ;;  %280 = vst.msk [vmem:[#allocation2 + $0x50] sm:$0xff] %vm26_vm0, %v263_v22  ;;  %v256_v31 = vadd.f32 %v408_v29, %v46_v19  ;;  %v264_v32 = vadd.f32 %v416_v30, %v54_v20  ;;  %v193_v33 = vpop.f32.mrb[3].mxu0  ;;  %v225_v34 = vpop.f32.mrb[3].mxu1 }
  0xe1   :  { %270 = vst.msk [vmem:[#allocation2] sm:$0xff] %vm26_vm0, %v253_v27  ;;  %278 = vst.msk [vmem:[#allocation2 + $0x40] sm:$0xff] %vm26_vm0, %v261_v28  ;;  %v254_v35 = vadd.f32 %v193_v33, %v44_v25  ;;  %v262_v36 = vadd.f32 %v225_v34, %v52_v26 }
  0xe2   :  { %273 = vst.msk [vmem:[#allocation2 + $0x18] sm:$0xff] %vm26_vm0, %v256_v31  ;;  %281 = vst.msk [vmem:[#allocation2 + $0x58] sm:$0xff] %vm26_vm0, %v264_v32 }
  0xe3   :  { %271 = vst.msk [vmem:[#allocation2 + $0x8] sm:$0xff] %vm26_vm0, %v254_v35  ;;  %279 = vst.msk [vmem:[#allocation2 + $0x48] sm:$0xff] %vm26_vm0, %v262_v36 }
  0xe5   :  { %v411_v42 = vpop.f32.mrb[4].mxu0  ;;  %v419_v43 = vpop.f32.mrb[4].mxu1 }
  0xe6   :  { %v259_v46 = vadd.f32 %v411_v42, %v49_v37  ;;  %v267_v47 = vadd.f32 %v419_v43, %v57_v38  ;;  %v206_v48 = vpop.f32.mrb[5].mxu0  ;;  %v238_v49 = vpop.f32.mrb[5].mxu1 }
  0xe7   :  { %v291_v52 = vld [vmem:[#allocation2 + $0x10] sm:$0xff]  ;;  %v257_v55 = vadd.f32 %v206_v48, %v47_v39  ;;  %v265_v56 = vadd.f32 %v238_v49, %v55_v40  ;;  %v412_v57 = vpop.f32.mrb[6].mxu0  ;;  %v420_v58 = vpop.f32.mrb[6].mxu1 }
  0xe8   :  { %v299_v54 = vld [vmem:[#allocation2 + $0x50] sm:$0xff]  ;;  %v314_v59 = vmul.f32 %v530_v41, %v291_v52  ;;  %v289_v61 = vld [vmem:[#allocation2] sm:$0xff]  ;;  %276 = vst.msk [vmem:[#allocation2 + $0x30] sm:$0xff] %vm26_vm0, %v259_v46  ;;  %284 = vst.msk [vmem:[#allocation2 + $0x70] sm:$0xff] %vm26_vm0, %v267_v47  ;;  %v260_v63 = vadd.f32 %v412_v57, %v50_v44  ;;  %v268_v0 = vadd.f32 %v420_v58, %v58_v45  ;;  %v209_v1 = vpop.f32.mrb[7].mxu0  ;;  %v241_v2 = vpop.f32.mrb[7].mxu1 }
  0xe9   :  { %v322_v60 = vmul.f32 %v530_v41, %v299_v54  ;;  %v297_v62 = vld [vmem:[#allocation2 + $0x40] sm:$0xff]  ;;  %v312_v3 = vmul.f32 %v530_v41, %v289_v61  ;;  %v292_v5 = vld [vmem:[#allocation2 + $0x18] sm:$0xff]  ;;  %274 = vst.msk [vmem:[#allocation2 + $0x20] sm:$0xff] %vm26_vm0, %v257_v55  ;;  %282 = vst.msk [vmem:[#allocation2 + $0x60] sm:$0xff] %vm26_vm0, %v265_v56  ;;  %v258_v7 = vadd.f32 %v209_v1, %v48_v50 }
  0xea   :  { %v320_v4 = vmul.f32 %v530_v41, %v297_v62  ;;  %v300_v6 = vld [vmem:[#allocation2 + $0x58] sm:$0xff]  ;;  %v266_v8 = vadd.f32 %v241_v2, %v56_v51  ;;  %v337_v9 = vadd.f32 %v532_v53, %v314_v59  ;;  %v315_v11 = vmul.f32 %v530_v41, %v292_v5  ;;  %v290_v13 = vld [vmem:[#allocation2 + $0x8] sm:$0xff]  ;;  %277 = vst.msk [vmem:[#allocation2 + $0x38] sm:$0xff] %vm26_vm0, %v260_v63 }
  0xeb   :  { %v345_v10 = vadd.f32 %v532_v53, %v322_v60  ;;  %v323_v12 = vmul.f32 %v530_v41, %v300_v6  ;;  %v298_v14 = vld [vmem:[#allocation2 + $0x48] sm:$0xff]  ;;  %285 = vst.msk [vmem:[#allocation2 + $0x78] sm:$0xff] %vm26_vm0, %v268_v0  ;;  %v335_v15 = vadd.f32 %v532_v53, %v312_v3  ;;  %v313_v17 = vmul.f32 %v530_v41, %v290_v13 }
  0xec   :  { %v343_v16 = vadd.f32 %v532_v53, %v320_v4  ;;  %v321_v18 = vmul.f32 %v530_v41, %v298_v14  ;;  %275 = vst.msk [vmem:[#allocation2 + $0x28] sm:$0xff] %vm26_vm0, %v258_v7  ;;  %283 = vst.msk [vmem:[#allocation2 + $0x68] sm:$0xff] %vm26_vm0, %v266_v8  ;;  %v338_v19 = vadd.f32 %v532_v53, %v315_v11 }
  0xed   :  { %353 = vst.msk [vmem:[%s642_s4 + $0x10] sm:$0xff] %vm26_vm0, %v337_v9  ;;  %361 = vst.msk [vmem:[%s642_s4 + $0x50] sm:$0xff] %vm26_vm0, %v345_v10  ;;  %v346_v20 = vadd.f32 %v532_v53, %v323_v12  ;;  %v336_v21 = vadd.f32 %v532_v53, %v313_v17 }
  0xee   :  { %351 = vst.msk [vmem:[%s642_s4] sm:$0xff] %vm26_vm0, %v335_v15  ;;  %359 = vst.msk [vmem:[%s642_s4 + $0x40] sm:$0xff] %vm26_vm0, %v343_v16  ;;  %v344_v22 = vadd.f32 %v532_v53, %v321_v18 }
  0xef   :  { %354 = vst.msk [vmem:[%s642_s4 + $0x18] sm:$0xff] %vm26_vm0, %v338_v19  ;;  %362 = vst.msk [vmem:[%s642_s4 + $0x58] sm:$0xff] %vm26_vm0, %v346_v20  ;;  %v295_v23 = vld [vmem:[#allocation2 + $0x30] sm:$0xff] }
  0xf0   :  { %352 = vst.msk [vmem:[%s642_s4 + $0x8] sm:$0xff] %vm26_vm0, %v336_v21  ;;  %360 = vst.msk [vmem:[%s642_s4 + $0x48] sm:$0xff] %vm26_vm0, %v344_v22  ;;  %v303_v24 = vld [vmem:[#allocation2 + $0x70] sm:$0xff]  ;;  %v318_v25 = vmul.f32 %v530_v41, %v295_v23  ;;  %v293_v27 = vld [vmem:[#allocation2 + $0x20] sm:$0xff] }
  0xf1   :  { %v326_v26 = vmul.f32 %v530_v41, %v303_v24  ;;  %v301_v28 = vld [vmem:[#allocation2 + $0x60] sm:$0xff]  ;;  %v316_v29 = vmul.f32 %v530_v41, %v293_v27  ;;  %v296_v31 = vld [vmem:[#allocation2 + $0x38] sm:$0xff] }
  0xf2   :  { %v324_v30 = vmul.f32 %v530_v41, %v301_v28  ;;  %v304_v32 = vld [vmem:[#allocation2 + $0x78] sm:$0xff]  ;;  %v341_v33 = vadd.f32 %v532_v53, %v318_v25  ;;  %v319_v35 = vmul.f32 %v530_v41, %v296_v31 }
  0xf3   :  { %v349_v34 = vadd.f32 %v532_v53, %v326_v26  ;;  %v327_v36 = vmul.f32 %v530_v41, %v304_v32  ;;  %v294_v37 = vld [vmem:[#allocation2 + $0x28] sm:$0xff]  ;;  %v339_v39 = vadd.f32 %v532_v53, %v316_v29 }
  0xf4   :  { %v302_v38 = vld [vmem:[#allocation2 + $0x68] sm:$0xff]  ;;  %v347_v40 = vadd.f32 %v532_v53, %v324_v30  ;;  %v317_v42 = vmul.f32 %v530_v41, %v294_v37  ;;  %357 = vst.msk [vmem:[%s642_s4 + $0x30] sm:$0xff] %vm26_vm0, %v341_v33  ;;  %v342_v44 = vadd.f32 %v532_v53, %v319_v35 }
  0xf5   :  { %v325_v43 = vmul.f32 %v530_v41, %v302_v38  ;;  %365 = vst.msk [vmem:[%s642_s4 + $0x70] sm:$0xff] %vm26_vm0, %v349_v34  ;;  %v350_v45 = vadd.f32 %v532_v53, %v327_v36  ;;  %355 = vst.msk [vmem:[%s642_s4 + $0x20] sm:$0xff] %vm26_vm0, %v339_v39 }
  0xf6   :  { %363 = vst.msk [vmem:[%s642_s4 + $0x60] sm:$0xff] %vm26_vm0, %v347_v40  ;;  %v340_v41 = vadd.f32 %v532_v53, %v317_v42  ;;  %358 = vst.msk [vmem:[%s642_s4 + $0x38] sm:$0xff] %vm26_vm0, %v342_v44 }
  0xf7   :  { %v348_v46 = vadd.f32 %v532_v53, %v325_v43  ;;  %366 = vst.msk [vmem:[%s642_s4 + $0x78] sm:$0xff] %vm26_vm0, %v350_v45 }
  0xf8   :  { %356 = vst.msk [vmem:[%s642_s4 + $0x28] sm:$0xff] %vm26_vm0, %v340_v41 }
  0xf9   :  { %364 = vst.msk [vmem:[%s642_s4 + $0x68] sm:$0xff] %vm26_vm0, %v348_v46 }

// kernel: _lambda_.160
= control target key start
LH: loop header
LB: loop body
LE: loop exit
PB: predicated region body
PF: predicated region fallthrough
CT: control target
= control target key end

     0   :  { %vm22_vm0 = vcmask 261120   ;;  %v508_v1 = vmov 0.0   ;;  %vm159_vm1 = vcmask 785408   ;;  %s722_s1 = inlined_call_operand.vmem [shape: bf16[96,32], index: 1, kind: input, shape index: {}]   ;;  %s723_s0 = inlined_call_operand.vmem [shape: bf16[128,96], index: 0, kind: input, shape index: {}]   ;;  %s724_s2 = inlined_call_operand.vmem [shape: f32[1,32], index: 2, kind: input, shape index: {}]   ;;  %s725_s3 = inlined_call_operand.vmem [shape: f32[1,32], index: 3, kind: input, shape index: {}]   ;;  %s726_s4 = inlined_call_operand.vmem [shape: f32[128,32], index: 4, kind: output, shape index: {}]  }
   0x1   :  { %v494_v0 = vld [vmem:[%s722_s1] sm:$0xff]   ;;  %25 = vst.msk [vmem:[#allocation2 + $0x10] sm:$0xff] %vm22_vm0, %v508_v1  ;;  %23 = vst.msk [vmem:[#allocation2] sm:$0xff] %vm22_vm0, %v508_v1  ;;  %v495_v2 = vld [vmem:[%s722_s1 + $0x8] sm:$0xff]  }
   0x2   :  { %24 = vst.msk [vmem:[#allocation2 + $0x8] sm:$0xff] %vm22_vm0, %v508_v1  ;;  %26 = vst.msk [vmem:[#allocation2 + $0x18] sm:$0xff] %vm22_vm0, %v508_v1  ;;  %453 = vmatprep.subr.bf16.mxu0 %v494_v0  ;;  %481 = vmatprep.subr.bf16.mxu1 %v494_v0  ;;  %v496_v3 = vld [vmem:[%s722_s1 + $0x10] sm:$0xff]   ;;  %v500_v4 = vld [vmem:[%s723_s0] sm:$0xff]  }
   0x3   :  { %27 = vst.msk [vmem:[#allocation2 + $0x20] sm:$0xff] %vm22_vm0, %v508_v1  ;;  %28 = vst.msk [vmem:[#allocation2 + $0x28] sm:$0xff] %vm22_vm0, %v508_v1  ;;  %454 = vmatpush3.bf16.msra.mxu0 %v494_v0  ;;  %487 = vmatpush3.bf16.msra.mxu1 %v494_v0  ;;  %v501_v5 = vld [vmem:[%s723_s0 + $0x20] sm:$0xff]   ;;  %v497_v6 = vld [vmem:[%s722_s1 + $0x18] sm:$0xff]  }
   0x4   :  { %29 = vst.msk [vmem:[#allocation2 + $0x30] sm:$0xff] %vm22_vm0, %v508_v1  ;;  %30 = vst.msk [vmem:[#allocation2 + $0x38] sm:$0xff] %vm22_vm0, %v508_v1  ;;  %455 = vmatprep.subr.bf16.mxu0 %v495_v2  ;;  %482 = vmatprep.subr.bf16.mxu1 %v495_v2  ;;  %v498_v7 = vld [vmem:[%s722_s1 + $0x20] sm:$0xff]   ;;  %v499_v8 = vld [vmem:[%s722_s1 + $0x28] sm:$0xff]  }
   0x5   :  { %31 = vst.msk [vmem:[#allocation2 + $0x40] sm:$0xff] %vm22_vm0, %v508_v1  ;;  %32 = vst.msk [vmem:[#allocation2 + $0x48] sm:$0xff] %vm22_vm0, %v508_v1  ;;  %465 = vmatprep.mubr.msk.bf16.mxu0 %vm159_vm1, %v500_v4  ;;  %473 = vmatprep.mubr.msk.bf16.mxu1 %vm159_vm1, %v501_v5  ;;  %v502_v9 = vld [vmem:[%s723_s0 + $0x8] sm:$0xff]   ;;  %v504_v11 = vld [vmem:[%s723_s0 + $0x10] sm:$0xff]  }
   0x6   :  { %33 = vst.msk [vmem:[#allocation2 + $0x50] sm:$0xff] %vm22_vm0, %v508_v1  ;;  %34 = vst.msk [vmem:[#allocation2 + $0x58] sm:$0xff] %vm22_vm0, %v508_v1  ;;  %v503_v10 = vld [vmem:[%s723_s0 + $0x28] sm:$0xff]   ;;  %v505_v12 = vld [vmem:[%s723_s0 + $0x30] sm:$0xff]  }
   0x7   :  { %35 = vst.msk [vmem:[#allocation2 + $0x60] sm:$0xff] %vm22_vm0, %v508_v1  ;;  %36 = vst.msk [vmem:[#allocation2 + $0x68] sm:$0xff] %vm22_vm0, %v508_v1  ;;  %456 = vmatpush3.bf16.msra.mxu0 %v495_v2  ;;  %488 = vmatpush3.bf16.msra.mxu1 %v495_v2  ;;  %v506_v13 = vld [vmem:[%s723_s0 + $0x18] sm:$0xff]   ;;  %v611_v43 = vld [vmem:[%s724_s2] ss:$0 sm:$0xff] }
   0x8   :  { %37 = vst.msk [vmem:[#allocation2 + $0x70] sm:$0xff] %vm22_vm0, %v508_v1  ;;  %38 = vst.msk [vmem:[#allocation2 + $0x78] sm:$0xff] %vm22_vm0, %v508_v1  ;;  %457 = vmatprep.subr.bf16.mxu0 %v496_v3  ;;  %483 = vmatprep.subr.bf16.mxu1 %v496_v3  ;;  %v507_v14 = vld [vmem:[%s723_s0 + $0x38] sm:$0xff]   ;;  %v41_v15 = vld [vmem:[#allocation2 + $0x10] sm:$0xff] }
   0x9   :  { %v39_v17 = vld [vmem:[#allocation2] sm:$0xff]  ;;  %v42_v21 = vld [vmem:[#allocation2 + $0x18] sm:$0xff]  ;;  %v40_v27 = vld [vmem:[#allocation2 + $0x8] sm:$0xff] }
   0xa   :  { %v43_v41 = vld [vmem:[#allocation2 + $0x20] sm:$0xff]  ;;  %v44_v52 = vld [vmem:[#allocation2 + $0x28] sm:$0xff] }
   0xb   :  { %458 = vmatpush3.bf16.msra.mxu0 %v496_v3  ;;  %489 = vmatpush3.bf16.msra.mxu1 %v496_v3  ;;  %v45_v39 = vld [vmem:[#allocation2 + $0x30] sm:$0xff]  ;;  %v46_v46 = vld [vmem:[#allocation2 + $0x38] sm:$0xff]  ;;  %v616_v55 = vld [vmem:[%s725_s3] ss:$0 sm:$0xff] }
   0xc   :  { %459 = vmatprep.subr.bf16.mxu0 %v497_v6  ;;  %484 = vmatprep.subr.bf16.mxu1 %v497_v6  ;;  %v47_v18 = vld [vmem:[#allocation2 + $0x40] sm:$0xff]  ;;  %v48_v28 = vld [vmem:[#allocation2 + $0x48] sm:$0xff] }
   0xd   :  { %v49_v16 = vld [vmem:[#allocation2 + $0x50] sm:$0xff]  ;;  %v50_v22 = vld [vmem:[#allocation2 + $0x58] sm:$0xff] }
   0xe   :  { %v51_v42 = vld [vmem:[#allocation2 + $0x60] sm:$0xff]  ;;  %v52_v53 = vld [vmem:[#allocation2 + $0x68] sm:$0xff] }
   0xf   :  { %460 = vmatpush3.bf16.msra.mxu0 %v497_v6  ;;  %490 = vmatpush3.bf16.msra.mxu1 %v497_v6  ;;  %v53_v40 = vld [vmem:[#allocation2 + $0x70] sm:$0xff]  ;;  %v54_v47 = vld [vmem:[#allocation2 + $0x78] sm:$0xff] }
  0x10   :  { %461 = vmatprep.subr.bf16.mxu0 %v498_v7  ;;  %485 = vmatprep.subr.bf16.mxu1 %v498_v7 }
  0x13   :  { %462 = vmatpush3.bf16.msra.mxu0 %v498_v7  ;;  %491 = vmatpush3.bf16.msra.mxu1 %v498_v7 }
  0x14   :  { %463 = vmatprep.subr.bf16.mxu0 %v499_v8  ;;  %486 = vmatprep.subr.bf16.mxu1 %v499_v8 }
  0x17   :  { %464 = vmatpush3.bf16.msra.mxu0 %v499_v8  ;;  %492 = vmatpush3.bf16.msra.mxu1 %v499_v8 }
  0x1a   :  { %466 = vmatmul.mubr.msk.bf16.vlgmr.msra.gmra.mrb[0].mxu0 %vm159_vm1, %v502_v9  ;;  %474 = vmatmul.mubr.msk.bf16.vlgmr.msra.gmra.mrb[0].mxu1 %vm159_vm1, %v503_v10 }
  0x1b   :  { %469 = vmatprep.mubr.msk.bf16.mxu0 %vm159_vm1, %v504_v11  ;;  %477 = vmatprep.mubr.msk.bf16.mxu1 %vm159_vm1, %v505_v12 }
  0x22   :  { %470 = vmatmul.mubr.msk.bf16.gmra.mrb[4].mxu0 %vm159_vm1, %v506_v13  ;;  %478 = vmatmul.mubr.msk.bf16.gmra.mrb[4].mxu1 %vm159_vm1, %v507_v14 }
  0xed   :  { %v467_v19 = vpop.f32.mrb[0].mxu0  ;;  %v475_v20 = vpop.f32.mrb[0].mxu1 }
  0xee   :  { %v283_v23 = vadd.f32 %v467_v19, %v41_v15  ;;  %v291_v24 = vadd.f32 %v475_v20, %v49_v16  ;;  %v218_v25 = vpop.f32.mrb[1].mxu0  ;;  %v250_v26 = vpop.f32.mrb[1].mxu1 }
  0xef   :  { %v281_v29 = vadd.f32 %v218_v25, %v39_v17  ;;  %v289_v30 = vadd.f32 %v250_v26, %v47_v18  ;;  %v468_v31 = vpop.f32.mrb[2].mxu0  ;;  %v476_v32 = vpop.f32.mrb[2].mxu1 }
  0xf0   :  { %300 = vst.msk [vmem:[#allocation2 + $0x10] sm:$0xff] %vm22_vm0, %v283_v23  ;;  %308 = vst.msk [vmem:[#allocation2 + $0x50] sm:$0xff] %vm22_vm0, %v291_v24  ;;  %v284_v33 = vadd.f32 %v468_v31, %v42_v21  ;;  %v292_v34 = vadd.f32 %v476_v32, %v50_v22  ;;  %v221_v35 = vpop.f32.mrb[3].mxu0  ;;  %v253_v36 = vpop.f32.mrb[3].mxu1 }
  0xf1   :  { %298 = vst.msk [vmem:[#allocation2] sm:$0xff] %vm22_vm0, %v281_v29  ;;  %306 = vst.msk [vmem:[#allocation2 + $0x40] sm:$0xff] %vm22_vm0, %v289_v30  ;;  %v282_v37 = vadd.f32 %v221_v35, %v40_v27  ;;  %v290_v38 = vadd.f32 %v253_v36, %v48_v28 }
  0xf2   :  { %301 = vst.msk [vmem:[#allocation2 + $0x18] sm:$0xff] %vm22_vm0, %v284_v33  ;;  %309 = vst.msk [vmem:[#allocation2 + $0x58] sm:$0xff] %vm22_vm0, %v292_v34 }
  0xf3   :  { %299 = vst.msk [vmem:[#allocation2 + $0x8] sm:$0xff] %vm22_vm0, %v282_v37  ;;  %307 = vst.msk [vmem:[#allocation2 + $0x48] sm:$0xff] %vm22_vm0, %v290_v38 }
  0xf5   :  { %v471_v44 = vpop.f32.mrb[4].mxu0  ;;  %v479_v45 = vpop.f32.mrb[4].mxu1 }
  0xf6   :  { %v287_v48 = vadd.f32 %v471_v44, %v45_v39  ;;  %v295_v49 = vadd.f32 %v479_v45, %v53_v40  ;;  %v234_v50 = vpop.f32.mrb[5].mxu0  ;;  %v266_v51 = vpop.f32.mrb[5].mxu1 }
  0xf7   :  { %v319_v54 = vld [vmem:[#allocation2 + $0x10] sm:$0xff]  ;;  %v285_v57 = vadd.f32 %v234_v50, %v43_v41  ;;  %v293_v58 = vadd.f32 %v266_v51, %v51_v42  ;;  %v472_v59 = vpop.f32.mrb[6].mxu0  ;;  %v480_v60 = vpop.f32.mrb[6].mxu1 }
  0xf8   :  { %v327_v56 = vld [vmem:[#allocation2 + $0x50] sm:$0xff]  ;;  %v342_v61 = vmul.f32 %v611_v43, %v319_v54  ;;  %v317_v63 = vld [vmem:[#allocation2] sm:$0xff]  ;;  %304 = vst.msk [vmem:[#allocation2 + $0x30] sm:$0xff] %vm22_vm0, %v287_v48  ;;  %312 = vst.msk [vmem:[#allocation2 + $0x70] sm:$0xff] %vm22_vm0, %v295_v49  ;;  %v288_v1 = vadd.f32 %v472_v59, %v46_v46  ;;  %v296_v2 = vadd.f32 %v480_v60, %v54_v47  ;;  %v237_v3 = vpop.f32.mrb[7].mxu0  ;;  %v269_v4 = vpop.f32.mrb[7].mxu1 }
  0xf9   :  { %v350_v62 = vmul.f32 %v611_v43, %v327_v56  ;;  %v325_v0 = vld [vmem:[#allocation2 + $0x40] sm:$0xff]  ;;  %v340_v5 = vmul.f32 %v611_v43, %v317_v63  ;;  %v320_v7 = vld [vmem:[#allocation2 + $0x18] sm:$0xff]  ;;  %302 = vst.msk [vmem:[#allocation2 + $0x20] sm:$0xff] %vm22_vm0, %v285_v57  ;;  %310 = vst.msk [vmem:[#allocation2 + $0x60] sm:$0xff] %vm22_vm0, %v293_v58  ;;  %v286_v9 = vadd.f32 %v237_v3, %v44_v52 }
  0xfa   :  { %v348_v6 = vmul.f32 %v611_v43, %v325_v0  ;;  %v328_v8 = vld [vmem:[#allocation2 + $0x58] sm:$0xff]  ;;  %v294_v10 = vadd.f32 %v269_v4, %v52_v53  ;;  %v365_v11 = vadd.f32 %v616_v55, %v342_v61  ;;  %v343_v13 = vmul.f32 %v611_v43, %v320_v7  ;;  %v318_v15 = vld [vmem:[#allocation2 + $0x8] sm:$0xff]  ;;  %305 = vst.msk [vmem:[#allocation2 + $0x38] sm:$0xff] %vm22_vm0, %v288_v1 }
  0xfb   :  { %v373_v12 = vadd.f32 %v616_v55, %v350_v62  ;;  %v351_v14 = vmul.f32 %v611_v43, %v328_v8  ;;  %v326_v16 = vld [vmem:[#allocation2 + $0x48] sm:$0xff]  ;;  %313 = vst.msk [vmem:[#allocation2 + $0x78] sm:$0xff] %vm22_vm0, %v296_v2  ;;  %v363_v17 = vadd.f32 %v616_v55, %v340_v5  ;;  %v341_v19 = vmul.f32 %v611_v43, %v318_v15 }
  0xfc   :  { %v371_v18 = vadd.f32 %v616_v55, %v348_v6  ;;  %v349_v20 = vmul.f32 %v611_v43, %v326_v16  ;;  %303 = vst.msk [vmem:[#allocation2 + $0x28] sm:$0xff] %vm22_vm0, %v286_v9  ;;  %311 = vst.msk [vmem:[#allocation2 + $0x68] sm:$0xff] %vm22_vm0, %v294_v10  ;;  %v381_v21 = vmax.f32 %v365_v11, 0.0  ;;  %v366_v23 = vadd.f32 %v616_v55, %v343_v13 }
  0xfd   :  { %v389_v22 = vmax.f32 %v373_v12, 0.0  ;;  %v374_v24 = vadd.f32 %v616_v55, %v351_v14  ;;  %v379_v25 = vmax.f32 %v363_v17, 0.0  ;;  %v364_v27 = vadd.f32 %v616_v55, %v341_v19 }
  0xfe   :  { %v387_v26 = vmax.f32 %v371_v18, 0.0  ;;  %v372_v28 = vadd.f32 %v616_v55, %v349_v20  ;;  %397 = vst.msk [vmem:[%s726_s4 + $0x10] sm:$0xff] %vm22_vm0, %v381_v21  ;;  %v382_v29 = vmax.f32 %v366_v23, 0.0 }
  0xff   :  { %405 = vst.msk [vmem:[%s726_s4 + $0x50] sm:$0xff] %vm22_vm0, %v389_v22  ;;  %v390_v30 = vmax.f32 %v374_v24, 0.0  ;;  %395 = vst.msk [vmem:[%s726_s4] sm:$0xff] %vm22_vm0, %v379_v25  ;;  %v380_v31 = vmax.f32 %v364_v27, 0.0  ;;  %v323_v33 = vld [vmem:[#allocation2 + $0x30] sm:$0xff] }
 0x100   :  { %403 = vst.msk [vmem:[%s726_s4 + $0x40] sm:$0xff] %vm22_vm0, %v387_v26  ;;  %v388_v32 = vmax.f32 %v372_v28, 0.0  ;;  %v331_v34 = vld [vmem:[#allocation2 + $0x70] sm:$0xff]  ;;  %398 = vst.msk [vmem:[%s726_s4 + $0x18] sm:$0xff] %vm22_vm0, %v382_v29  ;;  %v346_v35 = vmul.f32 %v611_v43, %v323_v33  ;;  %v321_v37 = vld [vmem:[#allocation2 + $0x20] sm:$0xff] }
 0x101   :  { %406 = vst.msk [vmem:[%s726_s4 + $0x58] sm:$0xff] %vm22_vm0, %v390_v30  ;;  %v354_v36 = vmul.f32 %v611_v43, %v331_v34  ;;  %v329_v38 = vld [vmem:[#allocation2 + $0x60] sm:$0xff]  ;;  %396 = vst.msk [vmem:[%s726_s4 + $0x8] sm:$0xff] %vm22_vm0, %v380_v31  ;;  %v344_v39 = vmul.f32 %v611_v43, %v321_v37  ;;  %v324_v41 = vld [vmem:[#allocation2 + $0x38] sm:$0xff] }
 0x102   :  { %404 = vst.msk [vmem:[%s726_s4 + $0x48] sm:$0xff] %vm22_vm0, %v388_v32  ;;  %v352_v40 = vmul.f32 %v611_v43, %v329_v38  ;;  %v332_v42 = vld [vmem:[#allocation2 + $0x78] sm:$0xff]  ;;  %v369_v44 = vadd.f32 %v616_v55, %v346_v35  ;;  %v347_v46 = vmul.f32 %v611_v43, %v324_v41 }
 0x103   :  { %v377_v45 = vadd.f32 %v616_v55, %v354_v36  ;;  %v355_v47 = vmul.f32 %v611_v43, %v332_v42  ;;  %v322_v48 = vld [vmem:[#allocation2 + $0x28] sm:$0xff]  ;;  %v367_v50 = vadd.f32 %v616_v55, %v344_v39 }
 0x104   :  { %v330_v49 = vld [vmem:[#allocation2 + $0x68] sm:$0xff]  ;;  %v375_v51 = vadd.f32 %v616_v55, %v352_v40  ;;  %v345_v52 = vmul.f32 %v611_v43, %v322_v48  ;;  %v385_v54 = vmax.f32 %v369_v44, 0.0  ;;  %v370_v57 = vadd.f32 %v616_v55, %v347_v46 }
 0x105   :  { %v353_v53 = vmul.f32 %v611_v43, %v330_v49  ;;  %v393_v56 = vmax.f32 %v377_v45, 0.0  ;;  %v378_v58 = vadd.f32 %v616_v55, %v355_v47  ;;  %v383_v59 = vmax.f32 %v367_v50, 0.0 }
 0x106   :  { %v391_v60 = vmax.f32 %v375_v51, 0.0  ;;  %v368_v61 = vadd.f32 %v616_v55, %v345_v52  ;;  %401 = vst.msk [vmem:[%s726_s4 + $0x30] sm:$0xff] %vm22_vm0, %v385_v54  ;;  %v386_v43 = vmax.f32 %v370_v57, 0.0 }
 0x107   :  { %v376_v62 = vadd.f32 %v616_v55, %v353_v53  ;;  %409 = vst.msk [vmem:[%s726_s4 + $0x70] sm:$0xff] %vm22_vm0, %v393_v56  ;;  %v394_v63 = vmax.f32 %v378_v58, 0.0  ;;  %399 = vst.msk [vmem:[%s726_s4 + $0x20] sm:$0xff] %vm22_vm0, %v383_v59 }
 0x108   :  { %407 = vst.msk [vmem:[%s726_s4 + $0x60] sm:$0xff] %vm22_vm0, %v391_v60  ;;  %v384_v55 = vmax.f32 %v368_v61, 0.0  ;;  %402 = vst.msk [vmem:[%s726_s4 + $0x38] sm:$0xff] %vm22_vm0, %v386_v43 }
 0x109   :  { %v392_v0 = vmax.f32 %v376_v62, 0.0  ;;  %410 = vst.msk [vmem:[%s726_s4 + $0x78] sm:$0xff] %vm22_vm0, %v394_v63 }
 0x10a   :  { %400 = vst.msk [vmem:[%s726_s4 + $0x28] sm:$0xff] %vm22_vm0, %v384_v55 }
 0x10b   :  { %408 = vst.msk [vmem:[%s726_s4 + $0x68] sm:$0xff] %vm22_vm0, %v392_v0 }

</bundles_post_ra>
